<compile_context>
chip_gen: v7x
topology: tpu7x:2x2x1
jax: 0.10.0
libtpu: 0.0.40
codegen_flags: <defaults>
</compile_context>

<pallas_src>
import jax
import jax.numpy as jnp
from jax.experimental import pallas as pl
from jax.experimental.pallas import tpu as pltpu

CONTEXT_SIZE = 64
LAYER_SIZE = 256
LN_EPS = 1e-3

_MIB = 1024 * 1024


def _cdiv(a, b):
    return -(-a // b)


def _round_up(x, m):
    return ((x + m - 1) // m) * m


def _tpu_generation():
    """Best-effort TPU generation (7, 6, 5, ...) from device_kind; None if unknown."""
    try:
        dev = jax.devices()[0]
        if dev.platform != "tpu":
            return None
        kind = dev.device_kind.lower()
    except Exception:
        return None
    for g in (7, 6, 5, 4, 3, 2):
        if f"v{g}" in kind:
            return g
    return None


def _silu(x):
    return x * jax.nn.sigmoid(x)


def _layernorm_onepass(x, gamma, beta, eps):
    # One-pass LN: sum(x) and sum(x*x) are independent cross-lane reductions
    # (shorter XLU chain). Biased variance, eps inside rsqrt — matches
    # torch.nn.LayerNorm(eps=1e-3) semantics (validated below against a
    # two-pass torch-style reference).
    n = x.shape[-1]
    inv_n = 1.0 / float(n)
    mu = jnp.sum(x, axis=-1, keepdims=True) * inv_n
    ex2 = jnp.sum(x * x, axis=-1, keepdims=True) * inv_n
    var = jnp.maximum(ex2 - mu * mu, 0.0)
    return (x - mu) * jax.lax.rsqrt(var + eps) * gamma + beta


def _make_kernel(silu_dtype):
    """silu_dtype: bf16 on v6e/v7x (fast EUP sigmoid, feeds bf16 MXU directly),
    f32 on v5e / unknown chips (no bf16 VPU/EUP there)."""

    def ctxenc_kernel(x_ref, w0_ref, g0_ref, b0_ref,
                      w1_ref, g1_ref, b1_ref, w2_ref, o_ref):
        # MXU operands in bf16 (weights already shipped as bf16), f32 accumulate.
        x = x_ref[...].astype(jnp.bfloat16)

        # Linear0 (no bias) + LayerNorm0 + SiLU.
        h = jnp.dot(x, w0_ref[...], preferred_element_type=jnp.float32)
        h = _silu(_layernorm_onepass(h, g0_ref[...], b0_ref[...],
                                     LN_EPS).astype(silu_dtype))

        # Linear1 (no bias) + LayerNorm1 + SiLU.
        h = jnp.dot(h.astype(jnp.bfloat16), w1_ref[...],
                    preferred_element_type=jnp.float32)
        h = _silu(_layernorm_onepass(h, g1_ref[...], b1_ref[...],
                                     LN_EPS).astype(silu_dtype))

        # Linear_out (no bias) + final SiLU (kept in f32: feeds the f32 output).
        h = jnp.dot(h.astype(jnp.bfloat16), w2_ref[...],
                    preferred_element_type=jnp.float32)
        o_ref[...] = _silu(h).astype(o_ref.dtype)

    return ctxenc_kernel


def _const_spec(shape):
    """Full-array block, same block every grid step (weights / LN params)."""
    return pl.BlockSpec(shape, lambda i: (0,) * len(shape))


def _build_call(b_pad, d_in, tile_b, silu_dtype):
    grid = (b_pad // tile_b,)

    weight_elems = (d_in * LAYER_SIZE + LAYER_SIZE * LAYER_SIZE
                    + LAYER_SIZE * CONTEXT_SIZE)
    flops = 2 * b_pad * weight_elems
    transcendentals = b_pad * (2 * LAYER_SIZE + CONTEXT_SIZE + 2)  # sigmoids + rsqrts
    bytes_accessed = (2 * weight_elems                     # bf16 weights
                      + 4 * 4 * LAYER_SIZE                 # f32 LN params
                      + 4 * b_pad * (d_in + CONTEXT_SIZE))  # f32 in/out

    # VMEM budget: double-buffered x/out tiles, double-buffered (~180 KB) weight
    # set, a few [tile_b, 256] f32 temporaries. Generous headroom, capped at the
    # smallest scoped default across generations (32 MiB).
    est_vmem = (2 * tile_b * (d_in + CONTEXT_SIZE) * 4
                + 2 * (2 * weight_elems + 4 * 4 * LAYER_SIZE)
                + 4 * tile_b * LAYER_SIZE * 4)
    vmem_limit = int(min(max(4 * est_vmem, 16 * _MIB), 32 * _MIB))

    return pl.pallas_call(
        _make_kernel(silu_dtype),
        out_shape=jax.ShapeDtypeStruct((b_pad, CONTEXT_SIZE), jnp.float32),
        grid=grid,
        in_specs=[
            pl.BlockSpec((tile_b, d_in), lambda i: (i, 0)),   # obs tile
            _const_spec((d_in, LAYER_SIZE)),                  # W0 (bf16)
            _const_spec((1, LAYER_SIZE)),                     # gamma0
            _const_spec((1, LAYER_SIZE)),                     # beta0
            _const_spec((LAYER_SIZE, LAYER_SIZE)),            # W1 (bf16)
            _const_spec((1, LAYER_SIZE)),                     # gamma1
            _const_spec((1, LAYER_SIZE)),                     # beta1
            _const_spec((LAYER_SIZE, CONTEXT_SIZE)),          # W2 (bf16)
        ],
        out_specs=pl.BlockSpec((tile_b, CONTEXT_SIZE), lambda i: (i, 0)),
        compiler_params=pltpu.CompilerParams(
            dimension_semantics=("parallel",),
            vmem_limit_bytes=vmem_limit),
        cost_estimate=pl.CostEstimate(
            flops=int(flops),
            transcendentals=int(transcendentals),
            bytes_accessed=int(bytes_accessed)),
    )


def _pick_tiling(batch, tile_b, num_tc):
    """Balanced batch tiles: decide the step count first, then size the tile.

    Returns (tile_rows, padded_batch, n_steps) with tile_rows a multiple of 8,
    at most 7 rows of padding per tile, and (on multi-TC chips) >= num_tc grid
    steps whenever the batch is large enough to split.
    """
    tile_b = max(8, int(tile_b))
    n_steps = _cdiv(batch, tile_b)
    if num_tc >= 2 and n_steps < num_tc and batch >= 8 * num_tc:
        n_steps = num_tc  # v7x megacore: keep both TensorCores busy
    tb = _round_up(_cdiv(batch, n_steps), 8)
    n_steps = _cdiv(batch, tb)
    return tb, tb * n_steps, n_steps


def context_encoder_forward(obs, params, *, tile_b=1024):
    """obs: [B, k*obs_size] float32. Returns [B, CONTEXT_SIZE] float32.

    Precision note: matmuls run with bf16 inputs / f32 accumulation on the MXU;
    on v6e/v7x the inter-layer SiLU also runs in bf16. LayerNorm statistics are
    always computed in f32.
    """
    batch, d_in = obs.shape
    w0, g0, b0, w1, g1, b1, w2 = params

    gen = _tpu_generation()
    num_tc = 2 if (gen is not None and gen >= 7) else 1
    silu_dtype = jnp.bfloat16 if (gen is not None and gen >= 6) else jnp.float32

    # bf16 matmul operands (no-op if already bf16); LN params stay f32.
    w0 = w0.astype(jnp.bfloat16)
    w1 = w1.astype(jnp.bfloat16)
    w2 = w2.astype(jnp.bfloat16)

    tb, b_pad, _ = _pick_tiling(batch, tile_b, num_tc)
    obs_p = jnp.pad(obs, ((0, b_pad - batch), (0, 0))) if b_pad != batch else obs

    out_p = _build_call(b_pad, d_in, tb, silu_dtype)(
        obs_p, w0, g0, b0, w1, g1, b1, w2)

    return out_p[:batch] if b_pad != batch else out_p


def init_params(key, obs_size, k=1):
    """Deterministic synthetic parameters (shapes match the PyTorch module)."""
    d_in = k * obs_size
    k0, k1, k2, kg0, kb0, kg1, kb1 = jax.random.split(key, 7)
    # Stored as [in, out] (pre-transposed relative to nn.Linear's [out, in]).
    w0 = jax.random.normal(k0, (d_in, LAYER_SIZE), jnp.float32) * 0.05
    w1 = jax.random.normal(k1, (LAYER_SIZE, LAYER_SIZE), jnp.float32) * 0.05
    w2 = jax.random.normal(k2, (LAYER_SIZE, CONTEXT_SIZE), jnp.float32) * 0.05
    # LayerNorm affine params (torch default ones/zeros; perturbed to be nontrivial).
    g0 = 1.0 + 0.1 * jax.random.normal(kg0, (1, LAYER_SIZE), jnp.float32)
    b0 = 0.1 * jax.random.normal(kb0, (1, LAYER_SIZE), jnp.float32)
    g1 = 1.0 + 0.1 * jax.random.normal(kg1, (1, LAYER_SIZE), jnp.float32)
    b1 = 0.1 * jax.random.normal(kb1, (1, LAYER_SIZE), jnp.float32)
    return (w0, g0, b0, w1, g1, b1, w2)


def reference_forward(obs, params, matmul_dtype=jnp.float32, silu_dtype=jnp.float32):
    """Pure-JAX reference mirroring the kernel's dtype choices."""
    w0, g0, b0, w1, g1, b1, w2 = params

    def mm(a, w):
        return jnp.dot(a.astype(matmul_dtype), w.astype(matmul_dtype),
                       preferred_element_type=jnp.float32)

    h = _silu(_layernorm_onepass(mm(obs, w0), g0, b0, LN_EPS).astype(silu_dtype))
    h = _silu(_layernorm_onepass(mm(h, w1), g1, b1, LN_EPS).astype(silu_dtype))
    return _silu(mm(h, w2))


def reference_forward_torch_f32(obs, params):
    """f32, two-pass (torch-style) LayerNorm reference — fidelity check vs nn.LayerNorm."""
    w0, g0, b0, w1, g1, b1, w2 = params

    def ln(x, g, b):
        mu = jnp.mean(x, axis=-1, keepdims=True)
        var = jnp.mean((x - mu) ** 2, axis=-1, keepdims=True)
        return (x - mu) * jax.lax.rsqrt(var + LN_EPS) * g + b

    h = _silu(ln(obs @ w0, g0, b0))
    h = _silu(ln(h @ w1, g1, b1))
    return _silu(h @ w2)


if __name__ == "__main__":
    key = jax.random.PRNGKey(0)
    k_obs, k_param = jax.random.split(key)

    obs_size = 32   # obs_space[0][0]
    k = 1
    batch = 300     # exercises balanced tiling (304 padded rows, not 512)

    params = init_params(k_param, obs_size, k=k)
    obs = jax.random.normal(k_obs, (batch, k * obs_size), jnp.float32)

    out = jax.block_until_ready(context_encoder_forward(obs, params))
    assert out.shape == (batch, CONTEXT_SIZE), out.shape

    # Reference mirroring the kernel's precision (bf16 matmuls, chip-dependent SiLU dtype).
    gen = _tpu_generation()
    silu_dtype = jnp.bfloat16 if (gen is not None and gen >= 6) else jnp.float32
    ref_mirror = reference_forward(obs, params,
                                   matmul_dtype=jnp.bfloat16, silu_dtype=silu_dtype)
    # Full-f32, two-pass torch-style LayerNorm reference (module fidelity).
    ref_torch = reference_forward_torch_f32(obs, params)

    err_mirror = float(jnp.max(jnp.abs(out - ref_mirror)))
    err_torch = float(jnp.max(jnp.abs(out - ref_torch)))
    assert jnp.allclose(out, ref_mirror, atol=1e-2, rtol=1e-2), err_mirror
    assert jnp.allclose(out, ref_torch, atol=5e-2, rtol=5e-2), err_torch

    # Ragged / tiny batch path (exercises padding + tile clamping).
    out_small = jax.block_until_ready(context_encoder_forward(obs[:10], params))
    assert out_small.shape == (10, CONTEXT_SIZE), out_small.shape
    assert jnp.allclose(out_small, ref_mirror[:10], atol=1e-2, rtol=1e-2)

    print("KERNEL_OK")
</pallas_src>

<mosaic_0001>
module attributes {stable_mosaic.version = 11 : i64} {
  func.func @ctxenc_kernel(%arg0: i32, %arg1: memref<304x32xf32, #tpu.memory_space<vmem>>, %arg2: memref<32x256xbf16, #tpu.memory_space<vmem>>, %arg3: memref<1x256xf32, #tpu.memory_space<vmem>>, %arg4: memref<1x256xf32, #tpu.memory_space<vmem>>, %arg5: memref<256x256xbf16, #tpu.memory_space<vmem>>, %arg6: memref<1x256xf32, #tpu.memory_space<vmem>>, %arg7: memref<1x256xf32, #tpu.memory_space<vmem>>, %arg8: memref<256x64xbf16, #tpu.memory_space<vmem>>, %arg9: memref<304x64xf32, #tpu.memory_space<vmem>>) attributes {dimension_semantics = [#tpu.dimension_semantics<parallel>], iteration_bounds = array<i64: 1>, scalar_prefetch = 0 : i64, scratch_operands = 0 : i64, tpu.core_type = #tpu.core_type<tc>, window_params = [{transform_indices = @transform_0, window_bounds = array<i64: 304, 32>}, {pipeline_mode = #tpu.pipeline_mode<synchronous>, transform_indices = @transform_1, window_bounds = array<i64: 32, 256>}, {pipeline_mode = #tpu.pipeline_mode<synchronous>, transform_indices = @transform_2, window_bounds = array<i64: 1, 256>}, {pipeline_mode = #tpu.pipeline_mode<synchronous>, transform_indices = @transform_3, window_bounds = array<i64: 1, 256>}, {pipeline_mode = #tpu.pipeline_mode<synchronous>, transform_indices = @transform_4, window_bounds = array<i64: 256, 256>}, {pipeline_mode = #tpu.pipeline_mode<synchronous>, transform_indices = @transform_5, window_bounds = array<i64: 1, 256>}, {pipeline_mode = #tpu.pipeline_mode<synchronous>, transform_indices = @transform_6, window_bounds = array<i64: 1, 256>}, {pipeline_mode = #tpu.pipeline_mode<synchronous>, transform_indices = @transform_7, window_bounds = array<i64: 256, 64>}, {transform_indices = @transform_8, window_bounds = array<i64: 304, 64>}]} {
    %c0 = arith.constant 0 : index
    %c0_0 = arith.constant 0 : index
    %0 = vector.load %arg1[%c0, %c0_0] : memref<304x32xf32, #tpu.memory_space<vmem>>, vector<304x32xf32>
    %1 = arith.truncf %0 : vector<304x32xf32> to vector<304x32xbf16>
    %c0_1 = arith.constant 0 : index
    %c0_2 = arith.constant 0 : index
    %2 = vector.load %arg2[%c0_1, %c0_2] : memref<32x256xbf16, #tpu.memory_space<vmem>>, vector<32x256xbf16>
    %cst = arith.constant dense<0.000000e+00> : vector<304x256xf32>
    %3 = tpu.matmul %1, %2, %cst {dimension_numbers = #tpu.dot_dimension_numbers<[1], [0], [0], [1], [0, 0, 1, 1], [], []>} : vector<304x32xbf16>, vector<32x256xbf16>, vector<304x256xf32> -> vector<304x256xf32>
    %c0_3 = arith.constant 0 : index
    %c0_4 = arith.constant 0 : index
    %4 = vector.load %arg3[%c0_3, %c0_4] : memref<1x256xf32, #tpu.memory_space<vmem>>, vector<1x256xf32>
    %c0_5 = arith.constant 0 : index
    %c0_6 = arith.constant 0 : index
    %5 = vector.load %arg4[%c0_5, %c0_6] : memref<1x256xf32, #tpu.memory_space<vmem>>, vector<1x256xf32>
    %cst_7 = arith.constant dense<0.000000e+00> : vector<304xf32>
    %6 = vector.multi_reduction <add>, %3, %cst_7 [1] : vector<304x256xf32> to vector<304xf32>
    %7 = vector.shape_cast %6 : vector<304xf32> to vector<304x1xf32>
    %cst_8 = arith.constant 3.906250e-03 : f32
    %8 = vector.broadcast %cst_8 : f32 to vector<304x1xf32>
    %9 = arith.mulf %7, %8 : vector<304x1xf32>
    %10 = arith.mulf %3, %3 : vector<304x256xf32>
    %cst_9 = arith.constant dense<0.000000e+00> : vector<304xf32>
    %11 = vector.multi_reduction <add>, %10, %cst_9 [1] : vector<304x256xf32> to vector<304xf32>
    %12 = vector.shape_cast %11 : vector<304xf32> to vector<304x1xf32>
    %cst_10 = arith.constant 3.906250e-03 : f32
    %13 = vector.broadcast %cst_10 : f32 to vector<304x1xf32>
    %14 = arith.mulf %12, %13 : vector<304x1xf32>
    %15 = arith.mulf %9, %9 : vector<304x1xf32>
    %16 = arith.subf %14, %15 : vector<304x1xf32>
    %cst_11 = arith.constant 0.000000e+00 : f32
    %17 = vector.broadcast %cst_11 : f32 to vector<304x1xf32>
    %18 = arith.maximumf %16, %17 : vector<304x1xf32>
    %19 = vector.broadcast %9 : vector<304x1xf32> to vector<304x256xf32>
    %20 = arith.subf %3, %19 : vector<304x256xf32>
    %cst_12 = arith.constant 1.000000e-03 : f32
    %21 = vector.broadcast %cst_12 : f32 to vector<304x1xf32>
    %22 = arith.addf %18, %21 : vector<304x1xf32>
    %23 = math.rsqrt %22 : vector<304x1xf32>
    %24 = vector.broadcast %23 : vector<304x1xf32> to vector<304x256xf32>
    %25 = arith.mulf %20, %24 : vector<304x256xf32>
    %26 = vector.broadcast %4 : vector<1x256xf32> to vector<304x256xf32>
    %27 = arith.mulf %25, %26 : vector<304x256xf32>
    %28 = vector.broadcast %5 : vector<1x256xf32> to vector<304x256xf32>
    %29 = arith.addf %27, %28 : vector<304x256xf32>
    %30 = arith.negf %29 : vector<304x256xf32>
    %31 = math.exp %30 : vector<304x256xf32>
    %cst_13 = arith.constant 1.000000e+00 : f32
    %32 = vector.broadcast %cst_13 : f32 to vector<304x256xf32>
    %33 = arith.addf %32, %31 : vector<304x256xf32>
    %34 = arith.divf %32, %33 : vector<304x256xf32>
    %35 = arith.mulf %29, %34 : vector<304x256xf32>
    %36 = arith.truncf %35 : vector<304x256xf32> to vector<304x256xbf16>
    %c0_14 = arith.constant 0 : index
    %c0_15 = arith.constant 0 : index
    %37 = vector.load %arg5[%c0_14, %c0_15] : memref<256x256xbf16, #tpu.memory_space<vmem>>, vector<256x256xbf16>
    %cst_16 = arith.constant dense<0.000000e+00> : vector<304x256xf32>
    %38 = tpu.matmul %36, %37, %cst_16 {dimension_numbers = #tpu.dot_dimension_numbers<[1], [0], [0], [1], [0, 0, 1, 1], [], []>} : vector<304x256xbf16>, vector<256x256xbf16>, vector<304x256xf32> -> vector<304x256xf32>
    %c0_17 = arith.constant 0 : index
    %c0_18 = arith.constant 0 : index
    %39 = vector.load %arg6[%c0_17, %c0_18] : memref<1x256xf32, #tpu.memory_space<vmem>>, vector<1x256xf32>
    %c0_19 = arith.constant 0 : index
    %c0_20 = arith.constant 0 : index
    %40 = vector.load %arg7[%c0_19, %c0_20] : memref<1x256xf32, #tpu.memory_space<vmem>>, vector<1x256xf32>
    %cst_21 = arith.constant dense<0.000000e+00> : vector<304xf32>
    %41 = vector.multi_reduction <add>, %38, %cst_21 [1] : vector<304x256xf32> to vector<304xf32>
    %42 = vector.shape_cast %41 : vector<304xf32> to vector<304x1xf32>
    %cst_22 = arith.constant 3.906250e-03 : f32
    %43 = vector.broadcast %cst_22 : f32 to vector<304x1xf32>
    %44 = arith.mulf %42, %43 : vector<304x1xf32>
    %45 = arith.mulf %38, %38 : vector<304x256xf32>
    %cst_23 = arith.constant dense<0.000000e+00> : vector<304xf32>
    %46 = vector.multi_reduction <add>, %45, %cst_23 [1] : vector<304x256xf32> to vector<304xf32>
    %47 = vector.shape_cast %46 : vector<304xf32> to vector<304x1xf32>
    %cst_24 = arith.constant 3.906250e-03 : f32
    %48 = vector.broadcast %cst_24 : f32 to vector<304x1xf32>
    %49 = arith.mulf %47, %48 : vector<304x1xf32>
    %50 = arith.mulf %44, %44 : vector<304x1xf32>
    %51 = arith.subf %49, %50 : vector<304x1xf32>
    %cst_25 = arith.constant 0.000000e+00 : f32
    %52 = vector.broadcast %cst_25 : f32 to vector<304x1xf32>
    %53 = arith.maximumf %51, %52 : vector<304x1xf32>
    %54 = vector.broadcast %44 : vector<304x1xf32> to vector<304x256xf32>
    %55 = arith.subf %38, %54 : vector<304x256xf32>
    %cst_26 = arith.constant 1.000000e-03 : f32
    %56 = vector.broadcast %cst_26 : f32 to vector<304x1xf32>
    %57 = arith.addf %53, %56 : vector<304x1xf32>
    %58 = math.rsqrt %57 : vector<304x1xf32>
    %59 = vector.broadcast %58 : vector<304x1xf32> to vector<304x256xf32>
    %60 = arith.mulf %55, %59 : vector<304x256xf32>
    %61 = vector.broadcast %39 : vector<1x256xf32> to vector<304x256xf32>
    %62 = arith.mulf %60, %61 : vector<304x256xf32>
    %63 = vector.broadcast %40 : vector<1x256xf32> to vector<304x256xf32>
    %64 = arith.addf %62, %63 : vector<304x256xf32>
    %65 = arith.negf %64 : vector<304x256xf32>
    %66 = math.exp %65 : vector<304x256xf32>
    %cst_27 = arith.constant 1.000000e+00 : f32
    %67 = vector.broadcast %cst_27 : f32 to vector<304x256xf32>
    %68 = arith.addf %67, %66 : vector<304x256xf32>
    %69 = arith.divf %67, %68 : vector<304x256xf32>
    %70 = arith.mulf %64, %69 : vector<304x256xf32>
    %71 = arith.truncf %70 : vector<304x256xf32> to vector<304x256xbf16>
    %c0_28 = arith.constant 0 : index
    %c0_29 = arith.constant 0 : index
    %72 = vector.load %arg8[%c0_28, %c0_29] : memref<256x64xbf16, #tpu.memory_space<vmem>>, vector<256x64xbf16>
    %cst_30 = arith.constant dense<0.000000e+00> : vector<304x64xf32>
    %73 = tpu.matmul %71, %72, %cst_30 {dimension_numbers = #tpu.dot_dimension_numbers<[1], [0], [0], [1], [0, 0, 1, 1], [], []>} : vector<304x256xbf16>, vector<256x64xbf16>, vector<304x64xf32> -> vector<304x64xf32>
    %74 = arith.negf %73 : vector<304x64xf32>
    %75 = math.exp %74 : vector<304x64xf32>
    %cst_31 = arith.constant 1.000000e+00 : f32
    %76 = vector.broadcast %cst_31 : f32 to vector<304x64xf32>
    %77 = arith.addf %76, %75 : vector<304x64xf32>
    %78 = arith.divf %76, %77 : vector<304x64xf32>
    %79 = arith.mulf %73, %78 : vector<304x64xf32>
    %c0_32 = arith.constant 0 : index
    %c0_33 = arith.constant 0 : index
    %80 = vector.load %arg9[%c0_32, %c0_33] : memref<304x64xf32, #tpu.memory_space<vmem>>, vector<304x64xf32>
    tpu.vector_store %arg9[%c0_32, %c0_33], %79 {strides = array<i32>} : memref<304x64xf32, #tpu.memory_space<vmem>>, vector<304x64xf32>,
    return
  }
  func.func @transform_0(%arg0: i32) -> (i32, i32) {
    %c0_i32 = arith.constant 0 : i32
    %c0_i32_0 = arith.constant 0 : i32
    return %arg0, %c0_i32 : i32, i32
  }
  func.func @transform_1(%arg0: i32) -> (i32, i32) {
    %c0_i32 = arith.constant 0 : i32
    %c0_i32_0 = arith.constant 0 : i32
    %c0_i32_1 = arith.constant 0 : i32
    return %c0_i32, %c0_i32_0 : i32, i32
  }
  func.func @transform_2(%arg0: i32) -> (i32, i32) {
    %c0_i32 = arith.constant 0 : i32
    %c0_i32_0 = arith.constant 0 : i32
    %c0_i32_1 = arith.constant 0 : i32
    return %c0_i32, %c0_i32_0 : i32, i32
  }
  func.func @transform_3(%arg0: i32) -> (i32, i32) {
    %c0_i32 = arith.constant 0 : i32
    %c0_i32_0 = arith.constant 0 : i32
    %c0_i32_1 = arith.constant 0 : i32
    return %c0_i32, %c0_i32_0 : i32, i32
  }
  func.func @transform_4(%arg0: i32) -> (i32, i32) {
    %c0_i32 = arith.constant 0 : i32
    %c0_i32_0 = arith.constant 0 : i32
    %c0_i32_1 = arith.constant 0 : i32
    return %c0_i32, %c0_i32_0 : i32, i32
  }
  func.func @transform_5(%arg0: i32) -> (i32, i32) {
    %c0_i32 = arith.constant 0 : i32
    %c0_i32_0 = arith.constant 0 : i32
    %c0_i32_1 = arith.constant 0 : i32
    return %c0_i32, %c0_i32_0 : i32, i32
  }
  func.func @transform_6(%arg0: i32) -> (i32, i32) {
    %c0_i32 = arith.constant 0 : i32
    %c0_i32_0 = arith.constant 0 : i32
    %c0_i32_1 = arith.constant 0 : i32
    return %c0_i32, %c0_i32_0 : i32, i32
  }
  func.func @transform_7(%arg0: i32) -> (i32, i32) {
    %c0_i32 = arith.constant 0 : i32
    %c0_i32_0 = arith.constant 0 : i32
    %c0_i32_1 = arith.constant 0 : i32
    return %c0_i32, %c0_i32_0 : i32, i32
  }
  func.func @transform_8(%arg0: i32) -> (i32, i32) {
    %c0_i32 = arith.constant 0 : i32
    %c0_i32_0 = arith.constant 0 : i32
    return %arg0, %c0_i32 : i32, i32
  }
}

</mosaic_0001>

<bundles_post_ra>
// kernel: tpu_custom_call.1
= control target key start
LH: loop header
LB: loop body
LE: loop exit
PB: predicated region body
PF: predicated region fallthrough
CT: control target
= control target key end

     0   :  { %v9177_v1 = vmov 0   ;;  %vm111_vm0 = vcmask 261120   ;;  %vm4322_vm1 = vcmask 523264   ;;  %s9168_s1 = inlined_call_operand.vmem [shape: bf16[32,256], index: 1, kind: input, shape index: {}]   ;;  %s9169_s0 = inlined_call_operand.vmem [shape: f32[304,32], index: 0, kind: input, shape index: {}]   ;;  %s9170_s4 = inlined_call_operand.vmem [shape: bf16[256,256], index: 4, kind: input, shape index: {}]   ;;  %s9171_s2 = inlined_call_operand.vmem [shape: f32[1,256], index: 2, kind: input, shape index: {}]   ;;  %s9172_s3 = inlined_call_operand.vmem [shape: f32[1,256], index: 3, kind: input, shape index: {}]   ;;  %s9173_s7 = inlined_call_operand.vmem [shape: bf16[256,64], index: 7, kind: input, shape index: {}]   ;;  %s9174_s5 = inlined_call_operand.vmem [shape: f32[1,256], index: 5, kind: input, shape index: {}]   ;;  %s9175_s6 = inlined_call_operand.vmem [shape: f32[1,256], index: 6, kind: input, shape index: {}]   ;;  %s9176_s8 = inlined_call_operand.vmem [shape: f32[304,64], index: 8, kind: output, shape index: {}]  }
   0x1   :  { %v4631_v0 = vld [vmem:[%s9168_s1 + $0x4] ss:$8 sps:$4 sm:$0xff]   ;;  %201 = vmatprep.mubr.bf16.mxu0 %v9177_v1  ;;  %301 = vmatprep.mubr.bf16.mxu1 %v9177_v1  ;;  %v4633_v2 = vld [vmem:[%s9168_s1] ss:$8 sps:$4 sm:$0xff]   ;;  %v4634_v3 = vld [vmem:[%s9168_s1 + $0x14] ss:$8 sps:$4 sm:$0xff]  }
   0x2   :  { %169 = vmatprep.subr.bf16.mxu0 %v4631_v0  ;;  %4626 = vmatprep.subr.bf16.mxu1 %v4631_v0  ;;  %v4636_v4 = vld [vmem:[%s9168_s1 + $0x10] ss:$8 sps:$4 sm:$0xff]   ;;  %v30_v5 = vld [vmem:[%s9169_s0] sm:$0xff]  ;;  %v31_v6 = vld [vmem:[%s9169_s0 + $0x8] sm:$0xff] }
   0x3   :  { %170 = vmatpush1.bf16.msra.mxu0 %v4633_v2  ;;  %4628 = vmatpush1.bf16.msra.mxu1 %v4633_v2  ;;  %v68_v7 = vpack.c.bf16 %v31_v6, %v30_v5  ;;  %v50_v8 = vld [vmem:[%s9169_s0 + $0xa0] sm:$0xff]  ;;  %v51_v9 = vld [vmem:[%s9169_s0 + $0xa8] sm:$0xff]  ;;  %v32_v11 = vld [vmem:[%s9169_s0 + $0x10] sm:$0xff] }
   0x4   :  { %171 = vmatprep.subr.bf16.mxu0 %v4634_v3  ;;  %4627 = vmatprep.subr.bf16.mxu1 %v4634_v3  ;;  %v78_v10 = vpack.c.bf16 %v51_v9, %v50_v8  ;;  %v33_v12 = vld [vmem:[%s9169_s0 + $0x18] sm:$0xff]  ;;  %v52_v13 = vld [vmem:[%s9169_s0 + $0xb0] sm:$0xff]  ;;  %v34_v17 = vld [vmem:[%s9169_s0 + $0x20] sm:$0xff] }
   0x5   :  { %v53_v14 = vld [vmem:[%s9169_s0 + $0xb8] sm:$0xff]  ;;  %v69_v15 = vpack.c.bf16 %v33_v12, %v32_v11  ;;  %v35_v18 = vld [vmem:[%s9169_s0 + $0x28] sm:$0xff]  ;;  %v54_v19 = vld [vmem:[%s9169_s0 + $0xc0] sm:$0xff] }
   0x6   :  { %v79_v16 = vpack.c.bf16 %v53_v14, %v52_v13  ;;  %v55_v20 = vld [vmem:[%s9169_s0 + $0xc8] sm:$0xff]  ;;  %v70_v21 = vpack.c.bf16 %v35_v18, %v34_v17  ;;  %v36_v23 = vld [vmem:[%s9169_s0 + $0x30] sm:$0xff]  ;;  %v37_v24 = vld [vmem:[%s9169_s0 + $0x38] sm:$0xff] }
   0x7   :  { %172 = vmatpush1.bf16.msra.mxu0 %v4636_v4  ;;  %4629 = vmatpush1.bf16.msra.mxu1 %v4636_v4  ;;  %v80_v22 = vpack.c.bf16 %v55_v20, %v54_v19  ;;  %v56_v25 = vld [vmem:[%s9169_s0 + $0xd0] sm:$0xff]  ;;  %v57_v26 = vld [vmem:[%s9169_s0 + $0xd8] sm:$0xff]  ;;  %v71_v27 = vpack.c.bf16 %v37_v24, %v36_v23  ;;  %v38_v29 = vld [vmem:[%s9169_s0 + $0x40] sm:$0xff] }
   0x8   :  { %3871 = vmatprep.subr.bf16.mxu0 %v9177_v1  ;;  %v81_v28 = vpack.c.bf16 %v57_v26, %v56_v25  ;;  %v39_v30 = vld [vmem:[%s9169_s0 + $0x48] sm:$0xff]  ;;  %v58_v31 = vld [vmem:[%s9169_s0 + $0xe0] sm:$0xff]  ;;  %v40_v35 = vld [vmem:[%s9169_s0 + $0x50] sm:$0xff] }
   0x9   :  { %v59_v32 = vld [vmem:[%s9169_s0 + $0xe8] sm:$0xff]  ;;  %v72_v33 = vpack.c.bf16 %v39_v30, %v38_v29  ;;  %v41_v36 = vld [vmem:[%s9169_s0 + $0x58] sm:$0xff]  ;;  %v60_v37 = vld [vmem:[%s9169_s0 + $0xf0] sm:$0xff] }
   0xa   :  { %4369 = vmatmul.mubr.msk.bf16.vlgmr.msra.gmra.mrb[0].mxu0 %vm111_vm0, %v68_v7  ;;  %4379 = vmatmul.mubr.msk.bf16.vlgmr.msra.gmra.mrb[0].mxu1 %vm111_vm0, %v78_v10  ;;  %v82_v34 = vpack.c.bf16 %v59_v32, %v58_v31  ;;  %v61_v38 = vld [vmem:[%s9169_s0 + $0xf8] sm:$0xff]  ;;  %v73_v39 = vpack.c.bf16 %v41_v36, %v40_v35  ;;  %v42_v41 = vld [vmem:[%s9169_s0 + $0x60] sm:$0xff]  ;;  %v43_v42 = vld [vmem:[%s9169_s0 + $0x68] sm:$0xff] }
   0xb   :  { %211 = vmatprep.mubr.bf16.mxu0 %v9177_v1  ;;  %311 = vmatprep.mubr.bf16.mxu1 %v9177_v1  ;;  %v83_v40 = vpack.c.bf16 %v61_v38, %v60_v37  ;;  %v62_v43 = vld [vmem:[%s9169_s0 + $0x100] sm:$0xff]  ;;  %v63_v44 = vld [vmem:[%s9169_s0 + $0x108] sm:$0xff]  ;;  %v74_v45 = vpack.c.bf16 %v43_v42, %v42_v41  ;;  %v44_v47 = vld [vmem:[%s9169_s0 + $0x70] sm:$0xff] }
   0xc   :  { %v84_v46 = vpack.c.bf16 %v63_v44, %v62_v43  ;;  %v45_v48 = vld [vmem:[%s9169_s0 + $0x78] sm:$0xff]  ;;  %v64_v49 = vld [vmem:[%s9169_s0 + $0x110] sm:$0xff]  ;;  %v46_v53 = vld [vmem:[%s9169_s0 + $0x80] sm:$0xff] }
   0xd   :  { %v65_v50 = vld [vmem:[%s9169_s0 + $0x118] sm:$0xff]  ;;  %v75_v51 = vpack.c.bf16 %v45_v48, %v44_v47  ;;  %v47_v54 = vld [vmem:[%s9169_s0 + $0x88] sm:$0xff]  ;;  %v66_v55 = vld [vmem:[%s9169_s0 + $0x120] sm:$0xff] }
   0xe   :  { %v85_v52 = vpack.c.bf16 %v65_v50, %v64_v49  ;;  %v67_v56 = vld [vmem:[%s9169_s0 + $0x128] sm:$0xff]  ;;  %v76_v57 = vpack.c.bf16 %v47_v54, %v46_v53  ;;  %v48_v59 = vld [vmem:[%s9169_s0 + $0x90] sm:$0xff]  ;;  %v49_v60 = vld [vmem:[%s9169_s0 + $0x98] sm:$0xff] }
   0xf   :  { %v86_v58 = vpack.c.bf16 %v67_v56, %v66_v55  ;;  %v77_v61 = vpack.c.bf16 %v49_v60, %v48_v59  ;;  %v4639_v25 = vld [vmem:[%s9170_s4 + $0x4] ss:$8 sps:$4 sm:$0xff]   ;;  %v4640_v32 = vld [vmem:[%s9170_s4 + $0x10] ss:$8 sps:$4 sm:$0xff]   ;;  %v4643_v49 = vld [vmem:[%s9170_s4 + $0x20] ss:$8 sps:$4 sm:$0xff]  }
  0x10   :  { %2052 = vmatprep.subr.bf16.mxu1 %v4639_v25  ;;  %v4645_v50 = vld [vmem:[%s9170_s4 + $0x24] ss:$8 sps:$4 sm:$0xff]  }
  0x12   :  { %4370 = vmatmul.mubr.msk.bf16.gmra.mrb[4].mxu0 %vm111_vm0, %v69_v15  ;;  %4380 = vmatmul.mubr.msk.bf16.gmra.mrb[4].mxu1 %vm111_vm0, %v79_v16 }
  0x13   :  { %221 = vmatprep.mubr.bf16.mxu0 %v9177_v1  ;;  %321 = vmatprep.mubr.bf16.mxu1 %v9177_v1 }
  0x1a   :  { %4371 = vmatmul.mubr.msk.bf16.gmra.mrb[8].mxu0 %vm111_vm0, %v70_v21  ;;  %4381 = vmatmul.mubr.msk.bf16.gmra.mrb[8].mxu1 %vm111_vm0, %v80_v22  ;;  %v4637_v22 = vld [vmem:[%s9170_s4] ss:$8 sps:$4 sm:$0xff]  }
  0x1b   :  { %231 = vmatprep.mubr.bf16.mxu0 %v9177_v1  ;;  %331 = vmatprep.mubr.bf16.mxu1 %v9177_v1 }
  0x1c   :  { %2053 = vmatpush1.bf16.msra.mxu1 %v4637_v22 }
  0x22   :  { %4372 = vmatmul.mubr.msk.bf16.gmra.mrb[12].mxu0 %vm111_vm0, %v71_v27  ;;  %4382 = vmatmul.mubr.msk.bf16.gmra.mrb[12].mxu1 %vm111_vm0, %v81_v28 }
  0x23   :  { %241 = vmatprep.mubr.bf16.mxu0 %v9177_v1  ;;  %341 = vmatprep.mubr.bf16.mxu1 %v9177_v1 }
  0x2a   :  { %4373 = vmatmul.mubr.msk.bf16.gmra.mrb[16].mxu0 %vm111_vm0, %v72_v33  ;;  %4383 = vmatmul.mubr.msk.bf16.gmra.mrb[16].mxu1 %vm111_vm0, %v82_v34  ;;  %v4642_v33 = vld [vmem:[%s9170_s4 + $0x14] ss:$8 sps:$4 sm:$0xff]  }
  0x2b   :  { %251 = vmatprep.mubr.bf16.mxu0 %v9177_v1  ;;  %351 = vmatprep.mubr.bf16.mxu1 %v9177_v1 }
  0x2c   :  { %2054 = vmatprep.subr.bf16.mxu1 %v4642_v33 }
  0x2d   :  { %2055 = vmatpush1.bf16.msra.mxu1 %v4640_v32 }
  0x2e   :  { %2056 = vmatprep.subr.bf16.mxu1 %v4645_v50 }
  0x31   :  { %2057 = vmatpush1.bf16.msra.mxu1 %v4643_v49 }
  0x32   :  { %4374 = vmatmul.mubr.msk.bf16.gmra.mrb[20].mxu0 %vm111_vm0, %v73_v39  ;;  %4384 = vmatmul.mubr.msk.bf16.gmra.mrb[20].mxu1 %vm111_vm0, %v83_v40 }
  0x33   :  { %261 = vmatprep.mubr.bf16.mxu0 %v9177_v1  ;;  %361 = vmatprep.mubr.bf16.mxu1 %v9177_v1 }
  0x3a   :  { %4375 = vmatmul.mubr.msk.bf16.gmra.mrb[24].mxu0 %vm111_vm0, %v74_v45  ;;  %4385 = vmatmul.mubr.msk.bf16.gmra.mrb[24].mxu1 %vm111_vm0, %v84_v46 }
  0x3b   :  { %271 = vmatprep.mubr.bf16.mxu0 %v9177_v1  ;;  %371 = vmatprep.mubr.bf16.mxu1 %v9177_v1 }
  0x42   :  { %4376 = vmatmul.mubr.msk.bf16.gmra.mrb[28].mxu0 %vm111_vm0, %v75_v51  ;;  %4386 = vmatmul.mubr.msk.bf16.gmra.mrb[28].mxu1 %vm111_vm0, %v85_v52 }
  0x43   :  { %281 = vmatprep.mubr.bf16.mxu0 %v9177_v1  ;;  %381 = vmatprep.mubr.bf16.mxu1 %v9177_v1 }
  0x4a   :  { %4377 = vmatmul.mubr.msk.bf16.gmra.mrb[32].mxu0 %vm111_vm0, %v76_v57  ;;  %4387 = vmatmul.mubr.msk.bf16.gmra.mrb[32].mxu1 %vm111_vm0, %v86_v58 }
  0x4b   :  { %291 = vmatprep.mubr.bf16.mxu0 %v9177_v1 }
  0x52   :  { %4378 = vmatmul.mubr.msk.bf16.gmra.mrb[36].mxu0 %vm111_vm0, %v77_v61 }
  0xdd   :  { %v5824_v62 = vpop.f32.mrb[0].mxu0  ;;  %v5836_v5 = vpop.f32.mrb[0].mxu1 }
  0xde   :  { %v5826_v63 = vpop.f32.mrb[1].mxu0  ;;  %v546_v0 = vmul.f32 %v5824_v62, %v5824_v62  ;;  %9413 = vst [vmem:[#allocation2_spill] sm:$0xff] %v5836_v5  ;;  %v5842_v8 = vpop.f32.mrb[1].mxu1  ;;  %v586_v9 = vmul.f32 %v5836_v5, %v5836_v5 }
  0xdf   :  { %v5830_v2 = vpop.f32.mrb[2].mxu0  ;;  %v394_v3 = vadd.f32 %v5826_v63, %v5824_v62  ;;  %v547_v4 = vmul.f32 %v5826_v63, %v5826_v63  ;;  %9414 = vst [vmem:[#allocation3_spill] sm:$0xff] %v5842_v8  ;;  %v5850_v13 = vpop.f32.mrb[2].mxu1  ;;  %v5854_v14 = vadd.f32 %v5842_v8, %v5836_v5  ;;  %v587_v16 = vmul.f32 %v5842_v8, %v5842_v8 }
  0xe0   :  { %v5838_v6 = vpop.f32.mrb[3].mxu0  ;;  %v548_v7 = vmul.f32 %v5830_v2, %v5830_v2  ;;  %9415 = vst [vmem:[#allocation4_spill] sm:$0xff] %v5850_v13  ;;  %v5856_v15 = vpop.f32.mrb[3].mxu1  ;;  %v588_v17 = vmul.f32 %v5850_v13, %v5850_v13 }
  0xe1   :  { %395 = vadd.xlane.f32.xlu0 %v394_v3  ;;  %v622_v10 = vadd.f32 %v547_v4, %v546_v0  ;;  %v397_v11 = vadd.f32 %v5838_v6, %v5830_v2  ;;  %v549_v12 = vmul.f32 %v5838_v6, %v5838_v6  ;;  %9416 = vst [vmem:[#allocation5_spill] sm:$0xff] %v5856_v15 }
  0xe2   :  { %v5864_v19 = vadd.f32 %v5856_v15, %v5850_v13  ;;  %v589_v20 = vmul.f32 %v5856_v15, %v5856_v15  ;;  %v5868_v21 = vadd.f32 %v587_v16, %v586_v9 }
  0xe3   :  { %623 = vadd.xlane.f32.xlu1 %v622_v10  ;;  %v625_v18 = vadd.f32 %v549_v12, %v548_v7 }
  0xe4   :  { %v5875_v24 = vadd.f32 %v589_v20, %v588_v17 }
  0xe5   :  { %398 = vadd.xlane.f32.xlu0 %v397_v11  ;;  %v5873_v23 = vpop.f32.mrb[4].mxu0  ;;  %v5890_v31 = vpop.f32.mrb[4].mxu1 }
  0xe6   :  { %v5880_v26 = vpop.f32.mrb[5].mxu0  ;;  %v550_v27 = vmul.f32 %v5873_v23, %v5873_v23  ;;  %9417 = vst [vmem:[#allocation6_spill] sm:$0xff] %v5890_v31  ;;  %v5902_v36 = vpop.f32.mrb[5].mxu1  ;;  %v590_v37 = vmul.f32 %v5890_v31, %v5890_v31 }
  0xe7   :  { %626 = vadd.xlane.f32.xlu1 %v625_v18  ;;  %v5884_v28 = vpop.f32.mrb[6].mxu0  ;;  %v400_v29 = vadd.f32 %v5880_v26, %v5873_v23  ;;  %v551_v30 = vmul.f32 %v5880_v26, %v5880_v26  ;;  %9418 = vst [vmem:[#allocation7_spill] sm:$0xff] %v5902_v36  ;;  %v5910_v41 = vpop.f32.mrb[6].mxu1  ;;  %v5914_v42 = vadd.f32 %v5902_v36, %v5890_v31 }
  0xe8   :  { %v5898_v34 = vpop.f32.mrb[7].mxu0  ;;  %v552_v35 = vmul.f32 %v5884_v28, %v5884_v28  ;;  %9419 = vst [vmem:[#allocation8_spill] sm:$0xff] %v5910_v41  ;;  %v5916_v43 = vpop.f32.mrb[7].mxu1  ;;  %v591_v44 = vmul.f32 %v5902_v36, %v5902_v36  ;;  %v592_v45 = vmul.f32 %v5910_v41, %v5910_v41 }
  0xe9   :  { %401 = vadd.xlane.f32.xlu0 %v400_v29  ;;  %v403_v38 = vadd.f32 %v5898_v34, %v5884_v28  ;;  %v628_v39 = vadd.f32 %v551_v30, %v550_v27  ;;  %v553_v40 = vmul.f32 %v5898_v34, %v5898_v34  ;;  %9420 = vst [vmem:[#allocation9_spill] sm:$0xff] %v5916_v43 }
  0xea   :  { %v5924_v47 = vadd.f32 %v5916_v43, %v5910_v41  ;;  %v593_v48 = vmul.f32 %v5916_v43, %v5916_v43  ;;  %v5934_v51 = vadd.f32 %v591_v44, %v590_v37  ;;  %v4658_v41 = vld [vmem:[%s9170_s4 + $0x70] ss:$8 sps:$4 sm:$0xff]  }
  0xeb   :  { %404 = vadd.xlane.f32.xlu1 %v403_v38  ;;  %v631_v46 = vadd.f32 %v553_v40, %v552_v35 }
  0xec   :  { %v5938_v53 = vadd.f32 %v593_v48, %v592_v45  ;;  %v4646_v48 = vld [vmem:[%s9170_s4 + $0x30] ss:$8 sps:$4 sm:$0xff]  }
  0xed   :  { %629 = vadd.xlane.f32.xlu0 %v628_v39  ;;  %v5936_v52 = vpop.f32.mrb[8].mxu0  ;;  %v5950_v59 = vpop.f32.mrb[8].mxu1  ;;  %v4648_v39 = vld [vmem:[%s9170_s4 + $0x34] ss:$8 sps:$4 sm:$0xff]  }
  0xee   :  { %v5940_v54 = vpop.f32.mrb[9].mxu0  ;;  %v554_v55 = vmul.f32 %v5936_v52, %v5936_v52  ;;  %9421 = vst [vmem:[#allocation10_spill] sm:$0xff] %v5950_v59  ;;  %v5956_v0 = vpop.f32.mrb[9].mxu1  ;;  %v594_v3 = vmul.f32 %v5950_v59, %v5950_v59  ;;  %2058 = vmatprep.subr.bf16.mxu1 %v4648_v39 }
  0xef   :  { %632 = vadd.xlane.f32.xlu1 %v631_v46  ;;  %v5944_v56 = vpop.f32.mrb[10].mxu0  ;;  %v406_v57 = vadd.f32 %v5940_v54, %v5936_v52  ;;  %v555_v58 = vmul.f32 %v5940_v54, %v5940_v54  ;;  %9422 = vst [vmem:[#allocation11_spill] sm:$0xff] %v5956_v0  ;;  %v5964_v10 = vpop.f32.mrb[10].mxu1  ;;  %v5968_v11 = vadd.f32 %v5956_v0, %v5950_v59 }
  0xf0   :  { %v5952_v60 = vpop.f32.mrb[11].mxu0  ;;  %v556_v61 = vmul.f32 %v5944_v56, %v5944_v56  ;;  %9423 = vst [vmem:[#allocation12_spill] sm:$0xff] %v5964_v10  ;;  %v5970_v12 = vpop.f32.mrb[11].mxu1  ;;  %v595_v16 = vmul.f32 %v5956_v0, %v5956_v0  ;;  %v596_v17 = vmul.f32 %v5964_v10, %v5964_v10  ;;  %2059 = vmatpush1.bf16.msra.mxu1 %v4646_v48 }
  0xf1   :  { %407 = vadd.xlane.f32.xlu0 %v406_v57  ;;  %v409_v4 = vadd.f32 %v5952_v60, %v5944_v56  ;;  %v634_v7 = vadd.f32 %v555_v58, %v554_v55  ;;  %v557_v9 = vmul.f32 %v5952_v60, %v5952_v60  ;;  %9424 = vst [vmem:[#allocation13_spill] sm:$0xff] %v5970_v12 }
  0xf2   :  { %v5978_v20 = vadd.f32 %v5970_v12, %v5964_v10  ;;  %v597_v22 = vmul.f32 %v5970_v12, %v5970_v12  ;;  %v5982_v25 = vadd.f32 %v595_v16, %v594_v3 }
  0xf3   :  { %410 = vadd.xlane.f32.xlu1 %v409_v4  ;;  %v637_v18 = vadd.f32 %v557_v9, %v556_v61 }
  0xf4   :  { %v5986_v29 = vadd.f32 %v597_v22, %v596_v17 }
  0xf5   :  { %635 = vadd.xlane.f32.xlu0 %v634_v7  ;;  %v5984_v27 = vpop.f32.mrb[12].mxu0  ;;  %v5998_v38 = vpop.f32.mrb[12].mxu1 }
  0xf6   :  { %v5988_v30 = vpop.f32.mrb[13].mxu0  ;;  %v558_v32 = vmul.f32 %v5984_v27, %v5984_v27  ;;  %9426 = vst [vmem:[#allocation15_spill] sm:$0xff] %v5998_v38  ;;  %v6007_v45 = vpop.f32.mrb[13].mxu1  ;;  %v598_v46 = vmul.f32 %v5998_v38, %v5998_v38 }
  0xf7   :  { %638 = vadd.xlane.f32.xlu1 %v637_v18  ;;  %v5992_v33 = vpop.f32.mrb[14].mxu0  ;;  %v412_v35 = vadd.f32 %v5988_v30, %v5984_v27  ;;  %v559_v37 = vmul.f32 %v5988_v30, %v5988_v30  ;;  %9428 = vst [vmem:[#allocation17_spill] sm:$0xff] %v6007_v45  ;;  %v6018_v57 = vpop.f32.mrb[14].mxu1  ;;  %v6022_v58 = vadd.f32 %v6007_v45, %v5998_v38  ;;  %v4651_v18 = vld [vmem:[%s9170_s4 + $0x44] ss:$8 sps:$4 sm:$0xff]  }
  0xf8   :  { %9425 = vst [vmem:[#allocation14_spill] sm:$0xff] %v5992_v33  ;;  %v6003_v40 = vpop.f32.mrb[15].mxu0  ;;  %v560_v44 = vmul.f32 %v5992_v33, %v5992_v33  ;;  %9429 = vst [vmem:[#allocation18_spill] sm:$0xff] %v6018_v57  ;;  %v6024_v61 = vpop.f32.mrb[15].mxu1  ;;  %v599_v3 = vmul.f32 %v6007_v45, %v6007_v45  ;;  %v600_v4 = vmul.f32 %v6018_v57, %v6018_v57  ;;  %2060 = vmatprep.subr.bf16.mxu1 %v4651_v18 }
  0xf9   :  { %9427 = vst [vmem:[#allocation16_spill] sm:$0xff] %v6003_v40  ;;  %413 = vadd.xlane.f32.xlu0 %v412_v35  ;;  %v415_v49 = vadd.f32 %v6003_v40, %v5992_v33  ;;  %v640_v50 = vadd.f32 %v559_v37, %v558_v32  ;;  %v561_v55 = vmul.f32 %v6003_v40, %v6003_v40  ;;  %9430 = vst [vmem:[#allocation19_spill] sm:$0xff] %v6024_v61  ;;  %v4649_v35 = vld [vmem:[%s9170_s4 + $0x40] ss:$8 sps:$4 sm:$0xff]  }
  0xfa   :  { %v6032_v9 = vadd.f32 %v6024_v61, %v6018_v57  ;;  %v601_v16 = vmul.f32 %v6024_v61, %v6024_v61  ;;  %v6036_v17 = vadd.f32 %v599_v3, %v598_v46  ;;  %2061 = vmatpush1.bf16.msra.mxu1 %v4649_v35  ;;  %v4652_v57 = vld [vmem:[%s9170_s4 + $0x50] ss:$8 sps:$4 sm:$0xff]  }
  0xfb   :  { %416 = vadd.xlane.f32.xlu1 %v415_v49  ;;  %v643_v7 = vadd.f32 %v561_v55, %v560_v44 }
  0xfc   :  { %v6043_v32 = vadd.f32 %v601_v16, %v600_v4 }
  0xfd   :  { %641 = vadd.xlane.f32.xlu0 %v640_v50  ;;  %v6041_v22 = vpop.f32.mrb[16].mxu0  ;;  %v6058_v49 = vpop.f32.mrb[16].mxu1 }
  0xfe   :  { %9431 = vst [vmem:[#allocation20_spill] sm:$0xff] %v6041_v22  ;;  %v6048_v37 = vpop.f32.mrb[17].mxu0  ;;  %v562_v39 = vmul.f32 %v6041_v22, %v6041_v22  ;;  %9434 = vst [vmem:[#allocation23_spill] sm:$0xff] %v6058_v49  ;;  %v6064_v3 = vpop.f32.mrb[17].mxu1  ;;  %v602_v4 = vmul.f32 %v6058_v49, %v6058_v49 }
  0xff   :  { %9432 = vst [vmem:[#allocation21_spill] sm:$0xff] %v6048_v37  ;;  %644 = vadd.xlane.f32.xlu1 %v643_v7  ;;  %v6052_v44 = vpop.f32.mrb[18].mxu0  ;;  %v418_v46 = vadd.f32 %v6048_v37, %v6041_v22  ;;  %v563_v48 = vmul.f32 %v6048_v37, %v6048_v37  ;;  %9436 = vst [vmem:[#allocation25_spill] sm:$0xff] %v6064_v3  ;;  %v4654_v7 = vld [vmem:[%s9170_s4 + $0x54] ss:$8 sps:$4 sm:$0xff]   ;;  %v6075_v1 = vpop.f32.mrb[18].mxu1  ;;  %v6079_v61 = vadd.f32 %v6064_v3, %v6058_v49 }
 0x100   :  { %9433 = vst [vmem:[#allocation22_spill] sm:$0xff] %v6052_v44  ;;  %v6060_v50 = vpop.f32.mrb[19].mxu0  ;;  %v564_v55 = vmul.f32 %v6052_v44, %v6052_v44  ;;  %9437 = vst [vmem:[#allocation26_spill] sm:$0xff] %v6075_v1  ;;  %v6084_v45 = vpop.f32.mrb[19].mxu1  ;;  %2062 = vmatprep.subr.bf16.mxu1 %v4654_v7  ;;  %v4676_v22 = vld [vmem:[%s9170_s4 + $0xd0] ss:$8 sps:$4 sm:$0xff]  }
 0x101   :  { %9435 = vst [vmem:[#allocation24_spill] sm:$0xff] %v6060_v50  ;;  %419 = vadd.xlane.f32.xlu0 %v418_v46  ;;  %v421_v16 = vadd.f32 %v6060_v50, %v6052_v44  ;;  %v646_v18 = vadd.f32 %v563_v48, %v562_v39  ;;  %v565_v35 = vmul.f32 %v6060_v50, %v6060_v50  ;;  %9438 = vst [vmem:[#allocation27_spill] sm:$0xff] %v6084_v45 }
 0x102   :  { %v603_v46 = vmul.f32 %v6064_v3, %v6064_v3  ;;  %v604_v39 = vmul.f32 %v6075_v1, %v6075_v1  ;;  %v6092_v38 = vadd.f32 %v6084_v45, %v6075_v1  ;;  %v605_v49 = vmul.f32 %v6084_v45, %v6084_v45  ;;  %2063 = vmatpush1.bf16.msra.mxu1 %v4652_v57  ;;  %v4657_v3 = vld [vmem:[%s9170_s4 + $0x64] ss:$8 sps:$4 sm:$0xff]  }
 0x103   :  { %422 = vadd.xlane.f32.xlu1 %v421_v16  ;;  %v649_v48 = vadd.f32 %v565_v35, %v564_v55  ;;  %v4655_v55 = vld [vmem:[%s9170_s4 + $0x60] ss:$8 sps:$4 sm:$0xff]   ;;  %2064 = vmatprep.subr.bf16.mxu1 %v4657_v3 }
 0x104   :  { %v6096_v12 = vadd.f32 %v603_v46, %v602_v4  ;;  %v6103_v7 = vadd.f32 %v605_v49, %v604_v39 }
 0x105   :  { %647 = vadd.xlane.f32.xlu0 %v646_v18  ;;  %v6101_v10 = vpop.f32.mrb[20].mxu0  ;;  %v6118_v35 = vpop.f32.mrb[20].mxu1 }
 0x106   :  { %9439 = vst [vmem:[#allocation28_spill] sm:$0xff] %v6101_v10  ;;  %v6108_v16 = vpop.f32.mrb[21].mxu0  ;;  %v566_v57 = vmul.f32 %v6101_v10, %v6101_v10  ;;  %9442 = vst [vmem:[#allocation31_spill] sm:$0xff] %v6118_v35  ;;  %2065 = vmatpush1.bf16.msra.mxu1 %v4655_v55  ;;  %v6124_v45 = vpop.f32.mrb[21].mxu1  ;;  %v606_v3 = vmul.f32 %v6118_v35, %v6118_v35 }
 0x107   :  { %9440 = vst [vmem:[#allocation29_spill] sm:$0xff] %v6108_v16  ;;  %650 = vadd.xlane.f32.xlu1 %v649_v48  ;;  %v6112_v4 = vpop.f32.mrb[22].mxu0  ;;  %v424_v18 = vadd.f32 %v6108_v16, %v6101_v10  ;;  %v567_v49 = vmul.f32 %v6108_v16, %v6108_v16  ;;  %9444 = vst [vmem:[#allocation33_spill] sm:$0xff] %v6124_v45  ;;  %v4660_v48 = vld [vmem:[%s9170_s4 + $0x74] ss:$8 sps:$4 sm:$0xff]   ;;  %v6135_v59 = vpop.f32.mrb[22].mxu1  ;;  %v6139_v43 = vadd.f32 %v6124_v45, %v6118_v35 }
 0x108   :  { %9441 = vst [vmem:[#allocation30_spill] sm:$0xff] %v6112_v4  ;;  %v6120_v46 = vpop.f32.mrb[23].mxu0  ;;  %v568_v39 = vmul.f32 %v6112_v4, %v6112_v4  ;;  %9445 = vst [vmem:[#allocation34_spill] sm:$0xff] %v6135_v59  ;;  %v6144_v36 = vpop.f32.mrb[23].mxu1  ;;  %2066 = vmatprep.subr.bf16.mxu1 %v4660_v48  ;;  %v4670_v10 = vld [vmem:[%s9170_s4 + $0xb0] ss:$8 sps:$4 sm:$0xff]  }
 0x109   :  { %9443 = vst [vmem:[#allocation32_spill] sm:$0xff] %v6120_v46  ;;  %425 = vadd.xlane.f32.xlu0 %v424_v18  ;;  %v427_v1 = vadd.f32 %v6120_v46, %v6112_v4  ;;  %v652_v0 = vadd.f32 %v567_v49, %v566_v57  ;;  %v569_v55 = vmul.f32 %v6120_v46, %v6120_v46  ;;  %9446 = vst [vmem:[#allocation35_spill] sm:$0xff] %v6144_v36 }
 0x10a   :  { %v607_v18 = vmul.f32 %v6124_v45, %v6124_v45  ;;  %v608_v57 = vmul.f32 %v6135_v59, %v6135_v59  ;;  %v6152_v31 = vadd.f32 %v6144_v36, %v6135_v59  ;;  %v609_v35 = vmul.f32 %v6144_v36, %v6144_v36  ;;  %2067 = vmatpush1.bf16.msra.mxu1 %v4658_v41  ;;  %v4663_v45 = vld [vmem:[%s9170_s4 + $0x84] ss:$8 sps:$4 sm:$0xff]  }
 0x10b   :  { %428 = vadd.xlane.f32.xlu1 %v427_v1  ;;  %v655_v49 = vadd.f32 %v569_v55, %v568_v39  ;;  %v4661_v1 = vld [vmem:[%s9170_s4 + $0x80] ss:$8 sps:$4 sm:$0xff]   ;;  %2068 = vmatprep.subr.bf16.mxu1 %v4663_v45 }
 0x10c   :  { %v6156_v15 = vadd.f32 %v607_v18, %v606_v3  ;;  %v6163_v48 = vadd.f32 %v609_v35, %v608_v57 }
 0x10d   :  { %653 = vadd.xlane.f32.xlu0 %v652_v0  ;;  %v6161_v13 = vpop.f32.mrb[24].mxu0  ;;  %v6178_v55 = vpop.f32.mrb[24].mxu1 }
 0x10e   :  { %9447 = vst [vmem:[#allocation36_spill] sm:$0xff] %v6161_v13  ;;  %v6168_v39 = vpop.f32.mrb[25].mxu0  ;;  %v570_v41 = vmul.f32 %v6161_v13, %v6161_v13  ;;  %9450 = vst [vmem:[#allocation39_spill] sm:$0xff] %v6178_v55  ;;  %2069 = vmatpush1.bf16.msra.mxu1 %v4661_v1  ;;  %v6184_v36 = vpop.f32.mrb[25].mxu1  ;;  %v610_v45 = vmul.f32 %v6178_v55, %v6178_v55 }
 0x10f   :  { %9448 = vst [vmem:[#allocation37_spill] sm:$0xff] %v6168_v39  ;;  %656 = vadd.xlane.f32.xlu1 %v655_v49  ;;  %v6172_v3 = vpop.f32.mrb[26].mxu0  ;;  %v430_v0 = vadd.f32 %v6168_v39, %v6161_v13  ;;  %v571_v35 = vmul.f32 %v6168_v39, %v6168_v39  ;;  %9452 = vst [vmem:[#allocation41_spill] sm:$0xff] %v6184_v36  ;;  %v4666_v49 = vld [vmem:[%s9170_s4 + $0x94] ss:$8 sps:$4 sm:$0xff]   ;;  %v6195_v5 = vpop.f32.mrb[26].mxu1  ;;  %v6199_v39 = vadd.f32 %v6184_v36, %v6178_v55 }
 0x110   :  { %9449 = vst [vmem:[#allocation38_spill] sm:$0xff] %v6172_v3  ;;  %v6180_v18 = vpop.f32.mrb[27].mxu0  ;;  %v572_v57 = vmul.f32 %v6172_v3, %v6172_v3  ;;  %9453 = vst [vmem:[#allocation42_spill] sm:$0xff] %v6195_v5  ;;  %v4664_v13 = vld [vmem:[%s9170_s4 + $0x90] ss:$8 sps:$4 sm:$0xff]   ;;  %v6204_v46 = vpop.f32.mrb[27].mxu1  ;;  %2070 = vmatprep.subr.bf16.mxu1 %v4666_v49 }
 0x111   :  { %9451 = vst [vmem:[#allocation40_spill] sm:$0xff] %v6180_v18  ;;  %431 = vadd.xlane.f32.xlu0 %v430_v0  ;;  %v433_v59 = vadd.f32 %v6180_v18, %v6172_v3  ;;  %v658_v8 = vadd.f32 %v571_v35, %v570_v41  ;;  %v573_v1 = vmul.f32 %v6180_v18, %v6180_v18  ;;  %9454 = vst [vmem:[#allocation43_spill] sm:$0xff] %v6204_v46 }
 0x112   :  { %v611_v0 = vmul.f32 %v6184_v36, %v6184_v36  ;;  %v612_v41 = vmul.f32 %v6195_v5, %v6195_v5  ;;  %v6212_v18 = vadd.f32 %v6204_v46, %v6195_v5  ;;  %v613_v55 = vmul.f32 %v6204_v46, %v6204_v46  ;;  %2071 = vmatpush1.bf16.msra.mxu1 %v4664_v13  ;;  %v4669_v36 = vld [vmem:[%s9170_s4 + $0xa4] ss:$8 sps:$4 sm:$0xff]  }
 0x113   :  { %434 = vadd.xlane.f32.xlu1 %v433_v59  ;;  %v661_v35 = vadd.f32 %v573_v1, %v572_v57  ;;  %v4667_v59 = vld [vmem:[%s9170_s4 + $0xa0] ss:$8 sps:$4 sm:$0xff]   ;;  %2072 = vmatprep.subr.bf16.mxu1 %v4669_v36 }
 0x114   :  { %v6216_v3 = vadd.f32 %v611_v0, %v610_v45  ;;  %v6223_v49 = vadd.f32 %v613_v55, %v612_v41 }
 0x115   :  { %659 = vadd.xlane.f32.xlu0 %v658_v8  ;;  %v6221_v4 = vpop.f32.mrb[28].mxu0  ;;  %v6238_v1 = vpop.f32.mrb[28].mxu1 }
 0x116   :  { %9455 = vst [vmem:[#allocation44_spill] sm:$0xff] %v6221_v4  ;;  %v6228_v57 = vpop.f32.mrb[29].mxu0  ;;  %v574_v13 = vmul.f32 %v6221_v4, %v6221_v4  ;;  %9458 = vst [vmem:[#allocation47_spill] sm:$0xff] %v6238_v1  ;;  %2073 = vmatpush1.bf16.msra.mxu1 %v4667_v59  ;;  %v6244_v46 = vpop.f32.mrb[29].mxu1  ;;  %v614_v36 = vmul.f32 %v6238_v1, %v6238_v1 }
 0x117   :  { %9456 = vst [vmem:[#allocation45_spill] sm:$0xff] %v6228_v57  ;;  %662 = vadd.xlane.f32.xlu1 %v661_v35  ;;  %v6232_v45 = vpop.f32.mrb[30].mxu0  ;;  %v436_v8 = vadd.f32 %v6228_v57, %v6221_v4  ;;  %v575_v55 = vmul.f32 %v6228_v57, %v6228_v57  ;;  %9460 = vst [vmem:[#allocation49_spill] sm:$0xff] %v6244_v46  ;;  %v4672_v35 = vld [vmem:[%s9170_s4 + $0xb4] ss:$8 sps:$4 sm:$0xff]   ;;  %v6255_v4 = vpop.f32.mrb[30].mxu1  ;;  %v6259_v16 = vadd.f32 %v6244_v46, %v6238_v1 }
 0x118   :  { %9457 = vst [vmem:[#allocation46_spill] sm:$0xff] %v6232_v45  ;;  %v6240_v0 = vpop.f32.mrb[31].mxu0  ;;  %v576_v41 = vmul.f32 %v6232_v45, %v6232_v45  ;;  %9461 = vst [vmem:[#allocation50_spill] sm:$0xff] %v6255_v4  ;;  %v6264_v50 = vpop.f32.mrb[31].mxu1  ;;  %2074 = vmatprep.subr.bf16.mxu1 %v4672_v35 }
 0x119   :  { %9459 = vst [vmem:[#allocation48_spill] sm:$0xff] %v6240_v0  ;;  %437 = vadd.xlane.f32.xlu0 %v436_v8  ;;  %v439_v5 = vadd.f32 %v6240_v0, %v6232_v45  ;;  %v664_v57 = vadd.f32 %v575_v55, %v574_v13  ;;  %v577_v59 = vmul.f32 %v6240_v0, %v6240_v0  ;;  %9462 = vst [vmem:[#allocation51_spill] sm:$0xff] %v6264_v50 }
 0x11a   :  { %v615_v8 = vmul.f32 %v6244_v46, %v6244_v46  ;;  %v616_v13 = vmul.f32 %v6255_v4, %v6255_v4  ;;  %v6272_v0 = vadd.f32 %v6264_v50, %v6255_v4  ;;  %v617_v1 = vmul.f32 %v6264_v50, %v6264_v50  ;;  %2075 = vmatpush1.bf16.msra.mxu1 %v4670_v10  ;;  %v4675_v46 = vld [vmem:[%s9170_s4 + $0xc4] ss:$8 sps:$4 sm:$0xff]  }
 0x11b   :  { %440 = vadd.xlane.f32.xlu1 %v439_v5  ;;  %v667_v55 = vadd.f32 %v577_v59, %v576_v41  ;;  %v4673_v5 = vld [vmem:[%s9170_s4 + $0xc0] ss:$8 sps:$4 sm:$0xff]   ;;  %2076 = vmatprep.subr.bf16.mxu1 %v4675_v46 }
 0x11c   :  { %v6276_v45 = vadd.f32 %v615_v8, %v614_v36  ;;  %v6283_v35 = vadd.f32 %v617_v1, %v616_v13 }
 0x11d   :  { %665 = vadd.xlane.f32.xlu0 %v664_v57  ;;  %v6281_v44 = vpop.f32.mrb[32].mxu0  ;;  %v6298_v59 = vpop.f32.mrb[32].mxu1 }
 0x11e   :  { %9463 = vst [vmem:[#allocation52_spill] sm:$0xff] %v6281_v44  ;;  %v6288_v41 = vpop.f32.mrb[33].mxu0  ;;  %v578_v10 = vmul.f32 %v6281_v44, %v6281_v44  ;;  %9466 = vst [vmem:[#allocation55_spill] sm:$0xff] %v6298_v59  ;;  %2077 = vmatpush1.bf16.msra.mxu1 %v4673_v5  ;;  %v6304_v50 = vpop.f32.mrb[33].mxu1  ;;  %v618_v46 = vmul.f32 %v6298_v59, %v6298_v59 }
 0x11f   :  { %9464 = vst [vmem:[#allocation53_spill] sm:$0xff] %v6288_v41  ;;  %668 = vadd.xlane.f32.xlu1 %v667_v55  ;;  %v6292_v36 = vpop.f32.mrb[34].mxu0  ;;  %v442_v57 = vadd.f32 %v6288_v41, %v6281_v44  ;;  %v579_v1 = vmul.f32 %v6288_v41, %v6288_v41  ;;  %9468 = vst [vmem:[#allocation57_spill] sm:$0xff] %v6304_v50  ;;  %v4678_v55 = vld [vmem:[%s9170_s4 + $0xd4] ss:$8 sps:$4 sm:$0xff]   ;;  %v6315_v44 = vpop.f32.mrb[34].mxu1  ;;  %v6319_v37 = vadd.f32 %v6304_v50, %v6298_v59 }
 0x120   :  { %9465 = vst [vmem:[#allocation54_spill] sm:$0xff] %v6292_v36  ;;  %v6300_v8 = vpop.f32.mrb[35].mxu0  ;;  %v580_v13 = vmul.f32 %v6292_v36, %v6292_v36  ;;  %9469 = vst [vmem:[#allocation58_spill] sm:$0xff] %v6315_v44  ;;  %v6324_v40 = vpop.f32.mrb[35].mxu1  ;;  %2078 = vmatprep.subr.bf16.mxu1 %v4678_v55 }
 0x121   :  { %9467 = vst [vmem:[#allocation56_spill] sm:$0xff] %v6300_v8  ;;  %443 = vadd.xlane.f32.xlu0 %v442_v57  ;;  %v445_v4 = vadd.f32 %v6300_v8, %v6292_v36  ;;  %v670_v41 = vadd.f32 %v579_v1, %v578_v10  ;;  %v581_v5 = vmul.f32 %v6300_v8, %v6300_v8  ;;  %9470 = vst [vmem:[#allocation59_spill] sm:$0xff] %v6324_v40 }
 0x122   :  { %v619_v57 = vmul.f32 %v6304_v50, %v6304_v50  ;;  %v620_v10 = vmul.f32 %v6315_v44, %v6315_v44  ;;  %v6332_v8 = vadd.f32 %v6324_v40, %v6315_v44  ;;  %v621_v59 = vmul.f32 %v6324_v40, %v6324_v40  ;;  %2079 = vmatpush1.bf16.msra.mxu1 %v4676_v22  ;;  %v4681_v50 = vld [vmem:[%s9170_s4 + $0xe4] ss:$8 sps:$4 sm:$0xff]  }
 0x123   :  { %446 = vadd.xlane.f32.xlu1 %v445_v4  ;;  %v673_v1 = vadd.f32 %v581_v5, %v580_v13  ;;  %v4679_v4 = vld [vmem:[%s9170_s4 + $0xe0] ss:$8 sps:$4 sm:$0xff]   ;;  %2080 = vmatprep.subr.bf16.mxu1 %v4681_v50 }
 0x124   :  { %v6336_v36 = vadd.f32 %v619_v57, %v618_v46  ;;  %v6343_v55 = vadd.f32 %v621_v59, %v620_v10  ;;  %v4684_v10 = vld [vmem:[%s9170_s4 + $0xf4] ss:$8 sps:$4 sm:$0xff]  }
 0x125   :  { %671 = vadd.xlane.f32.xlu0 %v670_v41  ;;  %v6341_v33 = vpop.f32.mrb[36].mxu0 }
 0x126   :  { %9471 = vst [vmem:[#allocation60_spill] sm:$0xff] %v6341_v33  ;;  %v6348_v13 = vpop.f32.mrb[37].mxu0  ;;  %v582_v22 = vmul.f32 %v6341_v33, %v6341_v33  ;;  %2081 = vmatpush1.bf16.msra.mxu1 %v4679_v4  ;;  %v4682_v4 = vld [vmem:[%s9170_s4 + $0xf0] ss:$8 sps:$4 sm:$0xff]  }
 0x127   :  { %674 = vadd.xlane.f32.xlu1 %v673_v1  ;;  %v6352_v46 = vpop.f32.mrb[38].mxu0  ;;  %v448_v41 = vadd.f32 %v6348_v13, %v6341_v33  ;;  %v583_v59 = vmul.f32 %v6348_v13, %v6348_v13  ;;  %2082 = vmatprep.subr.bf16.mxu1 %v4684_v10 }
 0x128   :  { %9472 = vst [vmem:[#allocation61_spill] sm:$0xff] %v6352_v46  ;;  %v6358_v5 = vpop.f32.mrb[39].mxu0  ;;  %v584_v57 = vmul.f32 %v6352_v46, %v6352_v46 }
 0x129   :  { %449 = vadd.xlane.f32.xlu0 %v448_v41  ;;  %v451_v50 = vadd.f32 %v6358_v5, %v6352_v46  ;;  %v676_v1 = vadd.f32 %v583_v59, %v582_v22  ;;  %v585_v40 = vmul.f32 %v6358_v5, %v6358_v5 }
 0x12a   :  { %2083 = vmatpush1.bf16.msra.mxu1 %v4682_v4 }
 0x12b   :  { %452 = vadd.xlane.f32.xlu1 %v451_v50  ;;  %v679_v44 = vadd.f32 %v585_v40, %v584_v57 }
 0x12d   :  { %677 = vadd.xlane.f32.xlu0 %v676_v1 }
 0x12f   :  { %680 = vadd.xlane.f32.xlu1 %v679_v44 }
 0x131   :  { %455 = vadd.xlane.f32.xlu0 %v5854_v14 }
 0x133   :  { %458 = vadd.xlane.f32.xlu1 %v5864_v19 }
 0x135   :  { %683 = vadd.xlane.f32.xlu0 %v5868_v21 }
 0x137   :  { %686 = vadd.xlane.f32.xlu1 %v5875_v24 }
 0x139   :  { %461 = vadd.xlane.f32.xlu0 %v5914_v42 }
 0x13b   :  { %464 = vadd.xlane.f32.xlu1 %v5924_v47 }
 0x13d   :  { %689 = vadd.xlane.f32.xlu0 %v5934_v51  ;;  %v1117_v51 = vlaneseq }
 0x13f   :  { %692 = vadd.xlane.f32.xlu1 %v5938_v53 }
 0x141   :  { %467 = vadd.xlane.f32.xlu0 %v5968_v11 }
 0x143   :  { %470 = vadd.xlane.f32.xlu1 %v5978_v20 }
 0x145   :  { %695 = vadd.xlane.f32.xlu0 %v5982_v25 }
 0x147   :  { %698 = vadd.xlane.f32.xlu1 %v5986_v29 }
 0x149   :  { %473 = vadd.xlane.f32.xlu0 %v6022_v58  ;;  %v1118_v58 = vshrl.u32 %v1117_v51, 7 }
 0x14b   :  { %476 = vadd.xlane.f32.xlu1 %v6032_v9 }
 0x14d   :  { %701 = vadd.xlane.f32.xlu0 %v6036_v17 }
 0x14f   :  { %704 = vadd.xlane.f32.xlu1 %v6043_v32 }
 0x151   :  { %479 = vadd.xlane.f32.xlu0 %v6079_v61 }
 0x153   :  { %482 = vadd.xlane.f32.xlu1 %v6092_v38 }
 0x155   :  { %707 = vadd.xlane.f32.xlu0 %v6096_v12 }
 0x157   :  { %710 = vadd.xlane.f32.xlu1 %v6103_v7 }
 0x159   :  { %485 = vadd.xlane.f32.xlu0 %v6139_v43 }
 0x15b   :  { %488 = vadd.xlane.f32.xlu1 %v6152_v31 }
 0x15d   :  { %713 = vadd.xlane.f32.xlu0 %v6156_v15 }
 0x15f   :  { %716 = vadd.xlane.f32.xlu1 %v6163_v48  ;;  %v6424_v48 = vsub.s32 1, %v1118_v58 }
 0x161   :  { %491 = vadd.xlane.f32.xlu0 %v6199_v39  ;;  %9474 = vst [vmem:[#allocation63_spill] sm:$0xff] %v6424_v48 }
 0x163   :  { %494 = vadd.xlane.f32.xlu1 %v6212_v18 }
 0x165   :  { %719 = vadd.xlane.f32.xlu0 %v6216_v3 }
 0x167   :  { %722 = vadd.xlane.f32.xlu1 %v6223_v49  ;;  %v392_v49 = vld [vmem:[%s9171_s2] sm:$0x3] }
 0x168   :  { %v6440_v41 = vrot.slane %v392_v49, %v6424_v48 }
 0x169   :  { %497 = vadd.xlane.f32.xlu0 %v6259_v16  ;;  %v6422_v16 = vsub.s32 0, %v1118_v58 }
 0x16b   :  { %500 = vadd.xlane.f32.xlu1 %v6272_v0  ;;  %9473 = vst [vmem:[#allocation62_spill] sm:$0xff] %v6422_v16  ;;  %v6437_v22 = vrot.slane %v392_v49, %v6422_v16 }
 0x16d   :  { %725 = vadd.xlane.f32.xlu0 %v6276_v45  ;;  %v393_v45 = vld [vmem:[%s9172_s3] sm:$0x3] }
 0x16e   :  { %v396_v14 = vpop.xlane.xlu0 %395  ;;  %v6443_v59 = vrot.slane %v393_v45, %v6422_v16  ;;  %v6448_v1 = vrot.slane %v393_v45, %v6424_v48 }
 0x16f   :  { %v6403_v19 = vmul.f32 0.00390625, %v396_v14  ;;  %728 = vadd.xlane.f32.xlu1 %v6283_v35 }
 0x170   :  { %v624_v15 = vpop.xlane.xlu1 %623 }
 0x171   :  { %v736_v21 = vmul.f32 0.00390625, %v624_v15  ;;  %v774_v24 = vmul.f32 %v6403_v19, %v6403_v19  ;;  %503 = vadd.xlane.f32.xlu0 %v6319_v37  ;;  %v888_v57 = vsub.f32 %v5824_v62, %v6403_v19  ;;  %v889_v4 = vsub.f32 %v5826_v63, %v6403_v19 }
 0x172   :  { %v399_v31 = vpop.xlane.xlu0 %398 }
 0x173   :  { %v812_v42 = vsub.f32 %v736_v21, %v774_v24  ;;  %v6409_v43 = vmul.f32 0.00390625, %v399_v31  ;;  %506 = vadd.xlane.f32.xlu1 %v6332_v8 }
 0x174   :  { %v627_v47 = vpop.xlane.xlu1 %626 }
 0x175   :  { %v850_v53 = vmax.f32 %v812_v42, 0.0  ;;  %v737_v11 = vmul.f32 0.00390625, %v627_v47  ;;  %731 = vadd.xlane.f32.xlu0 %v6336_v36  ;;  %v775_v12 = vmul.f32 %v6409_v43, %v6409_v43  ;;  %v890_v14 = vsub.f32 %v5830_v2, %v6409_v43 }
 0x176   :  { %v402_v20 = vpop.xlane.xlu0 %401  ;;  %v891_v15 = vsub.f32 %v5838_v6, %v6409_v43 }
 0x177   :  { %v964_v25 = vadd.f32 0.001, %v850_v53  ;;  %v6415_v29 = vmul.f32 0.00390625, %v402_v20  ;;  %734 = vadd.xlane.f32.xlu1 %v6343_v55  ;;  %v813_v38 = vsub.f32 %v737_v11, %v775_v12 }
 0x178   :  { %v405_v40 = vpop.xlane.xlu1 %404 }
 0x179   :  { %4701 = vrsqrt.f32 %v964_v25  ;;  %v6418_v61 = vmul.f32 0.00390625, %v405_v40  ;;  %v851_v9 = vmax.f32 %v813_v38, 0.0  ;;  %v776_v32 = vmul.f32 %v6415_v29, %v6415_v29 }
 0x17a   :  { %v630_v17 = vpop.xlane.xlu0 %629  ;;  %v892_v63 = vsub.f32 %v5873_v23, %v6415_v29  ;;  %v893_v2 = vsub.f32 %v5880_v26, %v6415_v29 }
 0x17b   :  { %v738_v37 = vmul.f32 0.00390625, %v630_v17  ;;  %v965_v44 = vadd.f32 0.001, %v851_v9  ;;  %v777_v3 = vmul.f32 %v6418_v61, %v6418_v61  ;;  %v894_v12 = vsub.f32 %v5884_v28, %v6418_v61 }
 0x17c   :  { %v633_v7 = vpop.xlane.xlu1 %632  ;;  %v895_v20 = vsub.f32 %v5898_v34, %v6418_v61 }
 0x17d   :  { %v814_v39 = vsub.f32 %v738_v37, %v776_v32  ;;  %v739_v18 = vmul.f32 0.00390625, %v633_v7  ;;  %4703 = vrsqrt.f32 %v965_v44 }
 0x17e   :  { %v408_v0 = vpop.xlane.xlu0 %407 }
 0x17f   :  { %v852_v35 = vmax.f32 %v814_v39, 0.0  ;;  %v815_v36 = vsub.f32 %v739_v18, %v777_v3  ;;  %v6434_v8 = vmul.f32 0.00390625, %v408_v0 }
 0x180   :  { %v411_v55 = vpop.xlane.xlu1 %410 }
 0x181   :  { %v966_v10 = vadd.f32 0.001, %v852_v35  ;;  %v853_v50 = vmax.f32 %v815_v36, 0.0  ;;  %v6456_v21 = vmul.f32 0.00390625, %v411_v55  ;;  %v778_v42 = vmul.f32 %v6434_v8, %v6434_v8 }
 0x182   :  { %v636_v24 = vpop.xlane.xlu0 %635  ;;  %v897_v37 = vsub.f32 %v5940_v54, %v6434_v8 }
 0x183   :  { %v4702_v31 = vpop.eup %4701  ;;  %4705 = vrsqrt.f32 %v966_v10  ;;  %v967_v62 = vadd.f32 0.001, %v853_v50  ;;  %v740_v47 = vmul.f32 0.00390625, %v636_v24  ;;  %v779_v6 = vmul.f32 %v6456_v21, %v6456_v21  ;;  %v9484_v24 = vld [vmem:[#allocation32_spill] sm:$0xff] }
 0x184   :  { %v1040_v51 = vmul.f32 %v4702_v31, %v888_v57  ;;  %v639_v19 = vpop.xlane.xlu1 %638  ;;  %v1041_v11 = vmul.f32 %v4702_v31, %v889_v4  ;;  %v899_v34 = vsub.f32 %v5952_v60, %v6456_v21  ;;  %v9476_v31 = vld [vmem:[#allocation16_spill] sm:$0xff] }
 0x185   :  { %4707 = vrsqrt.f32 %v967_v62  ;;  %v816_v43 = vsub.f32 %v740_v47, %v778_v42  ;;  %v741_v53 = vmul.f32 0.00390625, %v639_v19 }
 0x186   :  { %v414_v38 = vpop.xlane.xlu0 %413  ;;  %v1127_v26 = vmul.f32 %v6437_v22, %v1040_v51  ;;  %v1128_v17 = vmul.f32 %v6440_v41, %v1041_v11 }
 0x187   :  { %v854_v40 = vmax.f32 %v816_v43, 0.0  ;;  %v817_v58 = vsub.f32 %v741_v53, %v779_v6  ;;  %v6473_v9 = vmul.f32 0.00390625, %v414_v38  ;;  %v4704_v32 = vpop.eup %4703 }
 0x188   :  { %v417_v7 = vpop.xlane.xlu1 %416  ;;  %v6483_v39 = vadd.f32 %v6443_v59, %v1127_v26  ;;  %v1042_v3 = vmul.f32 %v4704_v32, %v890_v14  ;;  %v1043_v57 = vmul.f32 %v4704_v32, %v891_v15  ;;  %v6494_v4 = vadd.f32 %v6448_v1, %v1128_v17  ;;  %v9475_v14 = vld [vmem:[#allocation14_spill] sm:$0xff] }
 0x189   :  { %v968_v18 = vadd.f32 0.001, %v854_v40  ;;  %v855_v49 = vmax.f32 %v817_v58, 0.0  ;;  %v6489_v35 = vmul.f32 0.00390625, %v417_v7  ;;  %v780_v36 = vmul.f32 %v6473_v9, %v6473_v9 }
 0x18a   :  { %v642_v55 = vpop.xlane.xlu0 %641  ;;  %v1130_v51 = vmul.f32 %v6440_v41, %v1043_v57  ;;  %v4389_v43 = vmul.f32 -1.442695, %v6494_v4  ;;  %v1129_v38 = vmul.f32 %v6437_v22, %v1042_v3  ;;  %v4388_v26 = vmul.f32 -1.442695, %v6483_v39  ;;  %v9477_v3 = vld [vmem:[#allocation20_spill] sm:$0xff] }
 0x18b   :  { %4709 = vrsqrt.f32 %v968_v18  ;;  %v969_v10 = vadd.f32 0.001, %v855_v49  ;;  %v742_v50 = vmul.f32 0.00390625, %v642_v55  ;;  %v781_v42 = vmul.f32 %v6489_v35, %v6489_v35 }
 0x18c   :  { %v645_v47 = vpop.xlane.xlu1 %644  ;;  %v6505_v11 = vadd.f32 %v6448_v1, %v1130_v51 }
 0x18d   :  { %v4706_v6 = vpop.eup %4705  ;;  %4711 = vrsqrt.f32 %v969_v10  ;;  %v818_v15 = vsub.f32 %v742_v50, %v780_v36  ;;  %v743_v19 = vmul.f32 0.00390625, %v645_v47  ;;  %v6513_v36 = vadd.f32 %v6443_v59, %v1129_v38  ;;  %v9479_v38 = vld [vmem:[#allocation22_spill] sm:$0xff] }
 0x18e   :  { %v420_v53 = vpop.xlane.xlu0 %419  ;;  %v1045_v40 = vmul.f32 %v4706_v6, %v893_v2  ;;  %4713 = vpow2.f32 %v4389_v43  ;;  %v4391_v49 = vmul.f32 -1.442695, %v6505_v11  ;;  %v9478_v2 = vld [vmem:[#allocation21_spill] sm:$0xff] }
 0x18f   :  { %v4708_v58 = vpop.eup %4707  ;;  %v856_v17 = vmax.f32 %v818_v15, 0.0  ;;  %v819_v32 = vsub.f32 %v743_v19, %v781_v42  ;;  %v6509_v7 = vmul.f32 0.00390625, %v420_v53  ;;  %4715 = vpow2.f32 %v4388_v26 }
 0x190   :  { %v423_v18 = vpop.xlane.xlu1 %422  ;;  %v1047_v55 = vmul.f32 %v4708_v58, %v895_v20  ;;  %4717 = vpow2.f32 %v4391_v49  ;;  %v4390_v19 = vmul.f32 -1.442695, %v6513_v36  ;;  %v1132_v53 = vmul.f32 %v6440_v41, %v1045_v40 }
 0x191   :  { %v970_v57 = vadd.f32 0.001, %v856_v17  ;;  %v857_v10 = vmax.f32 %v819_v32, 0.0  ;;  %v6519_v42 = vmul.f32 0.00390625, %v423_v18  ;;  %v782_v51 = vmul.f32 %v6509_v7, %v6509_v7  ;;  %v9480_v17 = vld [vmem:[#allocation24_spill] sm:$0xff] }
 0x192   :  { %v648_v15 = vpop.xlane.xlu0 %647  ;;  %v6535_v40 = vadd.f32 %v6448_v1, %v1132_v53  ;;  %v1044_v26 = vmul.f32 %v4706_v6, %v892_v63  ;;  %v1046_v32 = vmul.f32 %v4708_v58, %v894_v12  ;;  %v9482_v53 = vld [vmem:[#allocation29_spill] sm:$0xff] }
 0x193   :  { %4719 = vrsqrt.f32 %v970_v57  ;;  %v971_v43 = vadd.f32 0.001, %v857_v10  ;;  %v744_v20 = vmul.f32 0.00390625, %v648_v15  ;;  %v783_v18 = vmul.f32 %v6519_v42, %v6519_v42 }
 0x194   :  { %v651_v50 = vpop.xlane.xlu1 %650  ;;  %4721 = vpow2.f32 %v4390_v19  ;;  %v1134_v10 = vmul.f32 %v6440_v41, %v1047_v55  ;;  %v4393_v29 = vmul.f32 -1.442695, %v6535_v40  ;;  %v1131_v28 = vmul.f32 %v6437_v22, %v1044_v26 }
 0x195   :  { %v6531_v47 = vpop.eup %4709  ;;  %4723 = vrsqrt.f32 %v971_v43  ;;  %v820_v49 = vsub.f32 %v744_v20, %v782_v51  ;;  %v745_v57 = vmul.f32 0.00390625, %v651_v50  ;;  %v1133_v61 = vmul.f32 %v6437_v22, %v1046_v32 }
 0x196   :  { %v426_v15 = vpop.xlane.xlu0 %425  ;;  %v1049_v51 = vmul.f32 %v6531_v47, %v897_v37  ;;  %v6552_v20 = vadd.f32 %v6448_v1, %v1134_v10  ;;  %4725 = vpow2.f32 %v4393_v29  ;;  %v6579_v58 = vadd.f32 %v6443_v59, %v1131_v28 }
 0x197   :  { %v6547_v50 = vpop.eup %4711  ;;  %v858_v55 = vmax.f32 %v820_v49, 0.0  ;;  %v821_v19 = vsub.f32 %v745_v57, %v783_v18  ;;  %v6549_v43 = vmul.f32 0.00390625, %v426_v15  ;;  %v6582_v18 = vadd.f32 %v6443_v59, %v1133_v61 }
 0x198   :  { %v429_v23 = vpop.xlane.xlu1 %428  ;;  %v1051_v54 = vmul.f32 %v6547_v50, %v899_v34  ;;  %v4714_v63 = vpop.eup %4713 }
 0x199   :  { %v972_v12 = vadd.f32 0.001, %v858_v55  ;;  %v859_v37 = vmax.f32 %v821_v19, 0.0  ;;  %v4716_v49 = vpop.eup %4715  ;;  %v6565_v57 = vmul.f32 0.00390625, %v429_v23  ;;  %v784_v26 = vmul.f32 %v6549_v43, %v6549_v43 }
 0x19a   :  { %v654_v32 = vpop.xlane.xlu0 %653  ;;  %v1519_v10 = vadd.f32 1.0, %v4714_v63  ;;  %v1518_v15 = vadd.f32 1.0, %v4716_v49  ;;  %v4718_v55 = vpop.eup %4717 }
 0x19b   :  { %4727 = vrsqrt.f32 %v972_v12  ;;  %v973_v60 = vadd.f32 0.001, %v859_v37  ;;  %v746_v34 = vmul.f32 0.00390625, %v654_v32  ;;  %v785_v23 = vmul.f32 %v6565_v57, %v6565_v57 }
 0x19c   :  { %v657_v45 = vpop.xlane.xlu1 %656  ;;  %4729 = vrcp.f32 %v1519_v10  ;;  %v1521_v12 = vadd.f32 1.0, %v4718_v55  ;;  %v4395_v32 = vmul.f32 -1.442695, %v6552_v20 }
 0x19d   :  { %v6575_v62 = vpop.eup %4719  ;;  %4731 = vrsqrt.f32 %v973_v60  ;;  %v822_v29 = vsub.f32 %v746_v34, %v784_v26  ;;  %v747_v63 = vmul.f32 0.00390625, %v657_v45  ;;  %v4392_v60 = vmul.f32 -1.442695, %v6579_v58 }
 0x19e   :  { %v4722_v37 = vpop.eup %4721  ;;  %v432_v49 = vpop.xlane.xlu0 %431  ;;  %4733 = vrcp.f32 %v1518_v15  ;;  %v4394_v34 = vmul.f32 -1.442695, %v6582_v18 }
 0x19f   :  { %v6584_v0 = vpop.eup %4723  ;;  %v860_v10 = vmax.f32 %v822_v29, 0.0  ;;  %v823_v44 = vsub.f32 %v747_v63, %v785_v23  ;;  %v6586_v25 = vmul.f32 0.00390625, %v432_v49  ;;  %4735 = vrcp.f32 %v1521_v12 }
 0x1a0   :  { %v435_v45 = vpop.xlane.xlu1 %434  ;;  %v1520_v26 = vadd.f32 1.0, %v4722_v37  ;;  %4737 = vpow2.f32 %v4395_v32  ;;  %v1136_v12 = vmul.f32 %v6440_v41, %v1049_v51  ;;  %v4726_v32 = vpop.eup %4725 }
 0x1a1   :  { %9485 = vst [vmem:[#allocation14_spill] sm:$0xff] %v6586_v25  ;;  %v974_v15 = vadd.f32 0.001, %v860_v10  ;;  %v861_v28 = vmax.f32 %v823_v44, 0.0  ;;  %v6594_v29 = vmul.f32 0.00390625, %v435_v45  ;;  %v786_v23 = vmul.f32 %v6586_v25, %v6586_v25 }
 0x1a2   :  { %v660_v63 = vpop.xlane.xlu0 %659  ;;  %4739 = vrcp.f32 %v1520_v26  ;;  %v1138_v44 = vmul.f32 %v6440_v41, %v1051_v54  ;;  %v6609_v48 = vadd.f32 %v6448_v1, %v1136_v12  ;;  %v9491_v45 = vsub.f32 %v5936_v52, %v6434_v8 }
 0x1a3   :  { %9488 = vst [vmem:[#allocation16_spill] sm:$0xff] %v6594_v29  ;;  %4741 = vrsqrt.f32 %v974_v15  ;;  %v975_v37 = vadd.f32 0.001, %v861_v28  ;;  %v748_v49 = vmul.f32 0.00390625, %v660_v63  ;;  %v787_v55 = vmul.f32 %v6594_v29, %v6594_v29 }
 0x1a4   :  { %v663_v25 = vpop.xlane.xlu1 %662  ;;  %4743 = vpow2.f32 %v4392_v60  ;;  %v1523_v28 = vadd.f32 1.0, %v4726_v32  ;;  %v6612_v61 = vadd.f32 %v6448_v1, %v1138_v44  ;;  %v1048_v60 = vmul.f32 %v6531_v47, %v9491_v45 }
 0x1a5   :  { %v6606_v26 = vpop.eup %4727  ;;  %4745 = vrsqrt.f32 %v975_v37  ;;  %v824_v51 = vsub.f32 %v748_v49, %v786_v23  ;;  %v749_v15 = vmul.f32 0.00390625, %v663_v25  ;;  %v4397_v12 = vmul.f32 -1.442695, %v6609_v48 }
 0x1a6   :  { %v4730_v63 = vpop.eup %4729  ;;  %v438_v54 = vpop.xlane.xlu0 %437  ;;  %4747 = vpow2.f32 %v4394_v34  ;;  %v6625_v44 = vmul.f32 -1.442695, %v6612_v61  ;;  %v9493_v52 = vsub.f32 %v5944_v56, %v6456_v21 }
 0x1a7   :  { %v6618_v10 = vpop.eup %4731  ;;  %v862_v37 = vmax.f32 %v824_v51, 0.0  ;;  %v825_v23 = vsub.f32 %v749_v15, %v787_v55  ;;  %v6620_v25 = vmul.f32 0.00390625, %v438_v54  ;;  %v1747_v49 = vmul.f32 %v4730_v63, %v6494_v4  ;;  %v9496_v15 = vld [vmem:[#allocation46_spill] sm:$0xff]  ;;  %v9497_v63 = vld [vmem:[#allocation48_spill] sm:$0xff] }
 0x1a8   :  { %v4734_v34 = vpop.eup %4733  ;;  %v441_v32 = vpop.xlane.xlu1 %440  ;;  %4749 = vrcp.f32 %v1523_v28  ;;  %v1050_v8 = vmul.f32 %v6547_v50, %v9493_v52 }
 0x1a9   :  { %9492 = vst [vmem:[#allocation20_spill] sm:$0xff] %v6620_v25  ;;  %v4736_v47 = vpop.eup %4735  ;;  %v976_v45 = vadd.f32 0.001, %v862_v37  ;;  %v863_v55 = vmax.f32 %v825_v23, 0.0  ;;  %v6635_v54 = vmul.f32 0.00390625, %v441_v32  ;;  %v788_v29 = vmul.f32 %v6620_v25, %v6620_v25 }
 0x1aa   :  { %v4738_v28 = vpop.eup %4737  ;;  %v666_v16 = vpop.xlane.xlu0 %665  ;;  %v1749_v56 = vmul.f32 %v4736_v47, %v6505_v11  ;;  %v1746_v21 = vmul.f32 %v4734_v34, %v6483_v39 }
 0x1ab   :  { %4751 = vrsqrt.f32 %v976_v45  ;;  %v977_v50 = vadd.f32 0.001, %v863_v55  ;;  %v750_v37 = vmul.f32 0.00390625, %v666_v16  ;;  %v1525_v23 = vadd.f32 1.0, %v4738_v28 }
 0x1ac   :  { %v4740_v52 = vpop.eup %4739  ;;  %v1823_v4 = vpack.c.bf16 %v1749_v56, %v1747_v49  ;;  %v789_v25 = vmul.f32 %v6635_v54, %v6635_v54  ;;  %v669_v19 = vpop.xlane.xlu1 %668  ;;  %v1135_v45 = vmul.f32 %v6437_v22, %v1048_v60  ;;  %v1137_v55 = vmul.f32 %v6437_v22, %v1050_v8 }
 0x1ad   :  { %v6647_v6 = vpop.eup %4741  ;;  %4753 = vrsqrt.f32 %v977_v50  ;;  %v826_v39 = vsub.f32 %v750_v37, %v788_v29  ;;  %v751_v11 = vmul.f32 0.00390625, %v669_v19  ;;  %v1748_v16 = vmul.f32 %v4740_v52, %v6513_v36 }
 0x1ae   :  { %v4744_v34 = vpop.eup %4743  ;;  %2084 = vmatprep.mubr.bf16.mxu1 %v1823_v4  ;;  %v444_v47 = vpop.xlane.xlu0 %443  ;;  %4755 = vrcp.f32 %v1525_v23  ;;  %v9498_v49 = vsub.f32 %v5988_v30, %v6473_v9  ;;  %v6661_v60 = vadd.f32 %v6443_v59, %v1135_v45  ;;  %v6664_v8 = vadd.f32 %v6443_v59, %v1137_v55 }
 0x1af   :  { %v6656_v56 = vpop.eup %4745  ;;  %v864_v50 = vmax.f32 %v826_v39, 0.0  ;;  %v827_v29 = vsub.f32 %v751_v11, %v789_v25  ;;  %v1822_v19 = vpack.c.bf16 %v1748_v16, %v1746_v21  ;;  %v6658_v37 = vmul.f32 0.00390625, %v444_v47  ;;  %v9500_v25 = vld [vmem:[#allocation53_spill] sm:$0xff]  ;;  %v9502_v39 = vld [vmem:[#allocation56_spill] sm:$0xff] }
 0x1b0   :  { %v1053_v28 = vmul.f32 %v6575_v62, %v9498_v49  ;;  %v4748_v36 = vpop.eup %4747  ;;  %v447_v4 = vpop.xlane.xlu1 %446  ;;  %v1522_v52 = vadd.f32 1.0, %v4744_v34  ;;  %4757 = vpow2.f32 %v4397_v12  ;;  %v9499_v49 = vld [vmem:[#allocation52_spill] sm:$0xff] }
 0x1b1   :  { %v978_v30 = vadd.f32 0.001, %v864_v50  ;;  %v865_v23 = vmax.f32 %v827_v29, 0.0  ;;  %2085 = vmatmul.mubr.bf16.vlgmr.msra.gmra.mrb[36].mxu1 %v1822_v19  ;;  %v6670_v16 = vmul.f32 0.00390625, %v447_v4  ;;  %v790_v12 = vmul.f32 %v6658_v37, %v6658_v37 }
 0x1b2   :  { %v4750_v11 = vpop.eup %4749  ;;  %v672_v34 = vpop.xlane.xlu0 %671  ;;  %v1524_v47 = vadd.f32 1.0, %v4748_v36  ;;  %4759 = vrcp.f32 %v1522_v52  ;;  %v1140_v19 = vmul.f32 %v6440_v41, %v1053_v28 }
 0x1b3   :  { %4761 = vrsqrt.f32 %v978_v30  ;;  %v979_v45 = vadd.f32 0.001, %v865_v23  ;;  %v752_v55 = vmul.f32 0.00390625, %v672_v34  ;;  %v1751_v50 = vmul.f32 %v4750_v11, %v6535_v40 }
 0x1b4   :  { %v791_v4 = vmul.f32 %v6670_v16, %v6670_v16  ;;  %v675_v51 = vpop.xlane.xlu1 %674  ;;  %4763 = vrcp.f32 %v1524_v47  ;;  %v4396_v30 = vmul.f32 -1.442695, %v6661_v60  ;;  %v4398_v40 = vmul.f32 -1.442695, %v6664_v8 }
 0x1b5   :  { %v6681_v32 = vpop.eup %4751  ;;  %4765 = vrsqrt.f32 %v979_v45  ;;  %v828_v36 = vsub.f32 %v752_v55, %v790_v12  ;;  %v753_v52 = vmul.f32 0.00390625, %v675_v51  ;;  %v9503_v11 = vsub.f32 %v9476_v31, %v6489_v35 }
 0x1b6   :  { %v450_v23 = vpop.xlane.xlu0 %449  ;;  %4767 = vpow2.f32 %v6625_v44  ;;  %v6697_v29 = vadd.f32 %v6448_v1, %v1140_v19  ;;  %v9504_v31 = vsub.f32 %v5984_v27, %v6473_v9 }
 0x1b7   :  { %v1055_v34 = vmul.f32 %v6584_v0, %v9503_v11  ;;  %v6691_v47 = vpop.eup %4753  ;;  %v866_v21 = vmax.f32 %v828_v36, 0.0  ;;  %v829_v45 = vsub.f32 %v753_v52, %v791_v4  ;;  %v6693_v12 = vmul.f32 0.00390625, %v450_v23 }
 0x1b8   :  { %4769 = vpow2.f32 %v4396_v30  ;;  %v4756_v51 = vpop.eup %4755  ;;  %v453_v55 = vpop.xlane.xlu1 %452  ;;  %v1052_v28 = vmul.f32 %v6575_v62, %v9504_v31 }
 0x1b9   :  { %4771 = vpow2.f32 %v4398_v40  ;;  %v1142_v44 = vmul.f32 %v6440_v41, %v1055_v34  ;;  %v980_v11 = vadd.f32 0.001, %v866_v21  ;;  %v1753_v36 = vmul.f32 %v4756_v51, %v6552_v20 }
 0x1ba   :  { %v867_v4 = vmax.f32 %v829_v45, 0.0  ;;  %v4758_v30 = vpop.eup %4757  ;;  %v6708_v40 = vmul.f32 0.00390625, %v453_v55  ;;  %v792_v19 = vmul.f32 %v6693_v12, %v6693_v12  ;;  %v678_v34 = vpop.xlane.xlu0 %677 }
 0x1bb   :  { %v6713_v27 = vadd.f32 %v6448_v1, %v1142_v44  ;;  %4773 = vrsqrt.f32 %v980_v11  ;;  %v1825_v9 = vpack.c.bf16 %v1753_v36, %v1751_v50  ;;  %v754_v20 = vmul.f32 0.00390625, %v678_v34 }
 0x1bc   :  { %9505 = vst [vmem:[#allocation21_spill] sm:$0xff] %v6708_v40  ;;  %v981_v62 = vadd.f32 0.001, %v867_v4  ;;  %v4760_v21 = vpop.eup %4759  ;;  %v1527_v55 = vadd.f32 1.0, %v4758_v30  ;;  %v793_v31 = vmul.f32 %v6708_v40, %v6708_v40  ;;  %v681_v52 = vpop.xlane.xlu1 %680  ;;  %v4401_v34 = vmul.f32 -1.442695, %v6697_v29 }
 0x1bd   :  { %v6721_v23 = vpop.eup %4761  ;;  %2094 = vmatprep.mubr.bf16.mxu1 %v1825_v9  ;;  %v1750_v50 = vmul.f32 %v4760_v21, %v6579_v58  ;;  %v830_v44 = vsub.f32 %v754_v20, %v792_v19  ;;  %v755_v11 = vmul.f32 0.00390625, %v681_v52  ;;  %v4403_v45 = vmul.f32 -1.442695, %v6713_v27 }
 0x1be   :  { %4775 = vrsqrt.f32 %v981_v62  ;;  %v4764_v36 = vpop.eup %4763  ;;  %v456_v4 = vpop.xlane.xlu0 %455  ;;  %v9506_v30 = vsub.f32 %v9475_v14, %v6489_v35  ;;  %v1139_v21 = vmul.f32 %v6437_v22, %v1052_v28  ;;  %v9508_v35 = vsub.f32 %v9478_v2, %v6509_v7 }
 0x1bf   :  { %4777 = vrcp.f32 %v1527_v55  ;;  %v6730_v46 = vpop.eup %4765  ;;  %v1752_v9 = vmul.f32 %v4764_v36, %v6582_v18  ;;  %v868_v62 = vmax.f32 %v830_v44, 0.0  ;;  %v831_v58 = vsub.f32 %v755_v11, %v793_v31 }
 0x1c0   :  { %v1054_v51 = vmul.f32 %v6584_v0, %v9506_v30  ;;  %v6733_v19 = vmul.f32 0.00390625, %v456_v4  ;;  %v4768_v52 = vpop.eup %4767  ;;  %v459_v20 = vpop.xlane.xlu1 %458  ;;  %4779 = vpow2.f32 %v4401_v34  ;;  %v1057_v0 = vmul.f32 %v6606_v26, %v9508_v35  ;;  %v9510_v34 = vld [vmem:[#allocation3_spill] sm:$0xff] }
 0x1c1   :  { %v1824_v30 = vpack.c.bf16 %v1752_v9, %v1750_v50  ;;  %v982_v33 = vadd.f32 0.001, %v868_v62  ;;  %v1529_v18 = vadd.f32 1.0, %v4768_v52  ;;  %v869_v44 = vmax.f32 %v831_v58, 0.0 }
 0x1c2   :  { %9507 = vst [vmem:[#allocation22_spill] sm:$0xff] %v6733_v19  ;;  %v1141_v55 = vmul.f32 %v6437_v22, %v1054_v51  ;;  %v4770_v14 = vpop.eup %4769  ;;  %v6745_v40 = vmul.f32 0.00390625, %v459_v20  ;;  %v684_v51 = vpop.xlane.xlu0 %683  ;;  %v794_v50 = vmul.f32 %v6733_v19, %v6733_v19 }
 0x1c3   :  { %v4772_v31 = vpop.eup %4771  ;;  %v1526_v11 = vadd.f32 1.0, %v4770_v14  ;;  %2095 = vmatmul.mubr.bf16.gmra.mrb[40].mxu1 %v1824_v30  ;;  %4781 = vrsqrt.f32 %v982_v33  ;;  %v983_v2 = vadd.f32 0.001, %v869_v44  ;;  %v756_v14 = vmul.f32 0.00390625, %v684_v51 }
 0x1c4   :  { %9511 = vst [vmem:[#allocation24_spill] sm:$0xff] %v6745_v40  ;;  %v1528_v35 = vadd.f32 1.0, %v4772_v31  ;;  %4783 = vrcp.f32 %v1529_v18  ;;  %v687_v4 = vpop.xlane.xlu1 %686  ;;  %v795_v33 = vmul.f32 %v6745_v40, %v6745_v40  ;;  %v6758_v30 = vadd.f32 %v6443_v59, %v1139_v21 }
 0x1c5   :  { %v6753_v28 = vpop.eup %4773  ;;  %4785 = vrsqrt.f32 %v983_v2  ;;  %v757_v20 = vmul.f32 0.00390625, %v687_v4  ;;  %v832_v18 = vsub.f32 %v756_v14, %v794_v50  ;;  %v6761_v44 = vadd.f32 %v6443_v59, %v1141_v55 }
 0x1c6   :  { %4787 = vrcp.f32 %v1526_v11  ;;  %v462_v31 = vpop.xlane.xlu0 %461  ;;  %v9514_v51 = vsub.f32 %v9480_v17, %v6519_v42  ;;  %v4400_v4 = vmul.f32 -1.442695, %v6758_v30  ;;  %v1144_v14 = vmul.f32 %v6440_v41, %v1057_v0 }
 0x1c7   :  { %4789 = vrcp.f32 %v1528_v35  ;;  %v833_v2 = vsub.f32 %v757_v20, %v795_v33  ;;  %v6770_v9 = vmul.f32 0.00390625, %v462_v31  ;;  %v870_v11 = vmax.f32 %v832_v18, 0.0  ;;  %v9516_v31 = vld [vmem:[#allocation7_spill] sm:$0xff] }
 0x1c8   :  { %v1059_v62 = vmul.f32 %v6618_v10, %v9514_v51  ;;  %v6767_v52 = vpop.eup %4775  ;;  %4791 = vpow2.f32 %v4403_v45  ;;  %v4402_v55 = vmul.f32 -1.442695, %v6761_v44  ;;  %v465_v50 = vpop.xlane.xlu1 %464 }
 0x1c9   :  { %v4778_v21 = vpop.eup %4777  ;;  %v871_v36 = vmax.f32 %v833_v2, 0.0  ;;  %4793 = vpow2.f32 %v4400_v4  ;;  %v984_v20 = vadd.f32 0.001, %v870_v11  ;;  %v6779_v18 = vmul.f32 0.00390625, %v465_v50 }
 0x1ca   :  { %v1755_v17 = vmul.f32 %v4778_v21, %v6609_v48  ;;  %v4780_v33 = vpop.eup %4779  ;;  %4795 = vpow2.f32 %v4402_v55  ;;  %v690_v45 = vpop.xlane.xlu0 %689  ;;  %v796_v0 = vmul.f32 %v6770_v9, %v6770_v9  ;;  %v1146_v55 = vmul.f32 %v6440_v41, %v1059_v62 }
 0x1cb   :  { %9517 = vst [vmem:[#allocation29_spill] sm:$0xff] %v6779_v18  ;;  %v1531_v58 = vadd.f32 1.0, %v4780_v33  ;;  %v985_v19 = vadd.f32 0.001, %v871_v36  ;;  %v758_v48 = vmul.f32 0.00390625, %v690_v45  ;;  %4797 = vrsqrt.f32 %v984_v20 }
 0x1cc   :  { %v693_v35 = vpop.xlane.xlu1 %692  ;;  %v6791_v36 = vadd.f32 %v6448_v1, %v1144_v14  ;;  %v797_v33 = vmul.f32 %v6779_v18, %v6779_v18  ;;  %v6796_v45 = vadd.f32 %v6448_v1, %v1146_v55  ;;  %v9520_v62 = vsub.f32 %v9477_v3, %v6509_v7 }
 0x1cd   :  { %v6788_v40 = vpop.eup %4781  ;;  %4799 = vrcp.f32 %v1531_v58  ;;  %v834_v50 = vsub.f32 %v758_v48, %v796_v0  ;;  %v759_v4 = vmul.f32 0.00390625, %v693_v35 }
 0x1ce   :  { %v4784_v20 = vpop.eup %4783  ;;  %4801 = vrsqrt.f32 %v985_v19  ;;  %v1056_v11 = vmul.f32 %v6606_v26, %v9520_v62  ;;  %v468_v2 = vpop.xlane.xlu0 %467  ;;  %v4405_v48 = vmul.f32 -1.442695, %v6791_v36  ;;  %v9521_v19 = vsub.f32 %v9479_v38, %v6519_v42 }
 0x1cf   :  { %v6802_v58 = vpop.eup %4785  ;;  %v1757_v14 = vmul.f32 %v4784_v20, %v6612_v61  ;;  %v872_v0 = vmax.f32 %v834_v50, 0.0  ;;  %v4407_v35 = vmul.f32 -1.442695, %v6796_v45  ;;  %v835_v18 = vsub.f32 %v759_v4, %v797_v33 }
 0x1d0   :  { %v1058_v55 = vmul.f32 %v6618_v10, %v9521_v19  ;;  %v4788_v51 = vpop.eup %4787  ;;  %v1143_v7 = vmul.f32 %v6437_v22, %v1056_v11  ;;  %v6812_v3 = vmul.f32 0.00390625, %v468_v2  ;;  %v471_v26 = vpop.xlane.xlu1 %470  ;;  %4803 = vpow2.f32 %v4405_v48  ;;  %v9544_v48 = vld [vmem:[#allocation16_spill] sm:$0xff] }
 0x1d1   :  { %v4790_v62 = vpop.eup %4789  ;;  %v1827_v21 = vpack.c.bf16 %v1757_v14, %v1755_v17  ;;  %v1754_v61 = vmul.f32 %v4788_v51, %v6661_v60  ;;  %v986_v50 = vadd.f32 0.001, %v872_v0  ;;  %4805 = vpow2.f32 %v4407_v35 }
 0x1d2   :  { %9522 = vst [vmem:[#allocation32_spill] sm:$0xff] %v6812_v3  ;;  %v4792_v20 = vpop.eup %4791  ;;  %v1756_v42 = vmul.f32 %v4790_v62, %v6664_v8  ;;  %v873_v38 = vmax.f32 %v835_v18, 0.0  ;;  %v1145_v10 = vmul.f32 %v6437_v22, %v1058_v55  ;;  %v6818_v2 = vadd.f32 %v6443_v59, %v1143_v7  ;;  %v696_v60 = vpop.xlane.xlu0 %695 }
 0x1d3   :  { %v4794_v19 = vpop.eup %4793  ;;  %2104 = vmatprep.mubr.bf16.mxu1 %v1827_v21  ;;  %v1533_v4 = vadd.f32 1.0, %v4792_v20  ;;  %4807 = vrsqrt.f32 %v986_v50  ;;  %v798_v50 = vmul.f32 %v6812_v3, %v6812_v3 }
 0x1d4   :  { %v4796_v51 = vpop.eup %4795  ;;  %v1826_v33 = vpack.c.bf16 %v1756_v42, %v1754_v61  ;;  %v1530_v14 = vadd.f32 1.0, %v4794_v19  ;;  %v987_v0 = vadd.f32 0.001, %v873_v38  ;;  %v6823_v8 = vadd.f32 %v6443_v59, %v1145_v10  ;;  %v699_v35 = vpop.xlane.xlu1 %698 }
 0x1d5   :  { %4809 = vrcp.f32 %v1533_v4  ;;  %v1532_v18 = vadd.f32 1.0, %v4796_v51  ;;  %v4404_v21 = vmul.f32 -1.442695, %v6818_v2  ;;  %v6828_v7 = vpop.eup %4797  ;;  %v6831_v61 = vmul.f32 0.00390625, %v471_v26 }
 0x1d6   :  { %2105 = vmatmul.mubr.bf16.gmra.mrb[44].mxu1 %v1826_v33  ;;  %4811 = vrcp.f32 %v1530_v14  ;;  %v4406_v62 = vmul.f32 -1.442695, %v6823_v8  ;;  %v760_v42 = vmul.f32 0.00390625, %v696_v60  ;;  %v9526_v38 = vsub.f32 %v9482_v53, %v6549_v43 }
 0x1d7   :  { %9525 = vst [vmem:[#allocation46_spill] sm:$0xff] %v6831_v61  ;;  %v4800_v20 = vpop.eup %4799  ;;  %4813 = vrcp.f32 %v1532_v18  ;;  %v9527_v19 = vsub.f32 %v9484_v24, %v6565_v57  ;;  %v474_v24 = vpop.xlane.xlu0 %473  ;;  %v761_v55 = vmul.f32 0.00390625, %v699_v35 }
 0x1d8   :  { %v1061_v10 = vmul.f32 %v6647_v6, %v9526_v38  ;;  %v6843_v51 = vpop.eup %4801  ;;  %v1759_v26 = vmul.f32 %v4800_v20, %v6697_v29  ;;  %4815 = vrsqrt.f32 %v987_v0  ;;  %v836_v53 = vsub.f32 %v760_v42, %v798_v50  ;;  %v9530_v29 = vld [vmem:[#allocation28_spill] sm:$0xff]  ;;  %v9532_v42 = vld [vmem:[#allocation30_spill] sm:$0xff] }
 0x1d9   :  { %v1063_v4 = vmul.f32 %v6656_v56, %v9527_v19  ;;  %4817 = vpow2.f32 %v4404_v21  ;;  %v799_v19 = vmul.f32 %v6831_v61, %v6831_v61  ;;  %v9531_v0 = vsub.f32 %v9530_v29, %v6549_v43 }
 0x1da   :  { %v1148_v38 = vmul.f32 %v6440_v41, %v1061_v10  ;;  %4819 = vpow2.f32 %v4406_v62  ;;  %v4804_v14 = vpop.eup %4803  ;;  %v874_v33 = vmax.f32 %v836_v53, 0.0  ;;  %v9533_v62 = vsub.f32 %v9532_v42, %v6565_v57 }
 0x1db   :  { %v1150_v11 = vmul.f32 %v6440_v41, %v1063_v4  ;;  %v1060_v20 = vmul.f32 %v6647_v6, %v9531_v0  ;;  %v477_v4 = vpop.xlane.xlu1 %476  ;;  %v4806_v35 = vpop.eup %4805  ;;  %v1535_v18 = vadd.f32 1.0, %v4804_v14  ;;  %v837_v17 = vsub.f32 %v761_v55, %v799_v19 }
 0x1dc   :  { %v6859_v21 = vadd.f32 %v6448_v1, %v1148_v38  ;;  %v1062_v10 = vmul.f32 %v6656_v56, %v9533_v62  ;;  %v6869_v6 = vmul.f32 0.00390625, %v474_v24  ;;  %v1537_v38 = vadd.f32 1.0, %v4806_v35  ;;  %v702_v62 = vpop.xlane.xlu0 %701 }
 0x1dd   :  { %v6862_v50 = vadd.f32 %v6448_v1, %v1150_v11  ;;  %v1147_v43 = vmul.f32 %v6437_v22, %v1060_v20  ;;  %v6871_v53 = vpop.eup %4807  ;;  %v988_v29 = vadd.f32 0.001, %v874_v33  ;;  %4821 = vrcp.f32 %v1535_v18 }
 0x1de   :  { %9534 = vst [vmem:[#allocation48_spill] sm:$0xff] %v6869_v6  ;;  %v4409_v11 = vmul.f32 -1.442695, %v6859_v21  ;;  %v1149_v0 = vmul.f32 %v6437_v22, %v1062_v10  ;;  %v875_v56 = vmax.f32 %v837_v17, 0.0  ;;  %4823 = vrcp.f32 %v1537_v38 }
 0x1df   :  { %v4411_v57 = vmul.f32 -1.442695, %v6862_v50  ;;  %v6877_v42 = vadd.f32 %v6443_v59, %v1147_v43  ;;  %v4810_v55 = vpop.eup %4809  ;;  %4825 = vrsqrt.f32 %v988_v29  ;;  %v6890_v61 = vmul.f32 0.00390625, %v477_v4  ;;  %v705_v19 = vpop.xlane.xlu1 %704 }
 0x1e0   :  { %v6880_v14 = vadd.f32 %v6443_v59, %v1149_v0  ;;  %v4812_v10 = vpop.eup %4811  ;;  %v1761_v18 = vmul.f32 %v4810_v55, %v6713_v27  ;;  %v989_v17 = vadd.f32 0.001, %v875_v56  ;;  %4827 = vpow2.f32 %v4409_v11  ;;  %v9539_v11 = vld [vmem:[#allocation19_spill] sm:$0xff]  ;;  %v480_v55 = vpop.xlane.xlu0 %479 }
 0x1e1   :  { %v4408_v35 = vmul.f32 -1.442695, %v6877_v42  ;;  %v4814_v43 = vpop.eup %4813  ;;  %v1758_v38 = vmul.f32 %v4812_v10, %v6758_v30  ;;  %9537 = vst [vmem:[#allocation52_spill] sm:$0xff] %v6890_v61  ;;  %4829 = vpow2.f32 %v4411_v57  ;;  %v800_v27 = vmul.f32 %v6869_v6, %v6869_v6  ;;  %v9543_v6 = vld [vmem:[#allocation40_spill] sm:$0xff] }
 0x1e2   :  { %v4410_v0 = vmul.f32 -1.442695, %v6880_v14  ;;  %v6892_v24 = vpop.eup %4815  ;;  %v1829_v20 = vpack.c.bf16 %v1761_v18, %v1759_v26  ;;  %v1760_v33 = vmul.f32 %v4814_v43, %v6761_v44  ;;  %4831 = vrsqrt.f32 %v989_v17  ;;  %v9540_v26 = vld [vmem:[#allocation37_spill] sm:$0xff]  ;;  %v9541_v44 = vld [vmem:[#allocation14_spill] sm:$0xff] }
 0x1e3   :  { %v4818_v29 = vpop.eup %4817  ;;  %v762_v4 = vmul.f32 0.00390625, %v702_v62  ;;  %4833 = vpow2.f32 %v4408_v35  ;;  %v9542_v57 = vsub.f32 %v9540_v26, %v9541_v44  ;;  %v9545_v30 = vsub.f32 %v9543_v6, %v9544_v48 }
 0x1e4   :  { %v4820_v10 = vpop.eup %4819  ;;  %2114 = vmatprep.mubr.bf16.mxu1 %v1829_v20  ;;  %v1828_v60 = vpack.c.bf16 %v1760_v33, %v1758_v38  ;;  %v1534_v3 = vadd.f32 1.0, %v4818_v29  ;;  %4835 = vpow2.f32 %v4410_v0  ;;  %v801_v20 = vmul.f32 %v6890_v61, %v6890_v61  ;;  %v9546_v0 = vld [vmem:[#allocation36_spill] sm:$0xff]  ;;  %v483_v29 = vpop.xlane.xlu1 %482 }
 0x1e5   :  { %v1065_v18 = vmul.f32 %v6681_v32, %v9542_v57  ;;  %v1536_v43 = vadd.f32 1.0, %v4820_v10  ;;  %v838_v17 = vsub.f32 %v762_v4, %v800_v27  ;;  %v1067_v56 = vmul.f32 %v6691_v47, %v9545_v30  ;;  %v9548_v4 = vld [vmem:[#allocation38_spill] sm:$0xff] }
 0x1e6   :  { %2115 = vmatmul.mubr.bf16.gmra.mrb[48].mxu1 %v1828_v60  ;;  %4837 = vrcp.f32 %v1534_v3  ;;  %v763_v62 = vmul.f32 0.00390625, %v705_v19  ;;  %v9547_v27 = vsub.f32 %v9546_v0, %v9541_v44  ;;  %v9549_v10 = vsub.f32 %v9548_v4, %v9544_v48 }
 0x1e7   :  { %v1152_v33 = vmul.f32 %v6440_v41, %v1065_v18  ;;  %4839 = vrcp.f32 %v1536_v43  ;;  %v876_v35 = vmax.f32 %v838_v17, 0.0  ;;  %v1154_v38 = vmul.f32 %v6440_v41, %v1067_v56  ;;  %v4822_v30 = vpop.eup %4821 }
 0x1e8   :  { %v1064_v6 = vmul.f32 %v6681_v32, %v9547_v27  ;;  %v839_v3 = vsub.f32 %v763_v62, %v801_v20  ;;  %v1066_v19 = vmul.f32 %v6691_v47, %v9549_v10  ;;  %v6924_v26 = vmul.f32 0.00390625, %v480_v55  ;;  %v4824_v57 = vpop.eup %4823 }
 0x1e9   :  { %v6918_v60 = vadd.f32 %v6448_v1, %v1152_v33  ;;  %v1763_v56 = vmul.f32 %v4822_v30, %v6791_v36  ;;  %v990_v18 = vadd.f32 0.001, %v876_v35  ;;  %v6928_v44 = vadd.f32 %v6448_v1, %v1154_v38  ;;  %v6931_v43 = vpop.eup %4825  ;;  %v9554_v35 = vld [vmem:[#allocation27_spill] sm:$0xff] }
 0x1ea   :  { %9550 = vst [vmem:[#allocation53_spill] sm:$0xff] %v6924_v26  ;;  %v1151_v32 = vmul.f32 %v6437_v22, %v1064_v6  ;;  %v1765_v17 = vmul.f32 %v4824_v57, %v6796_v45  ;;  %v877_v48 = vmax.f32 %v839_v3, 0.0  ;;  %v1153_v47 = vmul.f32 %v6437_v22, %v1066_v19  ;;  %v4828_v55 = vpop.eup %4827  ;;  %v708_v6 = vpop.xlane.xlu0 %707 }
 0x1eb   :  { %v4413_v33 = vmul.f32 -1.442695, %v6918_v60  ;;  %4841 = vrsqrt.f32 %v990_v18  ;;  %v4415_v20 = vmul.f32 -1.442695, %v6928_v44  ;;  %v4830_v38 = vpop.eup %4829  ;;  %v1539_v27 = vadd.f32 1.0, %v4828_v55  ;;  %v711_v19 = vpop.xlane.xlu1 %710  ;;  %v9555_v18 = vld [vmem:[#allocation45_spill] sm:$0xff] }
 0x1ec   :  { %v6938_v36 = vadd.f32 %v6443_v59, %v1151_v32  ;;  %v1831_v0 = vpack.c.bf16 %v1765_v17, %v1763_v56  ;;  %v991_v45 = vadd.f32 0.001, %v877_v48  ;;  %v6942_v30 = vpop.eup %4831  ;;  %v1541_v3 = vadd.f32 1.0, %v4830_v38 }
 0x1ed   :  { %4843 = vpow2.f32 %v4413_v33  ;;  %v6945_v4 = vadd.f32 %v6443_v59, %v1153_v47  ;;  %v4834_v57 = vpop.eup %4833  ;;  %v6950_v32 = vmul.f32 0.00390625, %v483_v29  ;;  %v802_v17 = vmul.f32 %v6924_v26, %v6924_v26 }
 0x1ee   :  { %4845 = vpow2.f32 %v4415_v20  ;;  %v4412_v10 = vmul.f32 -1.442695, %v6938_v36  ;;  %2124 = vmatprep.mubr.bf16.mxu1 %v1831_v0  ;;  %v4836_v33 = vpop.eup %4835  ;;  %v1538_v48 = vadd.f32 1.0, %v4834_v57  ;;  %v764_v55 = vmul.f32 0.00390625, %v708_v6  ;;  %v9553_v0 = vld [vmem:[#allocation26_spill] sm:$0xff] }
 0x1ef   :  { %4847 = vrcp.f32 %v1539_v27  ;;  %v4414_v47 = vmul.f32 -1.442695, %v6945_v4  ;;  %v1540_v38 = vadd.f32 1.0, %v4836_v33  ;;  %v803_v27 = vmul.f32 %v6950_v32, %v6950_v32 }
 0x1f0   :  { %4849 = vrcp.f32 %v1541_v3  ;;  %v4838_v20 = vpop.eup %4837  ;;  %v840_v26 = vsub.f32 %v764_v55, %v802_v17  ;;  %v9556_v3 = vld [vmem:[#allocation20_spill] sm:$0xff]  ;;  %v486_v55 = vpop.xlane.xlu0 %485 }
 0x1f1   :  { %4851 = vrsqrt.f32 %v991_v45  ;;  %v4840_v29 = vpop.eup %4839  ;;  %v1762_v62 = vmul.f32 %v4838_v20, %v6818_v2  ;;  %v9557_v57 = vsub.f32 %v9555_v18, %v9556_v3  ;;  %v9558_v45 = vsub.f32 %v9497_v63, %v6635_v54  ;;  %v489_v18 = vpop.xlane.xlu1 %488 }
 0x1f2   :  { %4853 = vrcp.f32 %v1538_v48  ;;  %v1764_v6 = vmul.f32 %v4840_v29, %v6823_v8  ;;  %v878_v2 = vmax.f32 %v840_v26, 0.0  ;;  %v765_v48 = vmul.f32 0.00390625, %v711_v19 }
 0x1f3   :  { %v1069_v61 = vmul.f32 %v6721_v23, %v9557_v57  ;;  %4855 = vrcp.f32 %v1540_v38  ;;  %v1071_v33 = vmul.f32 %v6730_v46, %v9558_v45  ;;  %v9559_v38 = vld [vmem:[#allocation44_spill] sm:$0xff] }
 0x1f4   :  { %4857 = vpow2.f32 %v4412_v10  ;;  %v1830_v20 = vpack.c.bf16 %v1764_v6, %v1762_v62  ;;  %v9560_v29 = vsub.f32 %v9559_v38, %v9556_v3  ;;  %v992_v45 = vadd.f32 0.001, %v878_v2 }
 0x1f5   :  { %v1156_v17 = vmul.f32 %v6440_v41, %v1069_v61  ;;  %4859 = vpow2.f32 %v4414_v47  ;;  %v1158_v8 = vmul.f32 %v6440_v41, %v1071_v33  ;;  %v6977_v57 = vpop.eup %4841  ;;  %v841_v26 = vsub.f32 %v765_v48, %v803_v27 }
 0x1f6   :  { %v1068_v63 = vmul.f32 %v6721_v23, %v9560_v29  ;;  %v9561_v61 = vsub.f32 %v9496_v15, %v6635_v54  ;;  %2125 = vmatmul.mubr.bf16.gmra.mrb[52].mxu1 %v1830_v20  ;;  %v6990_v23 = vmul.f32 0.00390625, %v486_v55  ;;  %v6992_v6 = vmul.f32 0.00390625, %v489_v18 }
 0x1f7   :  { %v6980_v10 = vadd.f32 %v6448_v1, %v1156_v17  ;;  %v4844_v19 = vpop.eup %4843  ;;  %v6987_v47 = vadd.f32 %v6448_v1, %v1158_v8  ;;  %4861 = vrsqrt.f32 %v992_v45  ;;  %v879_v17 = vmax.f32 %v841_v26, 0.0 }
 0x1f8   :  { %v1070_v62 = vmul.f32 %v6730_v46, %v9561_v61  ;;  %v1155_v3 = vmul.f32 %v6437_v22, %v1068_v63  ;;  %v4846_v33 = vpop.eup %4845  ;;  %v1543_v2 = vadd.f32 1.0, %v4844_v19  ;;  %v714_v63 = vpop.xlane.xlu0 %713 }
 0x1f9   :  { %v4417_v27 = vmul.f32 -1.442695, %v6980_v10  ;;  %v4848_v15 = vpop.eup %4847  ;;  %v1545_v54 = vadd.f32 1.0, %v4846_v33  ;;  %v4419_v46 = vmul.f32 -1.442695, %v6987_v47  ;;  %v717_v19 = vpop.xlane.xlu1 %716  ;;  %v766_v33 = vmul.f32 0.00390625, %v714_v63 }
 0x1fa   :  { %v1157_v48 = vmul.f32 %v6437_v22, %v1070_v62  ;;  %v6998_v20 = vadd.f32 %v6443_v59, %v1155_v3  ;;  %v4850_v8 = vpop.eup %4849  ;;  %v1767_v55 = vmul.f32 %v4848_v15, %v6859_v21  ;;  %4863 = vrcp.f32 %v1543_v2  ;;  %v9564_v2 = vld [vmem:[#allocation34_spill] sm:$0xff]  ;;  %v9565_v15 = vld [vmem:[#allocation35_spill] sm:$0xff] }
 0x1fb   :  { %v993_v18 = vadd.f32 0.001, %v879_v17  ;;  %v7003_v45 = vpop.eup %4851  ;;  %v1769_v26 = vmul.f32 %v4850_v8, %v6862_v50  ;;  %4865 = vrcp.f32 %v1545_v54 }
 0x1fc   :  { %v7007_v61 = vadd.f32 %v6443_v59, %v1157_v48  ;;  %v4416_v62 = vmul.f32 -1.442695, %v6998_v20  ;;  %v4854_v3 = vpop.eup %4853  ;;  %4867 = vpow2.f32 %v4417_v27  ;;  %v804_v27 = vmul.f32 %v6990_v23, %v6990_v23 }
 0x1fd   :  { %v4856_v56 = vpop.eup %4855  ;;  %v1833_v50 = vpack.c.bf16 %v1769_v26, %v1767_v55  ;;  %v1766_v54 = vmul.f32 %v4854_v3, %v6877_v42  ;;  %4869 = vpow2.f32 %v4419_v46  ;;  %v9566_v55 = vsub.f32 %v9500_v25, %v6658_v37  ;;  %v492_v3 = vpop.xlane.xlu0 %491 }
 0x1fe   :  { %v4418_v48 = vmul.f32 -1.442695, %v7007_v61  ;;  %v4858_v8 = vpop.eup %4857  ;;  %v1768_v38 = vmul.f32 %v4856_v56, %v6880_v14  ;;  %4871 = vrsqrt.f32 %v993_v18  ;;  %v9567_v46 = vsub.f32 %v9502_v39, %v6670_v16 }
 0x1ff   :  { %v4860_v21 = vpop.eup %4859  ;;  %2134 = vmatprep.mubr.bf16.mxu1 %v1833_v50  ;;  %v1542_v17 = vadd.f32 1.0, %v4858_v8  ;;  %4873 = vpow2.f32 %v4416_v62  ;;  %v1073_v42 = vmul.f32 %v6753_v28, %v9566_v55  ;;  %v842_v18 = vsub.f32 %v766_v33, %v804_v27  ;;  %v495_v50 = vpop.xlane.xlu1 %494 }
 0x200   :  { %v1075_v26 = vmul.f32 %v6767_v52, %v9567_v46  ;;  %v1832_v14 = vpack.c.bf16 %v1768_v38, %v1766_v54  ;;  %v1544_v56 = vadd.f32 1.0, %v4860_v21  ;;  %4875 = vpow2.f32 %v4418_v48  ;;  %v9569_v54 = vld [vmem:[#allocation54_spill] sm:$0xff] }
 0x201   :  { %4877 = vrcp.f32 %v1542_v17  ;;  %v1160_v63 = vmul.f32 %v6440_v41, %v1073_v42  ;;  %v805_v25 = vmul.f32 %v6992_v6, %v6992_v6  ;;  %v7033_v8 = vpop.eup %4861  ;;  %v880_v39 = vmax.f32 %v842_v18, 0.0 }
 0x202   :  { %v1162_v62 = vmul.f32 %v6440_v41, %v1075_v26  ;;  %2135 = vmatmul.mubr.bf16.gmra.mrb[56].mxu1 %v1832_v14  ;;  %4879 = vrcp.f32 %v1544_v56  ;;  %v767_v55 = vmul.f32 0.00390625, %v717_v19  ;;  %v9568_v38 = vsub.f32 %v9499_v49, %v6658_v37 }
 0x203   :  { %v7040_v33 = vadd.f32 %v6448_v1, %v1160_v63  ;;  %v9570_v48 = vsub.f32 %v9569_v54, %v6670_v16  ;;  %v7049_v42 = vmul.f32 0.00390625, %v492_v3  ;;  %v994_v19 = vadd.f32 0.001, %v880_v39 }
 0x204   :  { %v1072_v21 = vmul.f32 %v6753_v28, %v9568_v38  ;;  %v7043_v17 = vadd.f32 %v6448_v1, %v1162_v62  ;;  %v4864_v46 = vpop.eup %4863  ;;  %v843_v26 = vsub.f32 %v767_v55, %v805_v25  ;;  %v7052_v49 = vmul.f32 0.00390625, %v495_v50 }
 0x205   :  { %v1074_v27 = vmul.f32 %v6767_v52, %v9570_v48  ;;  %v4866_v28 = vpop.eup %4865  ;;  %v1771_v14 = vmul.f32 %v4864_v46, %v6918_v60  ;;  %v4421_v56 = vmul.f32 -1.442695, %v7040_v33  ;;  %4881 = vrsqrt.f32 %v994_v19  ;;  %v720_v48 = vpop.xlane.xlu0 %719  ;;  %v9578_v60 = vld [vmem:[#allocation60_spill] sm:$0xff] }
 0x206   :  { %v1159_v37 = vmul.f32 %v6437_v22, %v1072_v21  ;;  %v4423_v18 = vmul.f32 -1.442695, %v7043_v17  ;;  %v4868_v63 = vpop.eup %4867  ;;  %v1773_v52 = vmul.f32 %v4866_v28, %v6928_v44  ;;  %v881_v3 = vmax.f32 %v843_v26, 0.0 }
 0x207   :  { %v1161_v16 = vmul.f32 %v6437_v22, %v1074_v27  ;;  %v4870_v25 = vpop.eup %4869  ;;  %v1547_v50 = vadd.f32 1.0, %v4868_v63  ;;  %4883 = vpow2.f32 %v4421_v56  ;;  %v723_v27 = vpop.xlane.xlu1 %722  ;;  %v768_v55 = vmul.f32 0.00390625, %v720_v48 }
 0x208   :  { %v7060_v62 = vadd.f32 %v6443_v59, %v1159_v37  ;;  %v7067_v38 = vpop.eup %4871  ;;  %v1835_v21 = vpack.c.bf16 %v1773_v52, %v1771_v14  ;;  %v1549_v54 = vadd.f32 1.0, %v4870_v25  ;;  %4885 = vpow2.f32 %v4423_v18  ;;  %v9572_v37 = vld [vmem:[#allocation41_spill] sm:$0xff]  ;;  %v9574_v18 = vld [vmem:[#allocation43_spill] sm:$0xff] }
 0x209   :  { %v7063_v39 = vadd.f32 %v6443_v59, %v1161_v16  ;;  %v995_v44 = vadd.f32 0.001, %v881_v3  ;;  %v4874_v46 = vpop.eup %4873  ;;  %4887 = vrcp.f32 %v1547_v50  ;;  %v806_v50 = vmul.f32 %v7049_v42, %v7049_v42 }
 0x20a   :  { %v4420_v19 = vmul.f32 -1.442695, %v7060_v62  ;;  %v4876_v56 = vpop.eup %4875  ;;  %2144 = vmatprep.mubr.bf16.mxu1 %v1835_v21  ;;  %4889 = vrcp.f32 %v1549_v54  ;;  %v1546_v16 = vadd.f32 1.0, %v4874_v46  ;;  %v9575_v21 = vsub.f32 %v6348_v13, %v6693_v12  ;;  %v9576_v46 = vld [vmem:[#allocation21_spill] sm:$0xff] }
 0x20b   :  { %v4422_v26 = vmul.f32 -1.442695, %v7063_v39  ;;  %v4878_v3 = vpop.eup %4877  ;;  %v1548_v25 = vadd.f32 1.0, %v4876_v56  ;;  %4891 = vrsqrt.f32 %v995_v44  ;;  %v9577_v63 = vsub.f32 %v6358_v5, %v9576_v46 }
 0x20c   :  { %v4880_v29 = vpop.eup %4879  ;;  %v1770_v28 = vmul.f32 %v4878_v3, %v6938_v36  ;;  %4893 = vrcp.f32 %v1546_v16  ;;  %v1077_v54 = vmul.f32 %v6788_v40, %v9575_v21  ;;  %v844_v56 = vsub.f32 %v768_v55, %v806_v50  ;;  %v498_v3 = vpop.xlane.xlu0 %497 }
 0x20d   :  { %v1079_v52 = vmul.f32 %v6802_v58, %v9577_v63  ;;  %v1772_v44 = vmul.f32 %v4880_v29, %v6945_v4  ;;  %4895 = vrcp.f32 %v1548_v25  ;;  %v807_v48 = vmul.f32 %v7052_v49, %v7052_v49  ;;  %v501_v21 = vpop.xlane.xlu1 %500 }
 0x20e   :  { %4897 = vpow2.f32 %v4420_v19  ;;  %v1164_v36 = vmul.f32 %v6440_v41, %v1077_v54  ;;  %v769_v13 = vmul.f32 0.00390625, %v723_v27  ;;  %v882_v5 = vmax.f32 %v844_v56, 0.0  ;;  %v9580_v27 = vld [vmem:[#allocation61_spill] sm:$0xff] }
 0x20f   :  { %v1166_v16 = vmul.f32 %v6440_v41, %v1079_v52  ;;  %v1834_v14 = vpack.c.bf16 %v1772_v44, %v1770_v28  ;;  %4899 = vpow2.f32 %v4422_v26  ;;  %v9579_v63 = vsub.f32 %v9578_v60, %v6693_v12  ;;  %v7097_v29 = vpop.eup %4881 }
 0x210   :  { %v7100_v55 = vadd.f32 %v6448_v1, %v1164_v36  ;;  %v845_v52 = vsub.f32 %v769_v13, %v807_v48  ;;  %v9581_v25 = vsub.f32 %v9580_v27, %v9576_v46  ;;  %v996_v50 = vadd.f32 0.001, %v882_v5 }
 0x211   :  { %v1076_v4 = vmul.f32 %v6788_v40, %v9579_v63  ;;  %v7103_v19 = vadd.f32 %v6448_v1, %v1166_v16  ;;  %v4884_v28 = vpop.eup %4883  ;;  %2145 = vmatmul.mubr.bf16.gmra.mrb[60].mxu1 %v1834_v14  ;;  %v7110_v40 = vmul.f32 0.00390625, %v498_v3  ;;  %v7112_v60 = vmul.f32 0.00390625, %v501_v21 }
 0x212   :  { %v1078_v26 = vmul.f32 %v6802_v58, %v9581_v25  ;;  %v4886_v54 = vpop.eup %4885  ;;  %v1551_v44 = vadd.f32 1.0, %v4884_v28  ;;  %v4425_v56 = vmul.f32 -1.442695, %v7100_v55  ;;  %v883_v36 = vmax.f32 %v845_v52, 0.0  ;;  %v729_v28 = vpop.xlane.xlu1 %728 }
 0x213   :  { %v1163_v12 = vmul.f32 %v6437_v22, %v1076_v4  ;;  %9582 = vst [vmem:[#allocation56_spill] sm:$0xff] %v7112_v60  ;;  %v4427_v48 = vmul.f32 -1.442695, %v7103_v19  ;;  %v4888_v16 = vpop.eup %4887  ;;  %v1553_v46 = vadd.f32 1.0, %v4886_v54  ;;  %4901 = vrsqrt.f32 %v996_v50  ;;  %v726_v4 = vpop.xlane.xlu0 %725 }
 0x214   :  { %v1165_v58 = vmul.f32 %v6437_v22, %v1078_v26  ;;  %v4890_v13 = vpop.eup %4889  ;;  %v1775_v3 = vmul.f32 %v4888_v16, %v6980_v10  ;;  %4903 = vrcp.f32 %v1551_v44  ;;  %v997_v21 = vadd.f32 0.001, %v883_v36  ;;  %v9587_v16 = vld [vmem:[#allocation22_spill] sm:$0xff] }
 0x215   :  { %v7118_v14 = vadd.f32 %v6443_v59, %v1163_v12  ;;  %v7123_v27 = vpop.eup %4891  ;;  %v1777_v52 = vmul.f32 %v4890_v13, %v6987_v47  ;;  %4905 = vrcp.f32 %v1553_v46  ;;  %v770_v12 = vmul.f32 0.00390625, %v726_v4 }
 0x216   :  { %v7127_v25 = vadd.f32 %v6443_v59, %v1165_v58  ;;  %v4894_v50 = vpop.eup %4893  ;;  %4907 = vpow2.f32 %v4425_v56  ;;  %v808_v56 = vmul.f32 %v7110_v40, %v7110_v40 }
 0x217   :  { %v4424_v26 = vmul.f32 -1.442695, %v7118_v14  ;;  %v4896_v63 = vpop.eup %4895  ;;  %v1837_v47 = vpack.c.bf16 %v1777_v52, %v1775_v3  ;;  %v1774_v46 = vmul.f32 %v4894_v50, %v6998_v20  ;;  %4909 = vpow2.f32 %v4427_v48  ;;  %v9589_v48 = vld [vmem:[#allocation5_spill] sm:$0xff]  ;;  %v9590_v52 = vld [vmem:[#allocation24_spill] sm:$0xff]  ;;  %v504_v36 = vpop.xlane.xlu0 %503 }
 0x218   :  { %v4426_v58 = vmul.f32 -1.442695, %v7127_v25  ;;  %v4898_v13 = vpop.eup %4897  ;;  %v1776_v5 = vmul.f32 %v4896_v63, %v7007_v61  ;;  %4911 = vrsqrt.f32 %v997_v21  ;;  %v9588_v3 = vsub.f32 %v9510_v34, %v9587_v16 }
 0x219   :  { %v4900_v10 = vpop.eup %4899  ;;  %2154 = vmatprep.mubr.bf16.mxu1 %v1837_v47  ;;  %v1550_v44 = vadd.f32 1.0, %v4898_v13  ;;  %4913 = vpow2.f32 %v4424_v26  ;;  %v9591_v50 = vsub.f32 %v9589_v48, %v9590_v52  ;;  %v846_v63 = vsub.f32 %v770_v12, %v808_v56  ;;  %v507_v47 = vpop.xlane.xlu1 %506  ;;  %v9592_v48 = vld [vmem:[#allocation2_spill] sm:$0xff] }
 0x21a   :  { %v1081_v20 = vmul.f32 %v6828_v7, %v9588_v3  ;;  %v1836_v61 = vpack.c.bf16 %v1776_v5, %v1774_v46  ;;  %v1552_v21 = vadd.f32 1.0, %v4900_v10  ;;  %4915 = vpow2.f32 %v4426_v58  ;;  %v9594_v46 = vld [vmem:[#allocation4_spill] sm:$0xff] }
 0x21b   :  { %v1083_v54 = vmul.f32 %v6843_v51, %v9591_v50  ;;  %4917 = vrcp.f32 %v1550_v44  ;;  %v809_v34 = vmul.f32 %v7112_v60, %v7112_v60  ;;  %v884_v13 = vmax.f32 %v846_v63, 0.0 }
 0x21c   :  { %v1168_v4 = vmul.f32 %v6440_v41, %v1081_v20  ;;  %2155 = vmatmul.mubr.bf16.gmra.mrb[64].mxu1 %v1836_v61  ;;  %4919 = vrcp.f32 %v1552_v21  ;;  %v771_v3 = vmul.f32 0.00390625, %v729_v28  ;;  %v9593_v5 = vsub.f32 %v9592_v48, %v9587_v16 }
 0x21d   :  { %v1170_v26 = vmul.f32 %v6440_v41, %v1083_v54  ;;  %v7157_v12 = vpop.eup %4901  ;;  %v9595_v58 = vsub.f32 %v9594_v46, %v9590_v52  ;;  %v7169_v20 = vmul.f32 0.00390625, %v504_v36  ;;  %v998_v50 = vadd.f32 0.001, %v884_v13 }
 0x21e   :  { %v1080_v10 = vmul.f32 %v6828_v7, %v9593_v5  ;;  %v7160_v44 = vadd.f32 %v6448_v1, %v1168_v4  ;;  %v4904_v28 = vpop.eup %4903  ;;  %v847_v16 = vsub.f32 %v771_v3, %v809_v34  ;;  %v7172_v61 = vmul.f32 0.00390625, %v507_v47 }
 0x21f   :  { %v7163_v54 = vadd.f32 %v6448_v1, %v1170_v26  ;;  %v1082_v56 = vmul.f32 %v6843_v51, %v9595_v58  ;;  %v4906_v21 = vpop.eup %4905  ;;  %v1779_v63 = vmul.f32 %v4904_v28, %v7040_v33  ;;  %4921 = vrsqrt.f32 %v998_v50  ;;  %v735_v33 = vpop.xlane.xlu1 %734 }
 0x220   :  { %v1167_v7 = vmul.f32 %v6437_v22, %v1080_v10  ;;  %v4429_v4 = vmul.f32 -1.442695, %v7160_v44  ;;  %v4908_v48 = vpop.eup %4907  ;;  %v1781_v51 = vmul.f32 %v4906_v21, %v7043_v17  ;;  %v885_v36 = vmax.f32 %v847_v16, 0.0 }
 0x221   :  { %v4431_v26 = vmul.f32 -1.442695, %v7163_v54  ;;  %v1169_v52 = vmul.f32 %v6437_v22, %v1082_v56  ;;  %v4910_v13 = vpop.eup %4909  ;;  %v1555_v47 = vadd.f32 1.0, %v4908_v48  ;;  %v732_v56 = vpop.xlane.xlu0 %731 }
 0x222   :  { %v7180_v34 = vadd.f32 %v6443_v59, %v1167_v7  ;;  %4923 = vpow2.f32 %v4429_v4  ;;  %v7187_v10 = vpop.eup %4911  ;;  %v1839_v46 = vpack.c.bf16 %v1781_v51, %v1779_v63  ;;  %v1557_v58 = vadd.f32 1.0, %v4910_v13  ;;  %v9597_v7 = vld [vmem:[#allocation57_spill] sm:$0xff] }
 0x223   :  { %v7183_v3 = vadd.f32 %v6443_v59, %v1169_v52  ;;  %4925 = vpow2.f32 %v4431_v26  ;;  %v999_v17 = vadd.f32 0.001, %v885_v36  ;;  %v4914_v28 = vpop.eup %4913  ;;  %v772_v5 = vmul.f32 0.00390625, %v732_v56  ;;  %v9602_v63 = vld [vmem:[#allocation29_spill] sm:$0xff]  ;;  %v9604_v26 = vld [vmem:[#allocation6_spill] sm:$0xff] }
 0x224   :  { %4927 = vrcp.f32 %v1555_v47  ;;  %v4428_v50 = vmul.f32 -1.442695, %v7180_v34  ;;  %v4916_v4 = vpop.eup %4915  ;;  %2164 = vmatprep.mubr.bf16.mxu1 %v1839_v46  ;;  %v1554_v52 = vadd.f32 1.0, %v4914_v28  ;;  %v810_v47 = vmul.f32 %v7169_v20, %v7169_v20  ;;  %v9601_v28 = vld [vmem:[#allocation9_spill] sm:$0xff] }
 0x225   :  { %v4430_v16 = vmul.f32 -1.442695, %v7183_v3  ;;  %4929 = vrcp.f32 %v1557_v58  ;;  %v4918_v36 = vpop.eup %4917  ;;  %v1556_v13 = vadd.f32 1.0, %v4916_v4  ;;  %v9600_v46 = vsub.f32 %v9516_v31, %v6770_v9 }
 0x226   :  { %4931 = vrsqrt.f32 %v999_v17  ;;  %v4920_v60 = vpop.eup %4919  ;;  %v1778_v21 = vmul.f32 %v4918_v36, %v7060_v62  ;;  %v9603_v51 = vsub.f32 %v9601_v28, %v9602_v63  ;;  %v848_v48 = vsub.f32 %v772_v5, %v810_v47 }
 0x227   :  { %4933 = vrcp.f32 %v1554_v52  ;;  %v1085_v58 = vmul.f32 %v6871_v53, %v9600_v46  ;;  %v1780_v17 = vmul.f32 %v4920_v60, %v7063_v39  ;;  %v811_v56 = vmul.f32 %v7172_v61, %v7172_v61 }
 0x228   :  { %v1087_v4 = vmul.f32 %v6892_v24, %v9603_v51  ;;  %4935 = vrcp.f32 %v1556_v13  ;;  %v773_v31 = vmul.f32 0.00390625, %v735_v33  ;;  %v886_v46 = vmax.f32 %v848_v48, 0.0  ;;  %v9606_v13 = vld [vmem:[#allocation8_spill] sm:$0xff] }
 0x229   :  { %4937 = vpow2.f32 %v4428_v50  ;;  %v1172_v62 = vmul.f32 %v6440_v41, %v1085_v58  ;;  %v1838_v36 = vpack.c.bf16 %v1780_v17, %v1778_v21  ;;  %v9605_v28 = vsub.f32 %v9604_v26, %v6770_v9  ;;  %v7217_v39 = vpop.eup %4921  ;;  %v9609_v26 = vld [vmem:[#allocation32_spill] sm:$0xff]  ;;  %v9612_v17 = vld [vmem:[#allocation46_spill] sm:$0xff] }
 0x22a   :  { %v1174_v52 = vmul.f32 %v6440_v41, %v1087_v4  ;;  %4939 = vpow2.f32 %v4430_v16  ;;  %v849_v50 = vsub.f32 %v773_v31, %v811_v56  ;;  %v9607_v33 = vsub.f32 %v9606_v13, %v9602_v63  ;;  %v9611_v4 = vld [vmem:[#allocation13_spill] sm:$0xff] }
 0x22b   :  { %v1084_v51 = vmul.f32 %v6871_v53, %v9605_v28  ;;  %v7220_v60 = vadd.f32 %v6448_v1, %v1172_v62  ;;  %2165 = vmatmul.mubr.bf16.gmra.mrb[68].mxu1 %v1838_v36  ;;  %v1000_v48 = vadd.f32 0.001, %v886_v46  ;;  %v9608_v53 = vld [vmem:[#allocation11_spill] sm:$0xff]  ;;  %v9613_v62 = vsub.f32 %v9611_v4, %v9612_v17 }
 0x22c   :  { %v7223_v5 = vadd.f32 %v6448_v1, %v1174_v52  ;;  %v1086_v16 = vmul.f32 %v6892_v24, %v9607_v33  ;;  %v4924_v21 = vpop.eup %4923  ;;  %v9610_v47 = vsub.f32 %v9608_v53, %v9609_v26  ;;  %v887_v36 = vmax.f32 %v849_v50, 0.0 }
 0x22d   :  { %v1171_v9 = vmul.f32 %v6437_v22, %v1084_v51  ;;  %v1091_v56 = vmul.f32 %v6942_v30, %v9613_v62  ;;  %v4926_v52 = vpop.eup %4925  ;;  %v1559_v31 = vadd.f32 1.0, %v4924_v21  ;;  %v4433_v63 = vmul.f32 -1.442695, %v7220_v60 }
 0x22e   :  { %v1089_v58 = vmul.f32 %v6931_v43, %v9610_v47  ;;  %v4435_v24 = vmul.f32 -1.442695, %v7223_v5  ;;  %v4928_v46 = vpop.eup %4927  ;;  %v1561_v28 = vadd.f32 1.0, %v4926_v52  ;;  %4941 = vrsqrt.f32 %v1000_v48  ;;  %v9614_v52 = vld [vmem:[#allocation10_spill] sm:$0xff] }
 0x22f   :  { %v1173_v51 = vmul.f32 %v6437_v22, %v1086_v16  ;;  %v7242_v13 = vadd.f32 %v6443_v59, %v1171_v9  ;;  %v4930_v33 = vpop.eup %4929  ;;  %v1783_v53 = vmul.f32 %v4928_v46, %v7100_v55  ;;  %4943 = vrcp.f32 %v1559_v31 }
 0x230   :  { %v1001_v47 = vadd.f32 0.001, %v887_v36  ;;  %v1176_v21 = vmul.f32 %v6440_v41, %v1089_v58  ;;  %v7246_v4 = vpop.eup %4931  ;;  %v1785_v62 = vmul.f32 %v4930_v33, %v7103_v19  ;;  %4945 = vrcp.f32 %v1561_v28 }
 0x231   :  { %v7250_v50 = vadd.f32 %v6443_v59, %v1173_v51  ;;  %v4432_v16 = vmul.f32 -1.442695, %v7242_v13  ;;  %v4934_v48 = vpop.eup %4933  ;;  %4947 = vpow2.f32 %v4433_v63  ;;  %v1178_v9 = vmul.f32 %v6440_v41, %v1091_v56 }
 0x232   :  { %v7255_v55 = vadd.f32 %v6448_v1, %v1176_v21  ;;  %v9615_v58 = vsub.f32 %v9614_v52, %v9609_v26  ;;  %v4936_v36 = vpop.eup %4935  ;;  %v1841_v19 = vpack.c.bf16 %v1785_v62, %v1783_v53  ;;  %v1782_v46 = vmul.f32 %v4934_v48, %v7118_v14  ;;  %v9618_v52 = vld [vmem:[#allocation17_spill] sm:$0xff] }
 0x233   :  { %4949 = vpow2.f32 %v4435_v24  ;;  %v4434_v28 = vmul.f32 -1.442695, %v7250_v50  ;;  %v4938_v51 = vpop.eup %4937  ;;  %v1784_v63 = vmul.f32 %v4936_v36, %v7127_v25  ;;  %v7265_v56 = vadd.f32 %v6448_v1, %v1178_v9 }
 0x234   :  { %v1088_v31 = vmul.f32 %v6931_v43, %v9615_v58  ;;  %4951 = vrsqrt.f32 %v1001_v47  ;;  %v4437_v33 = vmul.f32 -1.442695, %v7255_v55  ;;  %v4940_v21 = vpop.eup %4939  ;;  %2174 = vmatprep.mubr.bf16.mxu1 %v1841_v19  ;;  %v1558_v26 = vadd.f32 1.0, %v4938_v51  ;;  %v9616_v43 = vld [vmem:[#allocation12_spill] sm:$0xff]  ;;  %v9623_v19 = vld [vmem:[#allocation15_spill] sm:$0xff]  ;;  %v9625_v51 = vld [vmem:[#allocation18_spill] sm:$0xff] }
 0x235   :  { %4953 = vpow2.f32 %v4432_v16  ;;  %v9617_v53 = vsub.f32 %v9616_v43, %v9612_v17  ;;  %v1840_v62 = vpack.c.bf16 %v1784_v63, %v1782_v46  ;;  %v1560_v48 = vadd.f32 1.0, %v4940_v21  ;;  %v9619_v16 = vld [vmem:[#allocation48_spill] sm:$0xff] }
 0x236   :  { %v1175_v24 = vmul.f32 %v6437_v22, %v1088_v31  ;;  %4955 = vpow2.f32 %v4434_v28  ;;  %v4439_v25 = vmul.f32 -1.442695, %v7265_v56  ;;  %v9620_v58 = vsub.f32 %v9618_v52, %v9619_v16 }
 0x237   :  { %v1090_v14 = vmul.f32 %v6942_v30, %v9617_v53  ;;  %4957 = vrcp.f32 %v1558_v26  ;;  %2175 = vmatmul.mubr.bf16.gmra.mrb[72].mxu1 %v1840_v62  ;;  %v9621_v30 = vld [vmem:[#allocation52_spill] sm:$0xff]  ;;  %v9624_v46 = vsub.f32 %v9623_v19, %v9619_v16  ;;  %v9628_v19 = vld [vmem:[#allocation53_spill] sm:$0xff] }
 0x238   :  { %v7276_v9 = vadd.f32 %v6443_v59, %v1175_v24  ;;  %v1093_v17 = vmul.f32 %v6977_v57, %v9620_v58  ;;  %4959 = vrcp.f32 %v1560_v48  ;;  %v9622_v31 = vsub.f32 %v9539_v11, %v9621_v30  ;;  %v7294_v26 = vpop.eup %4941 }
 0x239   :  { %v1177_v47 = vmul.f32 %v6437_v22, %v1090_v14  ;;  %v1092_v28 = vmul.f32 %v6977_v57, %v9624_v46  ;;  %v9626_v63 = vsub.f32 %v9625_v51, %v9621_v30  ;;  %4961 = vpow2.f32 %v4437_v33  ;;  %v4944_v14 = vpop.eup %4943 }
 0x23a   :  { %v1095_v36 = vmul.f32 %v7003_v45, %v9622_v31  ;;  %v4436_v11 = vmul.f32 -1.442695, %v7276_v9  ;;  %v1180_v53 = vmul.f32 %v6440_v41, %v1093_v17  ;;  %4963 = vpow2.f32 %v4439_v25  ;;  %v4946_v48 = vpop.eup %4945 }
 0x23b   :  { %v1094_v21 = vmul.f32 %v7003_v45, %v9626_v63  ;;  %v7297_v43 = vadd.f32 %v6443_v59, %v1177_v47  ;;  %v1179_v57 = vmul.f32 %v6437_v22, %v1092_v28  ;;  %v1787_v45 = vmul.f32 %v4944_v14, %v7160_v44  ;;  %v4948_v52 = vpop.eup %4947 }
 0x23c   :  { %v1182_v24 = vmul.f32 %v6440_v41, %v1095_v36  ;;  %4965 = vpow2.f32 %v4436_v11  ;;  %v7307_v47 = vadd.f32 %v6448_v1, %v1180_v53  ;;  %v1789_v16 = vmul.f32 %v4946_v48, %v7163_v54  ;;  %v9627_v36 = vld [vmem:[#allocation25_spill] sm:$0xff] }
 0x23d   :  { %v1181_v62 = vmul.f32 %v6437_v22, %v1094_v21  ;;  %v4438_v33 = vmul.f32 -1.442695, %v7297_v43  ;;  %v7314_v58 = vadd.f32 %v6443_v59, %v1179_v57  ;;  %v4950_v30 = vpop.eup %4949  ;;  %v1563_v44 = vadd.f32 1.0, %v4948_v52 }
 0x23e   :  { %v7311_v25 = vadd.f32 %v6448_v1, %v1182_v24  ;;  %v4441_v31 = vmul.f32 -1.442695, %v7307_v47  ;;  %v9629_v46 = vsub.f32 %v9627_v36, %v9628_v19  ;;  %v7324_v54 = vpop.eup %4951  ;;  %v1843_v51 = vpack.c.bf16 %v1789_v16, %v1787_v45 }
 0x23f   :  { %v7317_v17 = vadd.f32 %v6443_v59, %v1181_v62  ;;  %4967 = vpow2.f32 %v4438_v33  ;;  %v1565_v63 = vadd.f32 1.0, %v4950_v30  ;;  %v4440_v11 = vmul.f32 -1.442695, %v7314_v58  ;;  %v4954_v53 = vpop.eup %4953  ;;  %v9631_v33 = vld [vmem:[#allocation23_spill] sm:$0xff] }
 0x240   :  { %v1097_v28 = vmul.f32 %v7033_v8, %v9629_v46  ;;  %v4443_v21 = vmul.f32 -1.442695, %v7311_v25  ;;  %4969 = vrcp.f32 %v1563_v44  ;;  %v9630_v24 = vsub.f32 %v9554_v35, %v6950_v32  ;;  %v4956_v48 = vpop.eup %4955  ;;  %2184 = vmatprep.mubr.bf16.mxu1 %v1843_v51 }
 0x241   :  { %v4442_v14 = vmul.f32 -1.442695, %v7317_v17  ;;  %4971 = vrcp.f32 %v1565_v63  ;;  %v1562_v45 = vadd.f32 1.0, %v4954_v53  ;;  %v9632_v52 = vsub.f32 %v9631_v33, %v9628_v19  ;;  %v4958_v36 = vpop.eup %4957 }
 0x242   :  { %v1099_v57 = vmul.f32 %v7067_v38, %v9630_v24  ;;  %v1184_v62 = vmul.f32 %v6440_v41, %v1097_v28  ;;  %v9633_v30 = vsub.f32 %v9553_v0, %v6950_v32  ;;  %v1564_v35 = vadd.f32 1.0, %v4956_v48  ;;  %v4960_v51 = vpop.eup %4959 }
 0x243   :  { %v1096_v16 = vmul.f32 %v7033_v8, %v9632_v52  ;;  %4973 = vpow2.f32 %v4441_v31  ;;  %v1786_v63 = vmul.f32 %v4958_v36, %v7180_v34  ;;  %v4962_v53 = vpop.eup %4961  ;;  %v1788_v32 = vmul.f32 %v4960_v51, %v7183_v3 }
 0x244   :  { %v1098_v44 = vmul.f32 %v7067_v38, %v9633_v30  ;;  %v1186_v46 = vmul.f32 %v6440_v41, %v1099_v57  ;;  %v7344_v28 = vadd.f32 %v6448_v1, %v1184_v62  ;;  %4975 = vrcp.f32 %v1562_v45  ;;  %v4964_v31 = vpop.eup %4963 }
 0x245   :  { %v1183_v19 = vmul.f32 %v6437_v22, %v1096_v16  ;;  %4977 = vrcp.f32 %v1564_v35  ;;  %v1567_v24 = vadd.f32 1.0, %v4962_v53  ;;  %v1842_v48 = vpack.c.bf16 %v1788_v32, %v1786_v63 }
 0x246   :  { %v1185_v8 = vmul.f32 %v6437_v22, %v1098_v44  ;;  %v7351_v0 = vadd.f32 %v6448_v1, %v1186_v46  ;;  %v4445_v38 = vmul.f32 -1.442695, %v7344_v28  ;;  %4979 = vpow2.f32 %v4443_v21  ;;  %v4966_v62 = vpop.eup %4965  ;;  %v9634_v21 = vld [vmem:[#allocation33_spill] sm:$0xff]  ;;  %v9637_v46 = vld [vmem:[#allocation31_spill] sm:$0xff] }
 0x247   :  { %v7355_v57 = vadd.f32 %v6443_v59, %v1183_v19  ;;  %v1569_v45 = vadd.f32 1.0, %v4964_v31  ;;  %4981 = vpow2.f32 %v4440_v11  ;;  %v1566_v33 = vadd.f32 1.0, %v4966_v62  ;;  %2185 = vmatmul.mubr.bf16.gmra.mrb[76].mxu1 %v1842_v48 }
 0x248   :  { %v7358_v34 = vadd.f32 %v6443_v59, %v1185_v8  ;;  %v4447_v3 = vmul.f32 -1.442695, %v7351_v0  ;;  %4983 = vrcp.f32 %v1567_v24  ;;  %v9635_v44 = vsub.f32 %v9634_v21, %v6990_v23 }
 0x249   :  { %v4444_v52 = vmul.f32 -1.442695, %v7355_v57  ;;  %v4968_v30 = vpop.eup %4967  ;;  %4985 = vrcp.f32 %v1569_v45  ;;  %v9636_v35 = vsub.f32 %v9565_v15, %v6992_v6  ;;  %v9638_v51 = vsub.f32 %v9637_v46, %v6990_v23 }
 0x24a   :  { %v4446_v16 = vmul.f32 -1.442695, %v7358_v34  ;;  %v1101_v36 = vmul.f32 %v7097_v29, %v9635_v44  ;;  %v1568_v19 = vadd.f32 1.0, %v4968_v30  ;;  %4987 = vrcp.f32 %v1566_v33  ;;  %v4970_v15 = vpop.eup %4969 }
 0x24b   :  { %v1103_v11 = vmul.f32 %v7123_v27, %v9636_v35  ;;  %v1100_v63 = vmul.f32 %v7097_v29, %v9638_v51  ;;  %v9639_v8 = vsub.f32 %v9564_v2, %v6992_v6  ;;  %v9640_v32 = vsub.f32 %v9572_v37, %v7049_v42  ;;  %v4972_v62 = vpop.eup %4971 }
 0x24c   :  { %4989 = vpow2.f32 %v4442_v14  ;;  %v1188_v24 = vmul.f32 %v6440_v41, %v1101_v36  ;;  %v1791_v48 = vmul.f32 %v4970_v15, %v7220_v60  ;;  %v9641_v2 = vsub.f32 %v9574_v18, %v7052_v49 }
 0x24d   :  { %v1102_v53 = vmul.f32 %v7123_v27, %v9639_v8  ;;  %v1105_v31 = vmul.f32 %v7157_v12, %v9640_v32  ;;  %v1190_v23 = vmul.f32 %v6440_v41, %v1103_v11  ;;  %v1187_v29 = vmul.f32 %v6437_v22, %v1100_v63  ;;  %v4974_v27 = vpop.eup %4973 }
 0x24e   :  { %4991 = vrcp.f32 %v1568_v19  ;;  %v1107_v37 = vmul.f32 %v7187_v10, %v9641_v2  ;;  %v1793_v14 = vmul.f32 %v4972_v62, %v7223_v5  ;;  %v7394_v45 = vadd.f32 %v6448_v1, %v1188_v24  ;;  %v4976_v30 = vpop.eup %4975 }
 0x24f   :  { %v1189_v6 = vmul.f32 %v6437_v22, %v1102_v53  ;;  %4993 = vpow2.f32 %v4445_v38  ;;  %v7397_v33 = vadd.f32 %v6448_v1, %v1190_v23  ;;  %v1571_v60 = vadd.f32 1.0, %v4974_v27  ;;  %v4978_v44 = vpop.eup %4977  ;;  %v9642_v23 = vld [vmem:[#allocation39_spill] sm:$0xff] }
 0x250   :  { %4995 = vpow2.f32 %v4447_v3  ;;  %v7400_v21 = vadd.f32 %v6443_v59, %v1187_v29  ;;  %v1845_v36 = vpack.c.bf16 %v1793_v14, %v1791_v48  ;;  %v1790_v5 = vmul.f32 %v4976_v30, %v7242_v13  ;;  %v4980_v35 = vpop.eup %4979 }
 0x251   :  { %v7403_v18 = vadd.f32 %v6443_v59, %v1189_v6  ;;  %4997 = vpow2.f32 %v4444_v52  ;;  %v4449_v38 = vmul.f32 -1.442695, %v7394_v45  ;;  %v1792_v11 = vmul.f32 %v4978_v44, %v7250_v50  ;;  %v4982_v51 = vpop.eup %4981  ;;  %v9644_v6 = vld [vmem:[#allocation42_spill] sm:$0xff] }
 0x252   :  { %4999 = vrcp.f32 %v1571_v60  ;;  %v4451_v46 = vmul.f32 -1.442695, %v7397_v33  ;;  %v4448_v3 = vmul.f32 -1.442695, %v7400_v21  ;;  %2194 = vmatprep.mubr.bf16.mxu1 %v1845_v36  ;;  %v1573_v63 = vadd.f32 1.0, %v4980_v35  ;;  %v4984_v13 = vpop.eup %4983 }
 0x253   :  { %5001 = vpow2.f32 %v4446_v16  ;;  %v4450_v19 = vmul.f32 -1.442695, %v7403_v18  ;;  %v1192_v8 = vmul.f32 %v6440_v41, %v1105_v31  ;;  %v1844_v52 = vpack.c.bf16 %v1792_v11, %v1790_v5  ;;  %v4986_v50 = vpop.eup %4985 }
 0x254   :  { %v1570_v53 = vadd.f32 1.0, %v4982_v51  ;;  %5003 = vpow2.f32 %v4449_v38  ;;  %v1194_v32 = vmul.f32 %v6440_v41, %v1107_v37  ;;  %v1795_v15 = vmul.f32 %v4984_v13, %v7255_v55  ;;  %v4988_v62 = vpop.eup %4987  ;;  %v9646_v38 = vld [vmem:[#allocation49_spill] sm:$0xff] }
 0x255   :  { %5005 = vrcp.f32 %v1573_v63  ;;  %v7415_v24 = vadd.f32 %v6448_v1, %v1192_v8  ;;  %v9643_v16 = vsub.f32 %v9642_v23, %v7049_v42  ;;  %2195 = vmatmul.mubr.bf16.gmra.mrb[80].mxu1 %v1844_v52  ;;  %v1797_v31 = vmul.f32 %v4986_v50, %v7265_v56 }
 0x256   :  { %5007 = vrcp.f32 %v1570_v53  ;;  %v7423_v48 = vadd.f32 %v6448_v1, %v1194_v32  ;;  %v9645_v55 = vsub.f32 %v9644_v6, %v7052_v49  ;;  %v4990_v37 = vpop.eup %4989  ;;  %v1794_v27 = vmul.f32 %v4988_v62, %v7276_v9 }
 0x257   :  { %v1104_v29 = vmul.f32 %v7157_v12, %v9643_v16  ;;  %5009 = vpow2.f32 %v4451_v46  ;;  %v4453_v42 = vmul.f32 -1.442695, %v7415_v24  ;;  %v1847_v30 = vpack.c.bf16 %v1797_v31, %v1795_v15  ;;  %v9648_v46 = vld [vmem:[#allocation51_spill] sm:$0xff] }
 0x258   :  { %v1106_v2 = vmul.f32 %v7187_v10, %v9645_v55  ;;  %v4992_v14 = vpop.eup %4991  ;;  %v1572_v56 = vadd.f32 1.0, %v4990_v37  ;;  %5011 = vpow2.f32 %v4448_v3  ;;  %v4455_v60 = vmul.f32 -1.442695, %v7423_v48  ;;  %v9649_v3 = vld [vmem:[#allocation56_spill] sm:$0xff]  ;;  %v9651_v55 = vld [vmem:[#allocation47_spill] sm:$0xff] }
 0x259   :  { %v1191_v12 = vmul.f32 %v6437_v22, %v1104_v29  ;;  %v4994_v44 = vpop.eup %4993  ;;  %v1796_v36 = vmul.f32 %v4992_v14, %v7297_v43  ;;  %5013 = vpow2.f32 %v4450_v19  ;;  %2204 = vmatprep.mubr.bf16.mxu1 %v1847_v30  ;;  %v9647_v35 = vsub.f32 %v9646_v38, %v7110_v40 }
 0x25a   :  { %v1193_v49 = vmul.f32 %v6437_v22, %v1106_v2  ;;  %v4996_v9 = vpop.eup %4995  ;;  %5015 = vrcp.f32 %v1572_v56  ;;  %v1575_v5 = vadd.f32 1.0, %v4994_v44  ;;  %v9650_v51 = vsub.f32 %v9648_v46, %v9649_v3 }
 0x25b   :  { %v7436_v10 = vadd.f32 %v6443_v59, %v1191_v12  ;;  %v1109_v11 = vmul.f32 %v7217_v39, %v9647_v35  ;;  %v4998_v63 = vpop.eup %4997  ;;  %v1846_v19 = vpack.c.bf16 %v1796_v36, %v1794_v27  ;;  %v1577_v8 = vadd.f32 1.0, %v4996_v9  ;;  %v9653_v12 = vld [vmem:[#allocation50_spill] sm:$0xff] }
 0x25c   :  { %v1111_v43 = vmul.f32 %v7246_v4, %v9650_v51  ;;  %5017 = vpow2.f32 %v4453_v42  ;;  %v7447_v13 = vadd.f32 %v6443_v59, %v1193_v49  ;;  %v5000_v52 = vpop.eup %4999  ;;  %v1574_v53 = vadd.f32 1.0, %v4998_v63 }
 0x25d   :  { %5019 = vrcp.f32 %v1575_v5  ;;  %v4452_v32 = vmul.f32 -1.442695, %v7436_v10  ;;  %v1196_v50 = vmul.f32 %v6440_v41, %v1109_v11  ;;  %v5002_v15 = vpop.eup %5001  ;;  %v1799_v23 = vmul.f32 %v5000_v52, %v7307_v47  ;;  %2205 = vmatmul.mubr.bf16.gmra.mrb[84].mxu1 %v1846_v19  ;;  %v9656_v19 = vld [vmem:[#allocation59_spill] sm:$0xff] }
 0x25e   :  { %5021 = vrcp.f32 %v1577_v8  ;;  %v4454_v16 = vmul.f32 -1.442695, %v7447_v13  ;;  %v1198_v29 = vmul.f32 %v6440_v41, %v1111_v43  ;;  %v5004_v62 = vpop.eup %5003  ;;  %v1576_v31 = vadd.f32 1.0, %v5002_v15 }
 0x25f   :  { %5023 = vrcp.f32 %v1574_v53  ;;  %v7455_v6 = vadd.f32 %v6448_v1, %v1196_v50  ;;  %v9652_v2 = vsub.f32 %v9651_v55, %v7110_v40  ;;  %v5006_v27 = vpop.eup %5005  ;;  %v1579_v42 = vadd.f32 1.0, %v5004_v62 }
 0x260   :  { %5025 = vpow2.f32 %v4455_v60  ;;  %v7462_v47 = vadd.f32 %v6448_v1, %v1198_v29  ;;  %v9654_v14 = vsub.f32 %v9653_v12, %v9649_v3  ;;  %v5008_v56 = vpop.eup %5007  ;;  %v1801_v44 = vmul.f32 %v5006_v27, %v7311_v25  ;;  %v9658_v29 = vld [vmem:[#allocation55_spill] sm:$0xff] }
 0x261   :  { %v1108_v37 = vmul.f32 %v7217_v39, %v9652_v2  ;;  %5027 = vrcp.f32 %v1576_v31  ;;  %v4457_v36 = vmul.f32 -1.442695, %v7455_v6  ;;  %v5010_v39 = vpop.eup %5009  ;;  %v1798_v49 = vmul.f32 %v5008_v56, %v7314_v58 }
 0x262   :  { %v1110_v30 = vmul.f32 %v7246_v4, %v9654_v14  ;;  %5029 = vrcp.f32 %v1579_v42  ;;  %v4459_v60 = vmul.f32 -1.442695, %v7462_v47  ;;  %v5012_v5 = vpop.eup %5011  ;;  %v1849_v38 = vpack.c.bf16 %v1801_v44, %v1799_v23 }
 0x263   :  { %v1195_v40 = vmul.f32 %v6437_v22, %v1108_v37  ;;  %v1581_v35 = vadd.f32 1.0, %v5010_v39  ;;  %5031 = vpow2.f32 %v4452_v32  ;;  %v5014_v25 = vpop.eup %5013  ;;  %v1578_v11 = vadd.f32 1.0, %v5012_v5 }
 0x264   :  { %v1197_v9 = vmul.f32 %v6437_v22, %v1110_v30  ;;  %5033 = vpow2.f32 %v4454_v16  ;;  %v9655_v58 = vsub.f32 %v9597_v7, %v7169_v20  ;;  %v5016_v51 = vpop.eup %5015  ;;  %2214 = vmatprep.mubr.bf16.mxu1 %v1849_v38  ;;  %v1580_v43 = vadd.f32 1.0, %v5014_v25 }
 0x265   :  { %v7475_v4 = vadd.f32 %v6443_v59, %v1195_v40  ;;  %5035 = vrcp.f32 %v1581_v35  ;;  %v9657_v8 = vsub.f32 %v9656_v19, %v7172_v61  ;;  %v1800_v32 = vmul.f32 %v5016_v51, %v7317_v17 }
 0x266   :  { %v7478_v46 = vadd.f32 %v6443_v59, %v1197_v9  ;;  %v1113_v3 = vmul.f32 %v7294_v26, %v9655_v58  ;;  %v5018_v53 = vpop.eup %5017  ;;  %5037 = vrcp.f32 %v1578_v11  ;;  %v9659_v62 = vsub.f32 %v9658_v29, %v7169_v20 }
 0x267   :  { %v4456_v63 = vmul.f32 -1.442695, %v7475_v4  ;;  %v1115_v52 = vmul.f32 %v7324_v54, %v9657_v8  ;;  %v5020_v15 = vpop.eup %5019  ;;  %5039 = vrcp.f32 %v1580_v43  ;;  %v1583_v23 = vadd.f32 1.0, %v5018_v53 }
 0x268   :  { %v4458_v50 = vmul.f32 -1.442695, %v7478_v46  ;;  %v1200_v7 = vmul.f32 %v6440_v41, %v1113_v3  ;;  %v1112_v31 = vmul.f32 %v7294_v26, %v9659_v62  ;;  %v5022_v55 = vpop.eup %5021  ;;  %v1848_v2 = vpack.c.bf16 %v1800_v32, %v1798_v49 }
 0x269   :  { %v1202_v16 = vmul.f32 %v6440_v41, %v1115_v52  ;;  %v1803_v37 = vmul.f32 %v5020_v15, %v7344_v28  ;;  %5041 = vpow2.f32 %v4457_v36  ;;  %v5024_v27 = vpop.eup %5023  ;;  %v1805_v42 = vmul.f32 %v5022_v55, %v7351_v0  ;;  %v9660_v41 = vld [vmem:[#allocation58_spill] sm:$0xff] }
 0x26a   :  { %v7499_v17 = vadd.f32 %v6448_v1, %v1200_v7  ;;  %5043 = vrcp.f32 %v1583_v23  ;;  %v9661_v20 = vsub.f32 %v9660_v41, %v7172_v61  ;;  %v5026_v14 = vpop.eup %5025  ;;  %2215 = vmatmul.mubr.bf16.gmra.mrb[88].mxu1 %v1848_v2  ;;  %v1802_v28 = vmul.f32 %v5024_v27, %v7355_v57 }
 0x26b   :  { %v7503_v12 = vadd.f32 %v6448_v1, %v1202_v16  ;;  %5045 = vpow2.f32 %v4459_v60  ;;  %v1199_v56 = vmul.f32 %v6437_v22, %v1112_v31  ;;  %v5028_v44 = vpop.eup %5027  ;;  %v1851_v0 = vpack.c.bf16 %v1805_v42, %v1803_v37 }
 0x26c   :  { %v1114_v26 = vmul.f32 %v7324_v54, %v9661_v20  ;;  %v4461_v30 = vmul.f32 -1.442695, %v7499_v17  ;;  %v1585_v36 = vadd.f32 1.0, %v5026_v14  ;;  %5047 = vpow2.f32 %v4456_v63  ;;  %v5030_v40 = vpop.eup %5029 }
 0x26d   :  { %v4463_v1 = vmul.f32 -1.442695, %v7503_v12  ;;  %v1804_v61 = vmul.f32 %v5028_v44, %v7358_v34  ;;  %5049 = vpow2.f32 %v4458_v50  ;;  %v7516_v39 = vadd.f32 %v6443_v59, %v1199_v56  ;;  %v5032_v57 = vpop.eup %5031  ;;  %2224 = vmatprep.mubr.bf16.mxu1 %v1851_v0 }
 0x26e   :  { %v1201_v54 = vmul.f32 %v6437_v22, %v1114_v26  ;;  %5051 = vrcp.f32 %v1585_v36  ;;  %v5034_v49 = vpop.eup %5033  ;;  %v1582_v9 = vadd.f32 1.0, %v5032_v57  ;;  %v1807_v22 = vmul.f32 %v5030_v40, %v7394_v45 }
 0x26f   :  { %v1850_v60 = vpack.c.bf16 %v1804_v61, %v1802_v28  ;;  %5053 = vpow2.f32 %v4461_v30  ;;  %v5036_v38 = vpop.eup %5035  ;;  %v1584_v35 = vadd.f32 1.0, %v5034_v49  ;;  %v4460_v34 = vmul.f32 -1.442695, %v7516_v39 }
 0x270   :  { %v7519_v5 = vadd.f32 %v6443_v59, %v1201_v54  ;;  %5055 = vpow2.f32 %v4463_v1  ;;  %v5038_v25 = vpop.eup %5037  ;;  %v1809_v11 = vmul.f32 %v5036_v38, %v7397_v33 }
 0x271   :  { %5057 = vrcp.f32 %v1582_v9  ;;  %v5040_v3 = vpop.eup %5039  ;;  %v1806_v59 = vmul.f32 %v5038_v25, %v7400_v21 }
 0x272   :  { %v4462_v58 = vmul.f32 -1.442695, %v7519_v5  ;;  %5059 = vrcp.f32 %v1584_v35  ;;  %2225 = vmatmul.mubr.bf16.gmra.mrb[92].mxu1 %v1850_v60  ;;  %v1853_v43 = vpack.c.bf16 %v1809_v11, %v1807_v22  ;;  %v1808_v63 = vmul.f32 %v5040_v3, %v7403_v18 }
 0x273   :  { %v5042_v51 = vpop.eup %5041  ;;  %5061 = vpow2.f32 %v4460_v34 }
 0x274   :  { %v5044_v19 = vpop.eup %5043  ;;  %v1587_v8 = vadd.f32 1.0, %v5042_v51  ;;  %5063 = vpow2.f32 %v4462_v58  ;;  %2234 = vmatprep.mubr.bf16.mxu1 %v1853_v43  ;;  %v1852_v45 = vpack.c.bf16 %v1808_v63, %v1806_v59 }
 0x275   :  { %v5046_v52 = vpop.eup %5045  ;;  %v1811_v21 = vmul.f32 %v5044_v19, %v7415_v24 }
 0x276   :  { %v5048_v33 = vpop.eup %5047  ;;  %v1589_v53 = vadd.f32 1.0, %v5046_v52  ;;  %5065 = vrcp.f32 %v1587_v8 }
 0x277   :  { %v5050_v32 = vpop.eup %5049  ;;  %v1586_v50 = vadd.f32 1.0, %v5048_v33 }
 0x278   :  { %v5052_v7 = vpop.eup %5051  ;;  %5067 = vrcp.f32 %v1589_v53  ;;  %v1588_v15 = vadd.f32 1.0, %v5050_v32 }
 0x279   :  { %v5054_v23 = vpop.eup %5053  ;;  %v1813_v18 = vmul.f32 %v5052_v7, %v7423_v48  ;;  %5069 = vrcp.f32 %v1586_v50 }
 0x27a   :  { %v5056_v16 = vpop.eup %5055  ;;  %5071 = vrcp.f32 %v1588_v15  ;;  %v1591_v29 = vadd.f32 1.0, %v5054_v23  ;;  %2235 = vmatmul.mubr.bf16.gmra.mrb[96].mxu1 %v1852_v45 }
 0x27b   :  { %v5058_v62 = vpop.eup %5057  ;;  %v1855_v31 = vpack.c.bf16 %v1813_v18, %v1811_v21  ;;  %v1593_v55 = vadd.f32 1.0, %v5056_v16 }
 0x27c   :  { %v5060_v2 = vpop.eup %5059  ;;  %5073 = vrcp.f32 %v1591_v29  ;;  %v1810_v27 = vmul.f32 %v5058_v62, %v7436_v10 }
 0x27d   :  { %v5062_v37 = vpop.eup %5061  ;;  %2244 = vmatprep.mubr.bf16.mxu1 %v1855_v31  ;;  %v1812_v42 = vmul.f32 %v5060_v2, %v7447_v13  ;;  %5075 = vrcp.f32 %v1593_v55 }
 0x27e   :  { %v5064_v24 = vpop.eup %5063  ;;  %v1590_v41 = vadd.f32 1.0, %v5062_v37 }
 0x27f   :  { %v1854_v48 = vpack.c.bf16 %v1812_v42, %v1810_v27  ;;  %v1592_v20 = vadd.f32 1.0, %v5064_v24 }
 0x280   :  { %v5066_v26 = vpop.eup %5065  ;;  %5077 = vrcp.f32 %v1590_v41 }
 0x281   :  { %5079 = vrcp.f32 %v1592_v20  ;;  %v1815_v30 = vmul.f32 %v5066_v26, %v7455_v6 }
 0x282   :  { %v5068_v14 = vpop.eup %5067  ;;  %2245 = vmatmul.mubr.bf16.gmra.mrb[100].mxu1 %v1854_v48 }
 0x283   :  { %v5070_v28 = vpop.eup %5069  ;;  %v1817_v56 = vmul.f32 %v5068_v14, %v7462_v47 }
 0x284   :  { %v5072_v44 = vpop.eup %5071  ;;  %v1814_v10 = vmul.f32 %v5070_v28, %v7475_v4  ;;  %v7539_v4 = vpop.f32.mrb[36].mxu1 }
 0x285   :  { %v1857_v0 = vpack.c.bf16 %v1817_v56, %v1815_v30  ;;  %v1816_v13 = vmul.f32 %v5072_v44, %v7478_v46  ;;  %v7541_v9 = vpop.f32.mrb[37].mxu1  ;;  %v2429_v38 = vmul.f32 %v7539_v4, %v7539_v4 }
 0x286   :  { %v5074_v36 = vpop.eup %5073  ;;  %v2430_v35 = vmul.f32 %v7541_v9, %v7541_v9 }
 0x287   :  { %v5076_v1 = vpop.eup %5075  ;;  %2254 = vmatprep.mubr.bf16.mxu1 %v1857_v0  ;;  %v1856_v40 = vpack.c.bf16 %v1816_v13, %v1814_v10  ;;  %v1819_v61 = vmul.f32 %v5074_v36, %v7499_v17  ;;  %v7545_v17 = vpop.f32.mrb[38].mxu1 }
 0x288   :  { %v1821_v54 = vmul.f32 %v5076_v1, %v7503_v12  ;;  %v2277_v12 = vadd.f32 %v7541_v9, %v7539_v4  ;;  %v7551_v34 = vpop.f32.mrb[39].mxu1  ;;  %v2505_v25 = vadd.f32 %v2430_v35, %v2429_v38 }
 0x289   :  { %v2432_v22 = vmul.f32 %v7551_v34, %v7551_v34 }
 0x28a   :  { %v5078_v57 = vpop.eup %5077  ;;  %v1859_v49 = vpack.c.bf16 %v1821_v54, %v1819_v61  ;;  %2255 = vmatmul.mubr.bf16.gmra.mrb[104].mxu1 %v1856_v40  ;;  %2278 = vadd.xlane.f32.xlu0 %v2277_v12  ;;  %v4685_v61 = vld [vmem:[%s9173_s7] sm:$0xff]  }
 0x28b   :  { %v5080_v60 = vpop.eup %5079  ;;  %v1818_v6 = vmul.f32 %v5078_v57, %v7516_v39  ;;  %v2431_v39 = vmul.f32 %v7545_v17, %v7545_v17  ;;  %3872 = vmatpush1.bf16.msra.mxu0 %v4685_v61 }
 0x28c   :  { %2264 = vmatprep.mubr.bf16.mxu1 %v1859_v49  ;;  %v1820_v47 = vmul.f32 %v5080_v60, %v7519_v5  ;;  %v2280_v5 = vadd.f32 %v7551_v34, %v7545_v17 }
 0x28d   :  { %v2508_v11 = vadd.f32 %v2432_v22, %v2431_v39 }
 0x28e   :  { %v1858_v46 = vpack.c.bf16 %v1820_v47, %v1818_v6  ;;  %2281 = vadd.xlane.f32.xlu1 %v2280_v5  ;;  %2506 = vadd.xlane.f32.xlu0 %v2505_v25  ;;  %v9662_v6 = vmov 0   ;;  %v4686_v47 = vld [vmem:[%s9173_s7 + $0x8] sm:$0xff]  }
 0x28f   :  { %3873 = vmatprep.subr.bf16.mxu0 %v9662_v6 }
 0x290   :  { %3874 = vmatpush1.bf16.msra.mxu0 %v4686_v47 }
 0x291   :  { %3875 = vmatprep.subr.bf16.mxu0 %v9662_v6 }
 0x292   :  { %2265 = vmatmul.mubr.bf16.gmra.mrb[108].mxu1 %v1858_v46  ;;  %2509 = vadd.xlane.f32.xlu1 %v2508_v11  ;;  %v4687_v11 = vld [vmem:[%s9173_s7 + $0x10] sm:$0xff]  }
 0x294   :  { %3876 = vmatpush1.bf16.msra.mxu0 %v4687_v11 }
 0x295   :  { %3877 = vmatprep.subr.bf16.mxu0 %v9662_v6 }
 0x296   :  { %v7559_v58 = vpop.f32.mrb[40].mxu1 }
 0x297   :  { %v7561_v3 = vpop.f32.mrb[41].mxu1  ;;  %v2433_v51 = vmul.f32 %v7559_v58, %v7559_v58 }
 0x298   :  { %v7565_v43 = vpop.f32.mrb[42].mxu1  ;;  %v2283_v59 = vadd.f32 %v7561_v3, %v7559_v58  ;;  %v2434_v63 = vmul.f32 %v7561_v3, %v7561_v3 }
 0x299   :  { %v7571_v19 = vpop.f32.mrb[43].mxu1  ;;  %v2435_v8 = vmul.f32 %v7565_v43, %v7565_v43 }
 0x29a   :  { %2284 = vadd.xlane.f32.xlu0 %v2283_v59  ;;  %v2286_v52 = vadd.f32 %v7571_v19, %v7565_v43  ;;  %v2511_v45 = vadd.f32 %v2434_v63, %v2433_v51  ;;  %v2436_v33 = vmul.f32 %v7571_v19, %v7571_v19 }
 0x29c   :  { %2287 = vadd.xlane.f32.xlu1 %v2286_v52  ;;  %v2514_v53 = vadd.f32 %v2436_v33, %v2435_v8  ;;  %v4688_v52 = vld [vmem:[%s9173_s7 + $0x18] sm:$0xff]   ;;  %v4689_v33 = vld [vmem:[%s9173_s7 + $0x20] sm:$0xff]  }
 0x29d   :  { %3878 = vmatpush1.bf16.msra.mxu0 %v4688_v52 }
 0x29e   :  { %2512 = vadd.xlane.f32.xlu0 %v2511_v45  ;;  %3879 = vmatprep.subr.bf16.mxu0 %v9662_v6 }
 0x2a0   :  { %2515 = vadd.xlane.f32.xlu1 %v2514_v53 }
 0x2a1   :  { %3880 = vmatpush1.bf16.msra.mxu0 %v4689_v33 }
 0x2a2   :  { %3881 = vmatprep.subr.bf16.mxu0 %v9662_v6 }
 0x2a9   :  { %v7579_v32 = vpop.f32.mrb[44].mxu1 }
 0x2aa   :  { %v7581_v50 = vpop.f32.mrb[45].mxu1  ;;  %v2437_v7 = vmul.f32 %v7579_v32, %v7579_v32 }
 0x2ab   :  { %v7585_v15 = vpop.f32.mrb[46].mxu1  ;;  %v2289_v23 = vadd.f32 %v7581_v50, %v7579_v32  ;;  %v2438_v21 = vmul.f32 %v7581_v50, %v7581_v50 }
 0x2ac   :  { %v7591_v18 = vpop.f32.mrb[47].mxu1  ;;  %v2439_v16 = vmul.f32 %v7585_v15, %v7585_v15 }
 0x2ad   :  { %2290 = vadd.xlane.f32.xlu0 %v2289_v23  ;;  %v2292_v29 = vadd.f32 %v7591_v18, %v7585_v15  ;;  %v2517_v62 = vadd.f32 %v2438_v21, %v2437_v7  ;;  %v2440_v31 = vmul.f32 %v7591_v18, %v7591_v18 }
 0x2af   :  { %2293 = vadd.xlane.f32.xlu1 %v2292_v29  ;;  %v2520_v55 = vadd.f32 %v2440_v31, %v2439_v16  ;;  %v4690_v29 = vld [vmem:[%s9173_s7 + $0x28] sm:$0xff]  }
 0x2b0   :  { %3882 = vmatpush1.bf16.msra.mxu0 %v4690_v29  ;;  %v4697_v29 = vld [vmem:[%s9173_s7 + $0x60] sm:$0xff]  }
 0x2b1   :  { %2518 = vadd.xlane.f32.xlu0 %v2517_v62  ;;  %3883 = vmatprep.subr.bf16.mxu0 %v9662_v6 }
 0x2b3   :  { %2521 = vadd.xlane.f32.xlu1 %v2520_v55 }
 0x2b9   :  { %v7599_v2 = vpop.f32.mrb[48].mxu1 }
 0x2ba   :  { %v7601_v37 = vpop.f32.mrb[49].mxu1  ;;  %v2441_v27 = vmul.f32 %v7599_v2, %v7599_v2 }
 0x2bb   :  { %v7605_v42 = vpop.f32.mrb[50].mxu1  ;;  %v2295_v24 = vadd.f32 %v7601_v37, %v7599_v2  ;;  %v2442_v41 = vmul.f32 %v7601_v37, %v7601_v37 }
 0x2bc   :  { %v7611_v48 = vpop.f32.mrb[51].mxu1  ;;  %v2443_v20 = vmul.f32 %v7605_v42, %v7605_v42 }
 0x2bd   :  { %2296 = vadd.xlane.f32.xlu0 %v2295_v24  ;;  %v2298_v26 = vadd.f32 %v7611_v48, %v7605_v42  ;;  %v2523_v14 = vadd.f32 %v2442_v41, %v2441_v27  ;;  %v2444_v28 = vmul.f32 %v7611_v48, %v7611_v48 }
 0x2bf   :  { %2299 = vadd.xlane.f32.xlu1 %v2298_v26  ;;  %v2526_v30 = vadd.f32 %v2444_v28, %v2443_v20  ;;  %v4691_v20 = vld [vmem:[%s9173_s7 + $0x30] sm:$0xff]   ;;  %v4692_v26 = vld [vmem:[%s9173_s7 + $0x38] sm:$0xff]  }
 0x2c0   :  { %3884 = vmatpush1.bf16.msra.mxu0 %v4691_v20  ;;  %v4699_v20 = vld [vmem:[%s9173_s7 + $0x70] sm:$0xff]  }
 0x2c1   :  { %2524 = vadd.xlane.f32.xlu0 %v2523_v14  ;;  %3885 = vmatprep.subr.bf16.mxu0 %v9662_v6 }
 0x2c3   :  { %2527 = vadd.xlane.f32.xlu1 %v2526_v30 }
 0x2c4   :  { %3886 = vmatpush1.bf16.msra.mxu0 %v4692_v26 }
 0x2c5   :  { %3887 = vmatprep.subr.bf16.mxu0 %v9662_v6 }
 0x2c9   :  { %v7619_v56 = vpop.f32.mrb[52].mxu1 }
 0x2ca   :  { %v7621_v44 = vpop.f32.mrb[53].mxu1  ;;  %v2445_v0 = vmul.f32 %v7619_v56, %v7619_v56 }
 0x2cb   :  { %v7625_v10 = vpop.f32.mrb[54].mxu1  ;;  %v2301_v13 = vadd.f32 %v7621_v44, %v7619_v56  ;;  %v2446_v36 = vmul.f32 %v7621_v44, %v7621_v44 }
 0x2cc   :  { %v7631_v1 = vpop.f32.mrb[55].mxu1  ;;  %v2447_v40 = vmul.f32 %v7625_v10, %v7625_v10 }
 0x2cd   :  { %2302 = vadd.xlane.f32.xlu0 %v2301_v13  ;;  %v2304_v54 = vadd.f32 %v7631_v1, %v7625_v10  ;;  %v2529_v57 = vadd.f32 %v2446_v36, %v2445_v0  ;;  %v2448_v49 = vmul.f32 %v7631_v1, %v7631_v1 }
 0x2cf   :  { %2305 = vadd.xlane.f32.xlu1 %v2304_v54  ;;  %v2532_v60 = vadd.f32 %v2448_v49, %v2447_v40  ;;  %v4693_v54 = vld [vmem:[%s9173_s7 + $0x40] sm:$0xff]  }
 0x2d0   :  { %3888 = vmatpush1.bf16.msra.mxu0 %v4693_v54 }
 0x2d1   :  { %2530 = vadd.xlane.f32.xlu0 %v2529_v57  ;;  %3889 = vmatprep.subr.bf16.mxu0 %v9662_v6 }
 0x2d3   :  { %2533 = vadd.xlane.f32.xlu1 %v2532_v60 }
 0x2d5   :  { %v7646_v46 = vpop.f32.mrb[56].mxu1 }
 0x2d6   :  { %v2449_v38 = vmul.f32 %v7646_v46, %v7646_v46  ;;  %v7651_v12 = vpop.f32.mrb[57].mxu1 }
 0x2d7   :  { %v2450_v35 = vmul.f32 %v7651_v12, %v7651_v12  ;;  %v7655_v39 = vpop.f32.mrb[58].mxu1  ;;  %v2307_v5 = vadd.f32 %v7651_v12, %v7646_v46 }
 0x2d8   :  { %v2451_v25 = vmul.f32 %v7655_v39, %v7655_v39  ;;  %v7661_v22 = vpop.f32.mrb[59].mxu1 }
 0x2d9   :  { %v2452_v51 = vmul.f32 %v7661_v22, %v7661_v22  ;;  %2308 = vadd.xlane.f32.xlu0 %v2307_v5  ;;  %v2310_v59 = vadd.f32 %v7661_v22, %v7655_v39  ;;  %v2535_v63 = vadd.f32 %v2450_v35, %v2449_v38  ;;  %v4694_v38 = vld [vmem:[%s9173_s7 + $0x48] sm:$0xff]   ;;  %v4695_v35 = vld [vmem:[%s9173_s7 + $0x50] sm:$0xff]  }
 0x2da   :  { %3890 = vmatpush1.bf16.msra.mxu0 %v4694_v38 }
 0x2db   :  { %2311 = vadd.xlane.f32.xlu1 %v2310_v59  ;;  %v2538_v8 = vadd.f32 %v2452_v51, %v2451_v25  ;;  %3891 = vmatprep.subr.bf16.mxu0 %v9662_v6  ;;  %v4696_v25 = vld [vmem:[%s9173_s7 + $0x58] sm:$0xff]  }
 0x2dd   :  { %2536 = vadd.xlane.f32.xlu0 %v2535_v63 }
 0x2de   :  { %3892 = vmatpush1.bf16.msra.mxu0 %v4695_v35 }
 0x2df   :  { %2539 = vadd.xlane.f32.xlu1 %v2538_v8  ;;  %3893 = vmatprep.subr.bf16.mxu0 %v9662_v6 }
 0x2e2   :  { %3894 = vmatpush1.bf16.msra.mxu0 %v4696_v25 }
 0x2e3   :  { %3895 = vmatprep.subr.bf16.mxu0 %v9662_v6 }
 0x2e4   :  { %v7675_v45 = vpop.f32.mrb[60].mxu1 }
 0x2e5   :  { %v2453_v53 = vmul.f32 %v7675_v45, %v7675_v45  ;;  %v7682_v7 = vpop.f32.mrb[61].mxu1 }
 0x2e6   :  { %v2313_v23 = vadd.f32 %v7682_v7, %v7675_v45  ;;  %v2454_v21 = vmul.f32 %v7682_v7, %v7682_v7  ;;  %v7688_v16 = vpop.f32.mrb[62].mxu1  ;;  %3896 = vmatpush1.bf16.msra.mxu0 %v4697_v29 }
 0x2e7   :  { %v2455_v62 = vmul.f32 %v7688_v16, %v7688_v16  ;;  %v7695_v31 = vpop.f32.mrb[63].mxu1  ;;  %3897 = vmatprep.subr.bf16.mxu0 %v9662_v6 }
 0x2e8   :  { %v2316_v55 = vadd.f32 %v7695_v31, %v7688_v16  ;;  %v2456_v27 = vmul.f32 %v7695_v31, %v7695_v31  ;;  %2314 = vadd.xlane.f32.xlu0 %v2313_v23  ;;  %v2541_v24 = vadd.f32 %v2454_v21, %v2453_v53 }
 0x2ea   :  { %2317 = vadd.xlane.f32.xlu1 %v2316_v55  ;;  %v2544_v41 = vadd.f32 %v2456_v27, %v2455_v62  ;;  %v4698_v55 = vld [vmem:[%s9173_s7 + $0x68] sm:$0xff]  }
 0x2eb   :  { %3898 = vmatpush1.bf16.msra.mxu0 %v4698_v55 }
 0x2ec   :  { %2542 = vadd.xlane.f32.xlu0 %v2541_v24  ;;  %3899 = vmatprep.subr.bf16.mxu0 %v9662_v6 }
 0x2ee   :  { %2545 = vadd.xlane.f32.xlu1 %v2544_v41 }
 0x2ef   :  { %v7709_v14 = vpop.f32.mrb[64].mxu1  ;;  %3900 = vmatpush1.bf16.msra.mxu0 %v4699_v20 }
 0x2f0   :  { %9663 = vst [vmem:[#allocation3_spill] sm:$0xff] %v7709_v14  ;;  %v2457_v28 = vmul.f32 %v7709_v14, %v7709_v14  ;;  %v7714_v30 = vpop.f32.mrb[65].mxu1  ;;  %3901 = vmatprep.subr.bf16.mxu0 %v9662_v6 }
 0x2f1   :  { %9664 = vst [vmem:[#allocation7_spill] sm:$0xff] %v7714_v30  ;;  %v2319_v0 = vadd.f32 %v7714_v30, %v7709_v14  ;;  %v2458_v13 = vmul.f32 %v7714_v30, %v7714_v30  ;;  %v7720_v36 = vpop.f32.mrb[66].mxu1 }
 0x2f2   :  { %9665 = vst [vmem:[#allocation28_spill] sm:$0xff] %v7720_v36  ;;  %v2459_v40 = vmul.f32 %v7720_v36, %v7720_v36  ;;  %v7724_v61 = vpop.f32.mrb[67].mxu1 }
 0x2f3   :  { %9666 = vst [vmem:[#allocation30_spill] sm:$0xff] %v7724_v61  ;;  %v2322_v57 = vadd.f32 %v7724_v61, %v7720_v36  ;;  %v2460_v49 = vmul.f32 %v7724_v61, %v7724_v61  ;;  %2320 = vadd.xlane.f32.xlu0 %v2319_v0  ;;  %v2547_v60 = vadd.f32 %v2458_v13, %v2457_v28 }
 0x2f5   :  { %2323 = vadd.xlane.f32.xlu1 %v2322_v57  ;;  %v2550_v47 = vadd.f32 %v2460_v49, %v2459_v40 }
 0x2f7   :  { %2548 = vadd.xlane.f32.xlu0 %v2547_v60  ;;  %v4700_v60 = vld [vmem:[%s9173_s7 + $0x78] sm:$0xff]  }
 0x2f8   :  { %3902 = vmatpush1.bf16.msra.mxu0 %v4700_v60 }
 0x2f9   :  { %2551 = vadd.xlane.f32.xlu1 %v2550_v47 }
 0x2fe   :  { %v7742_v5 = vpop.f32.mrb[68].mxu1 }
 0x2ff   :  { %9667 = vst [vmem:[#allocation19_spill] sm:$0xff] %v7742_v5  ;;  %v2461_v11 = vmul.f32 %v7742_v5, %v7742_v5  ;;  %v7749_v51 = vpop.f32.mrb[69].mxu1 }
 0x300   :  { %9668 = vst [vmem:[#allocation37_spill] sm:$0xff] %v7749_v51  ;;  %v2325_v59 = vadd.f32 %v7749_v51, %v7742_v5  ;;  %v2462_v63 = vmul.f32 %v7749_v51, %v7749_v51  ;;  %v7756_v8 = vpop.f32.mrb[70].mxu1 }
 0x301   :  { %9669 = vst [vmem:[#allocation14_spill] sm:$0xff] %v7756_v8  ;;  %v2463_v52 = vmul.f32 %v7756_v8, %v7756_v8  ;;  %v7760_v33 = vpop.f32.mrb[71].mxu1 }
 0x302   :  { %9670 = vst [vmem:[#allocation40_spill] sm:$0xff] %v7760_v33  ;;  %v2328_v53 = vadd.f32 %v7760_v33, %v7756_v8  ;;  %v2464_v23 = vmul.f32 %v7760_v33, %v7760_v33  ;;  %2326 = vadd.xlane.f32.xlu0 %v2325_v59  ;;  %v2553_v21 = vadd.f32 %v2462_v63, %v2461_v11 }
 0x304   :  { %2329 = vadd.xlane.f32.xlu1 %v2328_v53  ;;  %v2556_v62 = vadd.f32 %v2464_v23, %v2463_v52 }
 0x306   :  { %2554 = vadd.xlane.f32.xlu0 %v2553_v21 }
 0x308   :  { %2557 = vadd.xlane.f32.xlu1 %v2556_v62 }
 0x30a   :  { %v7774_v27 = vpop.f32.mrb[72].mxu1 }
 0x30b   :  { %9671 = vst [vmem:[#allocation16_spill] sm:$0xff] %v7774_v27  ;;  %v2465_v24 = vmul.f32 %v7774_v27, %v7774_v27  ;;  %v7778_v41 = vpop.f32.mrb[73].mxu1 }
 0x30c   :  { %9672 = vst [vmem:[#allocation36_spill] sm:$0xff] %v7778_v41  ;;  %v2331_v26 = vadd.f32 %v7778_v41, %v7774_v27  ;;  %v2466_v28 = vmul.f32 %v7778_v41, %v7778_v41  ;;  %v7787_v0 = vpop.f32.mrb[74].mxu1 }
 0x30d   :  { %9673 = vst [vmem:[#allocation38_spill] sm:$0xff] %v7787_v0  ;;  %v2467_v13 = vmul.f32 %v7787_v0, %v7787_v0  ;;  %v7792_v40 = vpop.f32.mrb[75].mxu1 }
 0x30e   :  { %9674 = vst [vmem:[#allocation26_spill] sm:$0xff] %v7792_v40  ;;  %v2334_v54 = vadd.f32 %v7792_v40, %v7787_v0  ;;  %v2468_v57 = vmul.f32 %v7792_v40, %v7792_v40  ;;  %2332 = vadd.xlane.f32.xlu0 %v2331_v26  ;;  %v2559_v49 = vadd.f32 %v2466_v28, %v2465_v24 }
 0x310   :  { %2335 = vadd.xlane.f32.xlu1 %v2334_v54  ;;  %v2562_v47 = vadd.f32 %v2468_v57, %v2467_v13 }
 0x312   :  { %2560 = vadd.xlane.f32.xlu0 %v2559_v49 }
 0x314   :  { %2563 = vadd.xlane.f32.xlu1 %v2562_v47 }
 0x317   :  { %v2279_v38 = vpop.xlane.xlu0 %2278 }
 0x318   :  { %v7802_v35 = vmul.f32 0.00390625, %v2279_v38 }
 0x31a   :  { %v7804_v25 = vpop.f32.mrb[76].mxu1  ;;  %v2657_v55 = vmul.f32 %v7802_v35, %v7802_v35 }
 0x31b   :  { %9675 = vst [vmem:[#allocation27_spill] sm:$0xff] %v7804_v25  ;;  %v2282_v11 = vpop.xlane.xlu1 %2281  ;;  %v2469_v59 = vmul.f32 %v7804_v25, %v7804_v25  ;;  %v7808_v63 = vpop.f32.mrb[77].mxu1 }
 0x31c   :  { %9676 = vst [vmem:[#allocation45_spill] sm:$0xff] %v7808_v63  ;;  %v7810_v52 = vmul.f32 0.00390625, %v2282_v11  ;;  %v2337_v53 = vadd.f32 %v7808_v63, %v7804_v25  ;;  %v2470_v6 = vmul.f32 %v7808_v63, %v7808_v63  ;;  %v7816_v23 = vpop.f32.mrb[78].mxu1  ;;  %v2507_v21 = vpop.xlane.xlu0 %2506 }
 0x31d   :  { %9677 = vst [vmem:[#allocation20_spill] sm:$0xff] %v7816_v23  ;;  %v2471_v29 = vmul.f32 %v7816_v23, %v7816_v23  ;;  %v7820_v62 = vpop.f32.mrb[79].mxu1  ;;  %v2619_v24 = vmul.f32 0.00390625, %v2507_v21 }
 0x31e   :  { %9678 = vst [vmem:[#allocation44_spill] sm:$0xff] %v7820_v62  ;;  %v2340_v20 = vadd.f32 %v7820_v62, %v7816_v23  ;;  %v2472_v26 = vmul.f32 %v7820_v62, %v7820_v62  ;;  %2338 = vadd.xlane.f32.xlu0 %v2337_v53  ;;  %v2565_v28 = vadd.f32 %v2470_v6, %v2469_v59 }
 0x31f   :  { %v2510_v13 = vpop.xlane.xlu1 %2509  ;;  %v2695_v54 = vsub.f32 %v2619_v24, %v2657_v55  ;;  %v2658_v57 = vmul.f32 %v7810_v52, %v7810_v52 }
 0x320   :  { %v2620_v49 = vmul.f32 0.00390625, %v2510_v13  ;;  %2341 = vadd.xlane.f32.xlu1 %v2340_v20  ;;  %v2568_v60 = vadd.f32 %v2472_v26, %v2471_v29 }
 0x321   :  { %v2733_v47 = vmax.f32 %v2695_v54, 0.0  ;;  %v2275_v54 = vld [vmem:[%s9174_s5] sm:$0x3] }
 0x322   :  { %v2696_v38 = vsub.f32 %v2620_v49, %v2658_v57  ;;  %2566 = vadd.xlane.f32.xlu0 %v2565_v28 }
 0x323   :  { %v2847_v11 = vadd.f32 0.001, %v2733_v47  ;;  %v9683_v47 = vld [vmem:[#allocation62_spill] sm:$0xff] }
 0x324   :  { %v2734_v21 = vmax.f32 %v2696_v38, 0.0  ;;  %2569 = vadd.xlane.f32.xlu1 %v2568_v60  ;;  %v7859_v38 = vrot.slane %v2275_v54, %v9683_v47 }
 0x325   :  { %5081 = vrsqrt.f32 %v2847_v11 }
 0x326   :  { %v2848_v62 = vadd.f32 0.001, %v2734_v21 }
 0x327   :  { %v2285_v57 = vpop.xlane.xlu0 %2284 }
 0x328   :  { %v7830_v23 = vpop.f32.mrb[80].mxu1  ;;  %5083 = vrsqrt.f32 %v2848_v62  ;;  %v2276_v62 = vld [vmem:[%s9175_s6] sm:$0x3]  ;;  %v7856_v60 = vmul.f32 0.00390625, %v2285_v57  ;;  %v2772_v57 = vsub.f32 %v7541_v9, %v7802_v35 }
 0x329   :  { %9679 = vst [vmem:[#allocation34_spill] sm:$0xff] %v7830_v23  ;;  %v2473_v59 = vmul.f32 %v7830_v23, %v7830_v23  ;;  %v7834_v53 = vpop.f32.mrb[81].mxu1  ;;  %v2288_v11 = vpop.xlane.xlu1 %2287 }
 0x32a   :  { %9680 = vst [vmem:[#allocation35_spill] sm:$0xff] %v7834_v53  ;;  %v2343_v6 = vadd.f32 %v7834_v53, %v7830_v23  ;;  %v2474_v29 = vmul.f32 %v7834_v53, %v7834_v53  ;;  %v7840_v55 = vpop.f32.mrb[82].mxu1  ;;  %v2659_v9 = vmul.f32 %v7856_v60, %v7856_v60 }
 0x32b   :  { %9681 = vst [vmem:[#allocation54_spill] sm:$0xff] %v7840_v55  ;;  %v2475_v24 = vmul.f32 %v7840_v55, %v7840_v55  ;;  %v7844_v20 = vpop.f32.mrb[83].mxu1 }
 0x32c   :  { %9682 = vst [vmem:[#allocation41_spill] sm:$0xff] %v7844_v20  ;;  %v2346_v26 = vadd.f32 %v7844_v20, %v7840_v55  ;;  %v2476_v28 = vmul.f32 %v7844_v20, %v7844_v20  ;;  %2344 = vadd.xlane.f32.xlu0 %v2343_v6  ;;  %v2571_v13 = vadd.f32 %v2474_v29, %v2473_v59  ;;  %v7863_v59 = vmul.f32 0.00390625, %v2288_v11  ;;  %v9685_v6 = vld [vmem:[#allocation63_spill] sm:$0xff]  ;;  %v2513_v11 = vpop.xlane.xlu0 %2512 }
 0x32d   :  { %v7866_v29 = vrot.slane %v2275_v54, %v9685_v6  ;;  %v7869_v20 = vrot.slane %v2276_v62, %v9683_v47  ;;  %v2773_v54 = vsub.f32 %v7545_v17, %v7810_v52  ;;  %v2621_v23 = vmul.f32 0.00390625, %v2513_v11 }
 0x32e   :  { %2347 = vadd.xlane.f32.xlu1 %v2346_v26  ;;  %v2574_v49 = vadd.f32 %v2476_v28, %v2475_v24  ;;  %v7872_v26 = vrot.slane %v2276_v62, %v9685_v6 }
 0x32f   :  { %v5082_v47 = vpop.eup %5081  ;;  %v2697_v41 = vsub.f32 %v2621_v23, %v2659_v9 }
 0x330   :  { %2572 = vadd.xlane.f32.xlu0 %v2571_v13  ;;  %v7861_v21 = vpop.f32.mrb[84].mxu1  ;;  %v2771_v13 = vsub.f32 %v7539_v4, %v7802_v35  ;;  %v2774_v4 = vsub.f32 %v7551_v34, %v7810_v52 }
 0x331   :  { %9684 = vst [vmem:[#allocation43_spill] sm:$0xff] %v7861_v21  ;;  %v2477_v24 = vmul.f32 %v7861_v21, %v7861_v21  ;;  %v7876_v28 = vpop.f32.mrb[85].mxu1  ;;  %v2735_v51 = vmax.f32 %v2697_v41, 0.0 }
 0x332   :  { %9686 = vst [vmem:[#allocation21_spill] sm:$0xff] %v7876_v28  ;;  %v2349_v62 = vadd.f32 %v7876_v28, %v7861_v21  ;;  %v2478_v6 = vmul.f32 %v7876_v28, %v7876_v28  ;;  %2575 = vadd.xlane.f32.xlu1 %v2574_v49  ;;  %v7888_v55 = vpop.f32.mrb[86].mxu1  ;;  %v2923_v53 = vmul.f32 %v5082_v47, %v2771_v13  ;;  %v2516_v28 = vpop.xlane.xlu1 %2515 }
 0x333   :  { %9687 = vst [vmem:[#allocation60_spill] sm:$0xff] %v7888_v55  ;;  %v2479_v17 = vmul.f32 %v7888_v55, %v7888_v55  ;;  %v7896_v35 = vpop.f32.mrb[87].mxu1  ;;  %v2660_v21 = vmul.f32 %v7863_v59, %v7863_v59  ;;  %v5084_v49 = vpop.eup %5083  ;;  %v2622_v25 = vmul.f32 0.00390625, %v2516_v28  ;;  %v2924_v13 = vmul.f32 %v5082_v47, %v2772_v57 }
 0x334   :  { %9688 = vst [vmem:[#allocation61_spill] sm:$0xff] %v7896_v35  ;;  %v2352_v63 = vadd.f32 %v7896_v35, %v7888_v55  ;;  %v2480_v34 = vmul.f32 %v7896_v35, %v7896_v35  ;;  %2350 = vadd.xlane.f32.xlu0 %v2349_v62  ;;  %v2577_v52 = vadd.f32 %v2478_v6, %v2477_v24 }
 0x335   :  { %v3010_v40 = vmul.f32 %v7859_v38, %v2923_v53  ;;  %v2925_v0 = vmul.f32 %v5084_v49, %v2773_v54  ;;  %v2698_v27 = vsub.f32 %v2622_v25, %v2660_v21  ;;  %v2926_v33 = vmul.f32 %v5084_v49, %v2774_v4 }
 0x336   :  { %2353 = vadd.xlane.f32.xlu1 %v2352_v63  ;;  %v2580_v11 = vadd.f32 %v2480_v34, %v2479_v17  ;;  %v3011_v55 = vmul.f32 %v7866_v29, %v2924_v13  ;;  %v2849_v53 = vadd.f32 0.001, %v2735_v51 }
 0x337   :  { %v3012_v8 = vmul.f32 %v7859_v38, %v2925_v0  ;;  %v7908_v5 = vadd.f32 %v7869_v20, %v3010_v40  ;;  %v2736_v24 = vmax.f32 %v2698_v27, 0.0  ;;  %v3013_v28 = vmul.f32 %v7866_v29, %v2926_v33 }
 0x338   :  { %2578 = vadd.xlane.f32.xlu0 %v2577_v52  ;;  %v7912_v23 = vadd.f32 %v7872_v26, %v3011_v55  ;;  %5085 = vrsqrt.f32 %v2849_v53  ;;  %v2775_v53 = vsub.f32 %v7559_v58, %v7856_v60  ;;  %v2778_v58 = vsub.f32 %v7571_v19, %v7863_v59 }
 0x339   :  { %v7915_v63 = vadd.f32 %v7869_v20, %v3012_v8  ;;  %v2850_v25 = vadd.f32 0.001, %v2736_v24  ;;  %v7918_v41 = vadd.f32 %v7872_v26, %v3013_v28  ;;  %v4496_v27 = vmul.f32 -1.442695, %v7908_v5 }
 0x33a   :  { %2581 = vadd.xlane.f32.xlu1 %v2580_v11  ;;  %v4497_v40 = vmul.f32 -1.442695, %v7912_v23  ;;  %v2291_v17 = vpop.xlane.xlu0 %2290 }
 0x33b   :  { %5087 = vrsqrt.f32 %v2850_v25  ;;  %v4499_v8 = vmul.f32 -1.442695, %v7918_v41  ;;  %v4498_v55 = vmul.f32 -1.442695, %v7915_v63  ;;  %v7944_v34 = vmul.f32 0.00390625, %v2291_v17 }
 0x33c   :  { %5089 = vpow2.f32 %v4497_v40  ;;  %v2294_v52 = vpop.xlane.xlu1 %2293  ;;  %v2776_v25 = vsub.f32 %v7561_v3, %v7856_v60 }
 0x33d   :  { %v7920_v0 = vpop.f32.mrb[88].mxu1  ;;  %5091 = vpow2.f32 %v4499_v8  ;;  %v7948_v11 = vmul.f32 0.00390625, %v2294_v52  ;;  %v2661_v3 = vmul.f32 %v7944_v34, %v7944_v34 }
 0x33e   :  { %9689 = vst [vmem:[#allocation22_spill] sm:$0xff] %v7920_v0  ;;  %v2481_v51 = vmul.f32 %v7920_v0, %v7920_v0  ;;  %v7926_v33 = vpop.f32.mrb[89].mxu1  ;;  %5093 = vpow2.f32 %v4496_v27  ;;  %v2519_v27 = vpop.xlane.xlu0 %2518 }
 0x33f   :  { %9690 = vst [vmem:[#allocation5_spill] sm:$0xff] %v7926_v33  ;;  %v2355_v21 = vadd.f32 %v7926_v33, %v7920_v0  ;;  %v2482_v57 = vmul.f32 %v7926_v33, %v7926_v33  ;;  %v7934_v54 = vpop.f32.mrb[90].mxu1  ;;  %5095 = vpow2.f32 %v4498_v55 }
 0x340   :  { %9691 = vst [vmem:[#allocation24_spill] sm:$0xff] %v7934_v54  ;;  %v2483_v47 = vmul.f32 %v7934_v54, %v7934_v54  ;;  %v7938_v62 = vpop.f32.mrb[91].mxu1 }
 0x341   :  { %9692 = vst [vmem:[#allocation2_spill] sm:$0xff] %v7938_v62  ;;  %v2358_v6 = vadd.f32 %v7938_v62, %v7934_v54  ;;  %v2484_v4 = vmul.f32 %v7938_v62, %v7938_v62  ;;  %2356 = vadd.xlane.f32.xlu0 %v2355_v21  ;;  %v2583_v9 = vadd.f32 %v2482_v57, %v2481_v51 }
 0x342   :  { %v5086_v51 = vpop.eup %5085 }
 0x343   :  { %2359 = vadd.xlane.f32.xlu1 %v2358_v6  ;;  %v2586_v49 = vadd.f32 %v2484_v4, %v2483_v47  ;;  %v2623_v6 = vmul.f32 0.00390625, %v2519_v27  ;;  %v2662_v4 = vmul.f32 %v7948_v11, %v7948_v11  ;;  %v2928_v17 = vmul.f32 %v5086_v51, %v2776_v25 }
 0x344   :  { %v2927_v36 = vmul.f32 %v5086_v51, %v2775_v53 }
 0x345   :  { %2584 = vadd.xlane.f32.xlu0 %v2583_v9  ;;  %v7946_v13 = vpop.f32.mrb[92].mxu1  ;;  %v5088_v60 = vpop.eup %5087  ;;  %v2699_v62 = vsub.f32 %v2623_v6, %v2661_v3  ;;  %v3015_v27 = vmul.f32 %v7866_v29, %v2928_v17 }
 0x346   :  { %9693 = vst [vmem:[#allocation4_spill] sm:$0xff] %v7946_v13  ;;  %v2485_v24 = vmul.f32 %v7946_v13, %v7946_v13  ;;  %v7952_v28 = vpop.f32.mrb[93].mxu1  ;;  %v2522_v9 = vpop.xlane.xlu1 %2521  ;;  %v2930_v33 = vmul.f32 %v5088_v60, %v2778_v58  ;;  %v3014_v17 = vmul.f32 %v7859_v38, %v2927_v36  ;;  %v2780_v36 = vsub.f32 %v7581_v50, %v7944_v34 }
 0x347   :  { %9694 = vst [vmem:[#allocation57_spill] sm:$0xff] %v7952_v28  ;;  %v2361_v8 = vadd.f32 %v7952_v28, %v7946_v13  ;;  %v2486_v55 = vmul.f32 %v7952_v28, %v7952_v28  ;;  %2587 = vadd.xlane.f32.xlu1 %v2586_v49  ;;  %v7964_v21 = vpop.f32.mrb[94].mxu1  ;;  %v5090_v49 = vpop.eup %5089  ;;  %v2624_v28 = vmul.f32 0.00390625, %v2522_v9  ;;  %v7985_v3 = vadd.f32 %v7872_v26, %v3015_v27 }
 0x348   :  { %9695 = vst [vmem:[#allocation9_spill] sm:$0xff] %v7964_v21  ;;  %v2487_v57 = vmul.f32 %v7964_v21, %v7964_v21  ;;  %v7972_v47 = vpop.f32.mrb[95].mxu1  ;;  %v5092_v13 = vpop.eup %5091  ;;  %v3402_v54 = vadd.f32 1.0, %v5090_v49 }
 0x349   :  { %9696 = vst [vmem:[#allocation29_spill] sm:$0xff] %v7972_v47  ;;  %v2364_v52 = vadd.f32 %v7972_v47, %v7964_v21  ;;  %v2488_v19 = vmul.f32 %v7972_v47, %v7972_v47  ;;  %2362 = vadd.xlane.f32.xlu0 %v2361_v8  ;;  %v2589_v40 = vadd.f32 %v2486_v55, %v2485_v24  ;;  %v5094_v0 = vpop.eup %5093  ;;  %v3404_v61 = vadd.f32 1.0, %v5092_v13 }
 0x34a   :  { %v2700_v25 = vsub.f32 %v2624_v28, %v2662_v4  ;;  %v5096_v30 = vpop.eup %5095  ;;  %v2737_v21 = vmax.f32 %v2699_v62, 0.0  ;;  %5097 = vrcp.f32 %v3402_v54  ;;  %v3401_v14 = vadd.f32 1.0, %v5094_v0  ;;  %v2297_v6 = vpop.xlane.xlu0 %2296 }
 0x34b   :  { %2365 = vadd.xlane.f32.xlu1 %v2364_v52  ;;  %v2592_v35 = vadd.f32 %v2488_v19, %v2487_v57  ;;  %v3017_v8 = vmul.f32 %v7866_v29, %v2930_v33  ;;  %5099 = vrcp.f32 %v3404_v61  ;;  %v3403_v58 = vadd.f32 1.0, %v5096_v30 }
 0x34c   :  { %v2738_v55 = vmax.f32 %v2700_v25, 0.0  ;;  %v2851_v53 = vadd.f32 0.001, %v2737_v21  ;;  %5101 = vrcp.f32 %v3401_v14  ;;  %v4501_v14 = vmul.f32 -1.442695, %v7985_v3  ;;  %v2300_v19 = vpop.xlane.xlu1 %2299 }
 0x34d   :  { %2590 = vadd.xlane.f32.xlu0 %v2589_v40  ;;  %v7982_v24 = vpop.f32.mrb[96].mxu1  ;;  %v7992_v0 = vadd.f32 %v7872_v26, %v3017_v8  ;;  %5103 = vrcp.f32 %v3403_v58  ;;  %v9701_v4 = vsub.f32 %v7565_v43, %v7863_v59  ;;  %v8014_v52 = vmul.f32 0.00390625, %v2297_v6 }
 0x34e   :  { %9697 = vst [vmem:[#allocation6_spill] sm:$0xff] %v7982_v24  ;;  %v2489_v28 = vmul.f32 %v7982_v24, %v7982_v24  ;;  %v7989_v13 = vpop.f32.mrb[97].mxu1  ;;  %v2852_v54 = vadd.f32 0.001, %v2738_v55  ;;  %5105 = vrsqrt.f32 %v2851_v53  ;;  %v8018_v25 = vadd.f32 %v7869_v20, %v3014_v17 }
 0x34f   :  { %9698 = vst [vmem:[#allocation8_spill] sm:$0xff] %v7989_v13  ;;  %v2367_v33 = vadd.f32 %v7989_v13, %v7982_v24  ;;  %v2490_v61 = vmul.f32 %v7989_v13, %v7989_v13  ;;  %2593 = vadd.xlane.f32.xlu1 %v2592_v35  ;;  %v7998_v30 = vpop.f32.mrb[98].mxu1  ;;  %v4503_v51 = vmul.f32 -1.442695, %v7992_v0  ;;  %v2929_v9 = vmul.f32 %v5088_v60, %v9701_v4 }
 0x350   :  { %9699 = vst [vmem:[#allocation11_spill] sm:$0xff] %v7998_v30  ;;  %v2491_v62 = vmul.f32 %v7998_v30, %v7998_v30  ;;  %v8002_v40 = vpop.f32.mrb[99].mxu1  ;;  %5107 = vrsqrt.f32 %v2852_v54  ;;  %v8026_v59 = vmul.f32 0.00390625, %v2300_v19  ;;  %v2782_v53 = vsub.f32 %v7591_v18, %v7948_v11 }
 0x351   :  { %9700 = vst [vmem:[#allocation32_spill] sm:$0xff] %v8002_v40  ;;  %v2370_v21 = vadd.f32 %v8002_v40, %v7998_v30  ;;  %v2492_v35 = vmul.f32 %v8002_v40, %v8002_v40  ;;  %2368 = vadd.xlane.f32.xlu0 %v2367_v33  ;;  %v2595_v57 = vadd.f32 %v2490_v61, %v2489_v28  ;;  %5109 = vpow2.f32 %v4501_v14  ;;  %v2525_v61 = vpop.xlane.xlu0 %2524 }
 0x352   :  { %5111 = vpow2.f32 %v4503_v51  ;;  %v3016_v27 = vmul.f32 %v7859_v38, %v2929_v9  ;;  %v2663_v33 = vmul.f32 %v8014_v52, %v8014_v52  ;;  %v2625_v6 = vmul.f32 0.00390625, %v2525_v61  ;;  %v2528_v9 = vpop.xlane.xlu1 %2527 }
 0x353   :  { %2371 = vadd.xlane.f32.xlu1 %v2370_v21  ;;  %v2598_v49 = vadd.f32 %v2492_v35, %v2491_v62  ;;  %v4500_v21 = vmul.f32 -1.442695, %v8018_v25  ;;  %v2664_v4 = vmul.f32 %v8026_v59, %v8026_v59  ;;  %v2626_v43 = vmul.f32 0.00390625, %v2528_v9 }
 0x354   :  { %v5098_v60 = vpop.eup %5097  ;;  %v8045_v51 = vadd.f32 %v7869_v20, %v3016_v27 }
 0x355   :  { %2596 = vadd.xlane.f32.xlu0 %v2595_v57  ;;  %v8020_v8 = vpop.f32.mrb[100].mxu1  ;;  %v5100_v54 = vpop.eup %5099  ;;  %v3630_v17 = vmul.f32 %v5098_v60, %v7912_v23  ;;  %v2702_v60 = vsub.f32 %v2626_v43, %v2664_v4  ;;  %5113 = vpow2.f32 %v4500_v21 }
 0x356   :  { %9702 = vst [vmem:[#allocation13_spill] sm:$0xff] %v8020_v8  ;;  %v2493_v55 = vmul.f32 %v8020_v8, %v8020_v8  ;;  %v8030_v58 = vpop.f32.mrb[101].mxu1  ;;  %v5102_v18 = vpop.eup %5101  ;;  %v3632_v61 = vmul.f32 %v5100_v54, %v7918_v41 }
 0x357   :  { %9703 = vst [vmem:[#allocation46_spill] sm:$0xff] %v8030_v58  ;;  %v2373_v50 = vadd.f32 %v8030_v58, %v8020_v8  ;;  %v2494_v62 = vmul.f32 %v8030_v58, %v8030_v58  ;;  %2599 = vadd.xlane.f32.xlu1 %v2598_v49  ;;  %v8042_v14 = vpop.f32.mrb[102].mxu1  ;;  %v5104_v49 = vpop.eup %5103  ;;  %v2701_v8 = vsub.f32 %v2625_v6, %v2663_v33  ;;  %v2740_v41 = vmax.f32 %v2702_v60, 0.0 }
 0x358   :  { %9704 = vst [vmem:[#allocation10_spill] sm:$0xff] %v8042_v14  ;;  %v2495_v35 = vmul.f32 %v8042_v14, %v8042_v14  ;;  %v8050_v57 = vpop.f32.mrb[103].mxu1  ;;  %v5106_v58 = vpop.eup %5105  ;;  %v3629_v40 = vmul.f32 %v5102_v18, %v7908_v5  ;;  %v3631_v30 = vmul.f32 %v5104_v49, %v7915_v63 }
 0x359   :  { %9705 = vst [vmem:[#allocation12_spill] sm:$0xff] %v8050_v57  ;;  %v2376_v19 = vadd.f32 %v8050_v57, %v8042_v14  ;;  %v2496_v27 = vmul.f32 %v8050_v57, %v8050_v57  ;;  %2374 = vadd.xlane.f32.xlu0 %v2373_v50  ;;  %v2601_v28 = vadd.f32 %v2494_v62, %v2493_v55  ;;  %v4502_v14 = vmul.f32 -1.442695, %v8045_v51 }
 0x35a   :  { %v5108_v13 = vpop.eup %5107  ;;  %v2739_v57 = vmax.f32 %v2701_v8, 0.0  ;;  %v3706_v50 = vpack.c.bf16 %v3632_v61, %v3630_v17  ;;  %v3705_v55 = vpack.c.bf16 %v3631_v30, %v3629_v40  ;;  %v2932_v62 = vmul.f32 %v5106_v58, %v2780_v36  ;;  %v2303_v17 = vpop.xlane.xlu0 %2302 }
 0x35b   :  { %2377 = vadd.xlane.f32.xlu1 %v2376_v19  ;;  %v2604_v23 = vadd.f32 %v2496_v27, %v2495_v35  ;;  %v5110_v24 = vpop.eup %5109  ;;  %5115 = vpow2.f32 %v4502_v14  ;;  %v2934_v63 = vmul.f32 %v5108_v13, %v2782_v53  ;;  %v2854_v36 = vadd.f32 0.001, %v2740_v41 }
 0x35c   :  { %v5112_v9 = vpop.eup %5111  ;;  %v3406_v5 = vadd.f32 1.0, %v5110_v24  ;;  %v2853_v21 = vadd.f32 0.001, %v2739_v57  ;;  %3903 = vmatprep.mubr.bf16.mxu0 %v3706_v50  ;;  %v3019_v8 = vmul.f32 %v7866_v29, %v2932_v62  ;;  %v9708_v27 = vsub.f32 %v7579_v32, %v7944_v34  ;;  %v2306_v62 = vpop.xlane.xlu1 %2305 }
 0x35d   :  { %2602 = vadd.xlane.f32.xlu0 %v2601_v28  ;;  %v8063_v33 = vpop.f32.mrb[104].mxu1  ;;  %v3408_v18 = vadd.f32 1.0, %v5112_v9  ;;  %3904 = vmatmul.mubr.bf16.vlgmr.msra.gmra.mrb[40].mxu0 %v3705_v55  ;;  %v3021_v14 = vmul.f32 %v7866_v29, %v2934_v63  ;;  %v8095_v60 = vmul.f32 0.00390625, %v2303_v17  ;;  %v9709_v50 = vsub.f32 %v7585_v15, %v7948_v11 }
 0x35e   :  { %9706 = vst [vmem:[#allocation17_spill] sm:$0xff] %v8063_v33  ;;  %v2497_v54 = vmul.f32 %v8063_v33, %v8063_v33  ;;  %v8067_v43 = vpop.f32.mrb[105].mxu1  ;;  %5117 = vrcp.f32 %v3406_v5  ;;  %v8082_v35 = vadd.f32 %v7872_v26, %v3019_v8  ;;  %v2931_v61 = vmul.f32 %v5106_v58, %v9708_v27 }
 0x35f   :  { %v2379_v30 = vadd.f32 %v8067_v43, %v8063_v33  ;;  %v2498_v40 = vmul.f32 %v8067_v43, %v8067_v43  ;;  %2605 = vadd.xlane.f32.xlu1 %v2604_v23  ;;  %v8074_v24 = vpop.f32.mrb[106].mxu1  ;;  %5119 = vrsqrt.f32 %v2853_v21  ;;  %v8089_v49 = vadd.f32 %v7872_v26, %v3021_v14  ;;  %v5114_v41 = vpop.eup %5113 }
 0x360   :  { %9707 = vst [vmem:[#allocation48_spill] sm:$0xff] %v8074_v24  ;;  %v2499_v28 = vmul.f32 %v8074_v24, %v8074_v24  ;;  %v8078_v53 = vpop.f32.mrb[107].mxu1  ;;  %5121 = vrsqrt.f32 %v2854_v36  ;;  %v4505_v19 = vmul.f32 -1.442695, %v8082_v35  ;;  %v2933_v55 = vmul.f32 %v5108_v13, %v9709_v50  ;;  %v2531_v13 = vpop.xlane.xlu0 %2530 }
 0x361   :  { %v2382_v57 = vadd.f32 %v8078_v53, %v8074_v24  ;;  %v2500_v6 = vmul.f32 %v8078_v53, %v8078_v53  ;;  %2380 = vadd.xlane.f32.xlu0 %v2379_v30  ;;  %v2607_v4 = vadd.f32 %v2498_v40, %v2497_v54  ;;  %5123 = vrcp.f32 %v3408_v18 }
 0x362   :  { %5125 = vpow2.f32 %v4505_v19  ;;  %v4507_v9 = vmul.f32 -1.442695, %v8089_v49  ;;  %v2784_v34 = vsub.f32 %v7601_v37, %v8014_v52  ;;  %v8107_v58 = vmul.f32 0.00390625, %v2306_v62 }
 0x363   :  { %2383 = vadd.xlane.f32.xlu1 %v2382_v57  ;;  %v2610_v23 = vadd.f32 %v2500_v6, %v2499_v28  ;;  %v3405_v63 = vadd.f32 1.0, %v5114_v41  ;;  %v3018_v54 = vmul.f32 %v7859_v38, %v2931_v61  ;;  %v2665_v30 = vmul.f32 %v8095_v60, %v8095_v60  ;;  %v2534_v6 = vpop.xlane.xlu1 %2533 }
 0x364   :  { %5127 = vpow2.f32 %v4507_v9  ;;  %v3020_v40 = vmul.f32 %v7859_v38, %v2933_v55  ;;  %v2627_v14 = vmul.f32 0.00390625, %v2531_v13  ;;  %v2666_v57 = vmul.f32 %v8107_v58, %v8107_v58 }
 0x365   :  { %2608 = vadd.xlane.f32.xlu0 %v2607_v4  ;;  %v8101_v5 = vpop.f32.mrb[108].mxu1  ;;  %v5116_v21 = vpop.eup %5115  ;;  %v2786_v55 = vsub.f32 %v7611_v48, %v8026_v59  ;;  %5129 = vrcp.f32 %v3405_v63  ;;  %v8136_v9 = vadd.f32 %v7869_v20, %v3018_v54 }
 0x366   :  { %v2501_v15 = vmul.f32 %v8101_v5, %v8101_v5  ;;  %v8111_v11 = vpop.f32.mrb[109].mxu1  ;;  %v3407_v4 = vadd.f32 1.0, %v5116_v21  ;;  %v2703_v62 = vsub.f32 %v2627_v14, %v2665_v30  ;;  %v8139_v32 = vadd.f32 %v7869_v20, %v3020_v40  ;;  %v2309_v30 = vpop.xlane.xlu0 %2308 }
 0x367   :  { %v2385_v18 = vadd.f32 %v8111_v11, %v8101_v5  ;;  %v2502_v8 = vmul.f32 %v8111_v11, %v8111_v11  ;;  %2611 = vadd.xlane.f32.xlu1 %v2610_v23  ;;  %v8118_v37 = vpop.f32.mrb[110].mxu1  ;;  %v2628_v23 = vmul.f32 0.00390625, %v2534_v6  ;;  %v4504_v6 = vmul.f32 -1.442695, %v8136_v9 }
 0x368   :  { %9710 = vst [vmem:[#allocation52_spill] sm:$0xff] %v8118_v37  ;;  %v2503_v36 = vmul.f32 %v8118_v37, %v8118_v37  ;;  %v8125_v28 = vpop.f32.mrb[111].mxu1  ;;  %v5118_v17 = vpop.eup %5117  ;;  %5131 = vrcp.f32 %v3407_v4 }
 0x369   :  { %v2388_v19 = vadd.f32 %v8125_v28, %v8118_v37  ;;  %v2504_v27 = vmul.f32 %v8125_v28, %v8125_v28  ;;  %2386 = vadd.xlane.f32.xlu0 %v2385_v18  ;;  %v2613_v61 = vadd.f32 %v2502_v8, %v2501_v15  ;;  %v5120_v50 = vpop.eup %5119  ;;  %v2704_v21 = vsub.f32 %v2628_v23, %v2666_v57 }
 0x36a   :  { %v5122_v41 = vpop.eup %5121  ;;  %v2741_v15 = vmax.f32 %v2703_v62, 0.0  ;;  %v3634_v8 = vmul.f32 %v5118_v17, %v7985_v3  ;;  %v2936_v48 = vmul.f32 %v5120_v50, %v2784_v34  ;;  %5133 = vpow2.f32 %v4504_v6  ;;  %v2312_v17 = vpop.xlane.xlu1 %2311 }
 0x36b   :  { %v2616_v13 = vadd.f32 %v2504_v27, %v2503_v36  ;;  %2389 = vadd.xlane.f32.xlu1 %v2388_v19  ;;  %v5124_v18 = vpop.eup %5123  ;;  %v2742_v63 = vmax.f32 %v2704_v21, 0.0  ;;  %v4506_v36 = vmul.f32 -1.442695, %v8139_v32  ;;  %v2938_v14 = vmul.f32 %v5122_v41, %v2786_v55  ;;  %v2537_v21 = vpop.xlane.xlu0 %2536 }
 0x36c   :  { %v3636_v54 = vmul.f32 %v5124_v18, %v7992_v0  ;;  %v5126_v57 = vpop.eup %5125  ;;  %v2855_v4 = vadd.f32 0.001, %v2741_v15  ;;  %v8145_v19 = vmul.f32 0.00390625, %v2309_v30  ;;  %v3023_v40 = vmul.f32 %v7866_v29, %v2936_v48 }
 0x36d   :  { %2614 = vadd.xlane.f32.xlu0 %v2613_v61  ;;  %v2856_v3 = vadd.f32 0.001, %v2742_v63  ;;  %v3410_v34 = vadd.f32 1.0, %v5126_v57  ;;  %5135 = vpow2.f32 %v4506_v36  ;;  %v8148_v23 = vmul.f32 0.00390625, %v2312_v17 }
 0x36e   :  { %v3708_v27 = vpack.c.bf16 %v3636_v54, %v3634_v8  ;;  %v5128_v61 = vpop.eup %5127  ;;  %5137 = vrsqrt.f32 %v2855_v4  ;;  %v9711_v0 = vsub.f32 %v7599_v2, %v8014_v52  ;;  %v2785_v62 = vsub.f32 %v7605_v42, %v8026_v59  ;;  %v2540_v48 = vpop.xlane.xlu1 %2539 }
 0x36f   :  { %2617 = vadd.xlane.f32.xlu1 %v2616_v13  ;;  %5139 = vrsqrt.f32 %v2856_v3  ;;  %v3412_v13 = vadd.f32 1.0, %v5128_v61  ;;  %v3025_v18 = vmul.f32 %v7866_v29, %v2938_v14  ;;  %v2667_v15 = vmul.f32 %v8145_v19, %v8145_v19  ;;  %v5130_v59 = vpop.eup %5129 }
 0x370   :  { %v2935_v55 = vmul.f32 %v5120_v50, %v9711_v0  ;;  %3911 = vmatprep.mubr.bf16.mxu0 %v3708_v27  ;;  %v2629_v8 = vmul.f32 0.00390625, %v2537_v21  ;;  %v2668_v6 = vmul.f32 %v8148_v23, %v8148_v23  ;;  %5141 = vrcp.f32 %v3410_v34 }
 0x371   :  { %v8161_v2 = vadd.f32 %v7872_v26, %v3023_v40  ;;  %v8164_v42 = vadd.f32 %v7872_v26, %v3025_v18  ;;  %v2937_v52 = vmul.f32 %v5122_v41, %v2785_v62  ;;  %v2630_v63 = vmul.f32 0.00390625, %v2540_v48 }
 0x372   :  { %v2705_v50 = vsub.f32 %v2629_v8, %v2667_v15  ;;  %5143 = vrcp.f32 %v3412_v13  ;;  %v3022_v30 = vmul.f32 %v7859_v38, %v2935_v55  ;;  %v5132_v54 = vpop.eup %5131  ;;  %v3633_v36 = vmul.f32 %v5130_v59, %v8018_v25 }
 0x373   :  { %v4509_v14 = vmul.f32 -1.442695, %v8161_v2  ;;  %v4511_v57 = vmul.f32 -1.442695, %v8164_v42  ;;  %v3024_v4 = vmul.f32 %v7859_v38, %v2937_v52  ;;  %v2706_v3 = vsub.f32 %v2630_v63, %v2668_v6 }
 0x374   :  { %v2743_v40 = vmax.f32 %v2705_v50, 0.0  ;;  %v3635_v17 = vmul.f32 %v5132_v54, %v8045_v51  ;;  %v8173_v41 = vadd.f32 %v7869_v20, %v3022_v30  ;;  %v5134_v34 = vpop.eup %5133  ;;  %v2787_v62 = vsub.f32 %v7619_v56, %v8095_v60 }
 0x375   :  { %5145 = vpow2.f32 %v4509_v14  ;;  %v8176_v27 = vadd.f32 %v7869_v20, %v3024_v4  ;;  %v2744_v25 = vmax.f32 %v2706_v3, 0.0  ;;  %v2788_v21 = vsub.f32 %v7621_v44, %v8095_v60  ;;  %v2315_v44 = vpop.xlane.xlu0 %2314 }
 0x376   :  { %v2857_v61 = vadd.f32 0.001, %v2743_v40  ;;  %v3707_v0 = vpack.c.bf16 %v3635_v17, %v3633_v36  ;;  %5147 = vpow2.f32 %v4511_v57  ;;  %v2790_v51 = vsub.f32 %v7631_v1, %v8107_v58 }
 0x377   :  { %v5136_v55 = vpop.eup %5135  ;;  %v3409_v13 = vadd.f32 1.0, %v5134_v34  ;;  %v2858_v15 = vadd.f32 0.001, %v2744_v25  ;;  %v4508_v6 = vmul.f32 -1.442695, %v8173_v41  ;;  %v2789_v52 = vsub.f32 %v7625_v10, %v8107_v58  ;;  %v2318_v14 = vpop.xlane.xlu1 %2317 }
 0x378   :  { %v5138_v18 = vpop.eup %5137  ;;  %5149 = vrsqrt.f32 %v2857_v61  ;;  %3912 = vmatmul.mubr.bf16.gmra.mrb[44].mxu0 %v3707_v0  ;;  %v3411_v8 = vadd.f32 1.0, %v5136_v55  ;;  %v4510_v60 = vmul.f32 -1.442695, %v8176_v27  ;;  %v8188_v63 = vmul.f32 0.00390625, %v2315_v44 }
 0x379   :  { %v5140_v48 = vpop.eup %5139  ;;  %5151 = vrcp.f32 %v3409_v13  ;;  %v2940_v56 = vmul.f32 %v5138_v18, %v2788_v21  ;;  %v2939_v59 = vmul.f32 %v5138_v18, %v2787_v62  ;;  %v2791_v58 = vsub.f32 %v7646_v46, %v8145_v19  ;;  %v2543_v3 = vpop.xlane.xlu0 %2542 }
 0x37a   :  { %5153 = vrsqrt.f32 %v2858_v15  ;;  %v2942_v1 = vmul.f32 %v5140_v48, %v2790_v51  ;;  %v5142_v50 = vpop.eup %5141  ;;  %v2941_v54 = vmul.f32 %v5140_v48, %v2789_v52  ;;  %v8194_v57 = vmul.f32 0.00390625, %v2318_v14 }
 0x37b   :  { %5155 = vrcp.f32 %v3411_v8  ;;  %v3027_v30 = vmul.f32 %v7866_v29, %v2940_v56  ;;  %v3638_v4 = vmul.f32 %v5142_v50, %v8082_v35  ;;  %v3026_v40 = vmul.f32 %v7859_v38, %v2939_v59  ;;  %v2546_v51 = vpop.xlane.xlu1 %2545 }
 0x37c   :  { %v5144_v36 = vpop.eup %5143  ;;  %5157 = vpow2.f32 %v4508_v6  ;;  %v3029_v10 = vmul.f32 %v7866_v29, %v2942_v1  ;;  %v2669_v0 = vmul.f32 %v8188_v63, %v8188_v63  ;;  %v2631_v55 = vmul.f32 0.00390625, %v2543_v3 }
 0x37d   :  { %v3640_v17 = vmul.f32 %v5144_v36, %v8089_v49  ;;  %5159 = vpow2.f32 %v4510_v60  ;;  %v8200_v34 = vadd.f32 %v7872_v26, %v3027_v30  ;;  %v2670_v35 = vmul.f32 %v8194_v57, %v8194_v57 }
 0x37e   :  { %v8203_v61 = vadd.f32 %v7872_v26, %v3029_v10  ;;  %v3028_v62 = vmul.f32 %v7859_v38, %v2941_v54  ;;  %v2707_v8 = vsub.f32 %v2631_v55, %v2669_v0  ;;  %v2632_v6 = vmul.f32 0.00390625, %v2546_v51 }
 0x37f   :  { %v5146_v25 = vpop.eup %5145  ;;  %v3710_v49 = vpack.c.bf16 %v3640_v17, %v3638_v4  ;;  %v4513_v18 = vmul.f32 -1.442695, %v8200_v34  ;;  %v8213_v52 = vadd.f32 %v7869_v20, %v3026_v40  ;;  %v2792_v59 = vsub.f32 %v7651_v12, %v8145_v19 }
 0x380   :  { %v5148_v21 = vpop.eup %5147  ;;  %v3414_v13 = vadd.f32 1.0, %v5146_v25  ;;  %v4515_v15 = vmul.f32 -1.442695, %v8203_v61  ;;  %v2793_v44 = vsub.f32 %v7655_v39, %v8148_v23  ;;  %v2794_v60 = vsub.f32 %v7661_v22, %v8148_v23  ;;  %v2321_v22 = vpop.xlane.xlu0 %2320 }
 0x381   :  { %v3416_v48 = vadd.f32 1.0, %v5148_v21  ;;  %3919 = vmatprep.mubr.bf16.mxu0 %v3710_v49  ;;  %v2745_v50 = vmax.f32 %v2707_v8, 0.0  ;;  %v2708_v30 = vsub.f32 %v2632_v6, %v2670_v35  ;;  %v4512_v54 = vmul.f32 -1.442695, %v8213_v52 }
 0x382   :  { %v5150_v56 = vpop.eup %5149  ;;  %5161 = vrcp.f32 %v3414_v13  ;;  %v8224_v12 = vadd.f32 %v7869_v20, %v3028_v62  ;;  %v8226_v17 = vmul.f32 0.00390625, %v2321_v22  ;;  %v2324_v55 = vpop.xlane.xlu1 %2323  ;;  %v2795_v51 = vsub.f32 %v7675_v45, %v8188_v63 }
 0x383   :  { %v5152_v1 = vpop.eup %5151  ;;  %5163 = vrcp.f32 %v3416_v48  ;;  %v2944_v10 = vmul.f32 %v5150_v56, %v2792_v59  ;;  %v2859_v4 = vadd.f32 0.001, %v2745_v50  ;;  %v2746_v40 = vmax.f32 %v2708_v30, 0.0 }
 0x384   :  { %v5154_v36 = vpop.eup %5153  ;;  %v3637_v14 = vmul.f32 %v5152_v1, %v8136_v9  ;;  %5165 = vpow2.f32 %v4513_v18  ;;  %v2796_v49 = vsub.f32 %v7682_v7, %v8188_v63  ;;  %v8235_v13 = vmul.f32 0.00390625, %v2324_v55  ;;  %v2549_v18 = vpop.xlane.xlu0 %2548 }
 0x385   :  { %v5156_v39 = vpop.eup %5155  ;;  %5167 = vpow2.f32 %v4515_v15  ;;  %v2946_v23 = vmul.f32 %v5154_v36, %v2794_v60  ;;  %v3031_v0 = vmul.f32 %v7866_v29, %v2944_v10  ;;  %v2860_v9 = vadd.f32 0.001, %v2746_v40 }
 0x386   :  { %v5158_v3 = vpop.eup %5157  ;;  %v3639_v25 = vmul.f32 %v5156_v39, %v8139_v32  ;;  %5169 = vpow2.f32 %v4512_v54  ;;  %v4514_v32 = vmul.f32 -1.442695, %v8224_v12  ;;  %v2798_v48 = vsub.f32 %v7695_v31, %v8194_v57  ;;  %v2552_v63 = vpop.xlane.xlu1 %2551 }
 0x387   :  { %5171 = vrsqrt.f32 %v2859_v4  ;;  %v3413_v35 = vadd.f32 1.0, %v5158_v3  ;;  %v3033_v62 = vmul.f32 %v7866_v29, %v2946_v23  ;;  %v5160_v21 = vpop.eup %5159  ;;  %v8239_v6 = vadd.f32 %v7872_v26, %v3031_v0 }
 0x388   :  { %5173 = vrsqrt.f32 %v2860_v9  ;;  %v3709_v15 = vpack.c.bf16 %v3639_v25, %v3637_v14  ;;  %v3415_v8 = vadd.f32 1.0, %v5160_v21  ;;  %v2671_v45 = vmul.f32 %v8226_v17, %v8226_v17 }
 0x389   :  { %v2633_v59 = vmul.f32 0.00390625, %v2549_v18  ;;  %v2672_v7 = vmul.f32 %v8235_v13, %v8235_v13  ;;  %5175 = vrcp.f32 %v3413_v35  ;;  %v8248_v60 = vadd.f32 %v7872_v26, %v3033_v62 }
 0x38a   :  { %3920 = vmatmul.mubr.bf16.gmra.mrb[48].mxu0 %v3709_v15  ;;  %v4517_v1 = vmul.f32 -1.442695, %v8239_v6  ;;  %v2943_v50 = vmul.f32 %v5150_v56, %v2791_v58  ;;  %v2634_v54 = vmul.f32 0.00390625, %v2552_v63  ;;  %5177 = vrcp.f32 %v3415_v8 }
 0x38b   :  { %v2709_v30 = vsub.f32 %v2633_v59, %v2671_v45  ;;  %v2945_v14 = vmul.f32 %v5154_v36, %v2793_v44  ;;  %5179 = vpow2.f32 %v4514_v32  ;;  %v4519_v4 = vmul.f32 -1.442695, %v8248_v60  ;;  %v9712_v45 = vld [vmem:[#allocation3_spill] sm:$0xff] }
 0x38c   :  { %v5162_v31 = vpop.eup %5161  ;;  %v3030_v40 = vmul.f32 %v7859_v38, %v2943_v50  ;;  %v2710_v3 = vsub.f32 %v2634_v54, %v2672_v7  ;;  %5181 = vpow2.f32 %v4517_v1  ;;  %v2797_v8 = vsub.f32 %v7688_v16, %v8194_v57  ;;  %v9713_v7 = vld [vmem:[#allocation7_spill] sm:$0xff]  ;;  %v9715_v16 = vld [vmem:[#allocation30_spill] sm:$0xff] }
 0x38d   :  { %v5164_v10 = vpop.eup %5163  ;;  %v3642_v39 = vmul.f32 %v5162_v31, %v8161_v2  ;;  %v2747_v23 = vmax.f32 %v2709_v30, 0.0  ;;  %5183 = vpow2.f32 %v4519_v4  ;;  %v3032_v58 = vmul.f32 %v7859_v38, %v2945_v14 }
 0x38e   :  { %v5166_v22 = vpop.eup %5165  ;;  %v3644_v25 = vmul.f32 %v5164_v10, %v8164_v42  ;;  %v8260_v56 = vadd.f32 %v7869_v20, %v3030_v40  ;;  %v2748_v36 = vmax.f32 %v2710_v3, 0.0  ;;  %v2799_v59 = vsub.f32 %v9712_v45, %v8226_v17 }
 0x38f   :  { %v5168_v46 = vpop.eup %5167  ;;  %v3418_v19 = vadd.f32 1.0, %v5166_v22  ;;  %v2861_v44 = vadd.f32 0.001, %v2747_v23  ;;  %v8263_v62 = vadd.f32 %v7869_v20, %v3032_v58  ;;  %v2800_v63 = vsub.f32 %v9713_v7, %v8226_v17  ;;  %v2327_v1 = vpop.xlane.xlu0 %2326  ;;  %v9716_v23 = vld [vmem:[#allocation19_spill] sm:$0xff] }
 0x390   :  { %v5170_v2 = vpop.eup %5169  ;;  %v3712_v0 = vpack.c.bf16 %v3644_v25, %v3642_v39  ;;  %v3420_v9 = vadd.f32 1.0, %v5168_v46  ;;  %v4516_v42 = vmul.f32 -1.442695, %v8260_v56  ;;  %v2862_v21 = vadd.f32 0.001, %v2748_v36 }
 0x391   :  { %v5172_v55 = vpop.eup %5171  ;;  %5185 = vrcp.f32 %v3418_v19  ;;  %v3417_v35 = vadd.f32 1.0, %v5170_v2  ;;  %v4518_v50 = vmul.f32 -1.442695, %v8263_v62  ;;  %v2802_v57 = vsub.f32 %v9715_v16, %v8235_v13  ;;  %v2330_v39 = vpop.xlane.xlu1 %2329 }
 0x392   :  { %5187 = vrsqrt.f32 %v2861_v44  ;;  %3927 = vmatprep.mubr.bf16.mxu0 %v3712_v0  ;;  %v2948_v32 = vmul.f32 %v5172_v55, %v2796_v49  ;;  %v2947_v18 = vmul.f32 %v5172_v55, %v2795_v51  ;;  %v5174_v15 = vpop.eup %5173  ;;  %v9714_v51 = vld [vmem:[#allocation28_spill] sm:$0xff]  ;;  %v8278_v14 = vmul.f32 0.00390625, %v2327_v1  ;;  %v9717_v55 = vld [vmem:[#allocation37_spill] sm:$0xff] }
 0x393   :  { %5189 = vrcp.f32 %v3420_v9  ;;  %v2950_v31 = vmul.f32 %v5174_v15, %v2798_v48  ;;  %v5176_v49 = vpop.eup %5175  ;;  %v2801_v54 = vsub.f32 %v9714_v51, %v8235_v13  ;;  %v2949_v40 = vmul.f32 %v5174_v15, %v2797_v8  ;;  %v2555_v2 = vpop.xlane.xlu0 %2554 }
 0x394   :  { %5191 = vrsqrt.f32 %v2862_v21  ;;  %v3035_v30 = vmul.f32 %v7866_v29, %v2948_v32  ;;  %v5178_v10 = vpop.eup %5177  ;;  %v3034_v48 = vmul.f32 %v7859_v38, %v2947_v18  ;;  %v2803_v3 = vsub.f32 %v9716_v23, %v8278_v14 }
 0x395   :  { %5193 = vrcp.f32 %v3417_v35  ;;  %v3037_v4 = vmul.f32 %v7866_v29, %v2950_v31  ;;  %v5180_v22 = vpop.eup %5179  ;;  %v8284_v25 = vmul.f32 0.00390625, %v2330_v39  ;;  %v3641_v46 = vmul.f32 %v5176_v49, %v8173_v41  ;;  %v2558_v32 = vpop.xlane.xlu1 %2557 }
 0x396   :  { %5195 = vpow2.f32 %v4516_v42  ;;  %v8288_v19 = vadd.f32 %v7872_v26, %v3035_v30  ;;  %v5182_v58 = vpop.eup %5181  ;;  %v3643_v44 = vmul.f32 %v5178_v10, %v8176_v27  ;;  %v3419_v36 = vadd.f32 1.0, %v5180_v22 }
 0x397   :  { %5197 = vpow2.f32 %v4518_v50  ;;  %v8292_v0 = vadd.f32 %v7872_v26, %v3037_v4  ;;  %v5184_v9 = vpop.eup %5183  ;;  %v2804_v35 = vsub.f32 %v9717_v55, %v8278_v14  ;;  %v2673_v42 = vmul.f32 %v8278_v14, %v8278_v14 }
 0x398   :  { %v2635_v41 = vmul.f32 0.00390625, %v2555_v2  ;;  %v2674_v21 = vmul.f32 %v8284_v25, %v8284_v25  ;;  %v3711_v18 = vpack.c.bf16 %v3643_v44, %v3641_v46  ;;  %5199 = vrcp.f32 %v3419_v36 }
 0x399   :  { %v3422_v27 = vadd.f32 1.0, %v5182_v58  ;;  %v3424_v15 = vadd.f32 1.0, %v5184_v9  ;;  %v2636_v1 = vmul.f32 0.00390625, %v2558_v32  ;;  %v4521_v50 = vmul.f32 -1.442695, %v8288_v19 }
 0x39a   :  { %v2711_v7 = vsub.f32 %v2635_v41, %v2673_v42  ;;  %v4523_v31 = vmul.f32 -1.442695, %v8292_v0  ;;  %3928 = vmatmul.mubr.bf16.gmra.mrb[52].mxu0 %v3711_v18  ;;  %v3036_v16 = vmul.f32 %v7859_v38, %v2949_v40  ;;  %v8305_v10 = vadd.f32 %v7869_v20, %v3034_v48 }
 0x39b   :  { %v5186_v8 = vpop.eup %5185  ;;  %5201 = vrcp.f32 %v3422_v27  ;;  %v2712_v22 = vsub.f32 %v2636_v1, %v2674_v21  ;;  %v2333_v42 = vpop.xlane.xlu0 %2332  ;;  %v9718_v21 = vld [vmem:[#allocation14_spill] sm:$0xff] }
 0x39c   :  { %v5188_v30 = vpop.eup %5187  ;;  %v3646_v49 = vmul.f32 %v5186_v8, %v8200_v34  ;;  %v2749_v4 = vmax.f32 %v2711_v7, 0.0  ;;  %5203 = vrcp.f32 %v3424_v15  ;;  %v8309_v44 = vadd.f32 %v7869_v20, %v3036_v16 }
 0x39d   :  { %v5190_v39 = vpop.eup %5189  ;;  %v2952_v46 = vmul.f32 %v5188_v30, %v2800_v63  ;;  %5205 = vpow2.f32 %v4521_v50  ;;  %v4520_v34 = vmul.f32 -1.442695, %v8305_v10  ;;  %v2750_v40 = vmax.f32 %v2712_v22, 0.0  ;;  %v2336_v8 = vpop.xlane.xlu1 %2335  ;;  %v9720_v50 = vld [vmem:[#allocation16_spill] sm:$0xff] }
 0x39e   :  { %v5192_v58 = vpop.eup %5191  ;;  %v3648_v2 = vmul.f32 %v5190_v39, %v8203_v61  ;;  %v2863_v9 = vadd.f32 0.001, %v2749_v4  ;;  %5207 = vpow2.f32 %v4523_v31  ;;  %v8314_v63 = vmul.f32 0.00390625, %v2333_v42  ;;  %v9719_v61 = vld [vmem:[#allocation40_spill] sm:$0xff] }
 0x39f   :  { %v5194_v36 = vpop.eup %5193  ;;  %v2954_v48 = vmul.f32 %v5192_v58, %v2802_v57  ;;  %5209 = vpow2.f32 %v4520_v34  ;;  %v2806_v27 = vsub.f32 %v9719_v61, %v8284_v25  ;;  %v2864_v15 = vadd.f32 0.001, %v2750_v40 }
 0x3a0   :  { %v5196_v41 = vpop.eup %5195  ;;  %v3714_v18 = vpack.c.bf16 %v3648_v2, %v3646_v49  ;;  %5211 = vrsqrt.f32 %v2863_v9  ;;  %v8320_v57 = vmul.f32 0.00390625, %v2336_v8  ;;  %v3645_v16 = vmul.f32 %v5194_v36, %v8213_v52  ;;  %v2561_v49 = vpop.xlane.xlu0 %2560  ;;  %v9721_v9 = vld [vmem:[#allocation36_spill] sm:$0xff] }
 0x3a1   :  { %v3421_v7 = vadd.f32 1.0, %v5196_v41  ;;  %v5198_v1 = vpop.eup %5197  ;;  %v4522_v39 = vmul.f32 -1.442695, %v8309_v44  ;;  %5213 = vrsqrt.f32 %v2864_v15  ;;  %v3039_v22 = vmul.f32 %v7866_v29, %v2952_v46  ;;  %v2564_v36 = vpop.xlane.xlu1 %2563 }
 0x3a2   :  { %3935 = vmatprep.mubr.bf16.mxu0 %v3714_v18  ;;  %v3423_v4 = vadd.f32 1.0, %v5198_v1  ;;  %v3041_v2 = vmul.f32 %v7866_v29, %v2954_v48  ;;  %v5200_v34 = vpop.eup %5199  ;;  %v2675_v42 = vmul.f32 %v8314_v63, %v8314_v63  ;;  %v2637_v41 = vmul.f32 0.00390625, %v2561_v49 }
 0x3a3   :  { %v2676_v52 = vmul.f32 %v8320_v57, %v8320_v57  ;;  %v3647_v18 = vmul.f32 %v5200_v34, %v8224_v12  ;;  %5215 = vrcp.f32 %v3421_v7  ;;  %v8334_v15 = vadd.f32 %v7872_v26, %v3039_v22 }
 0x3a4   :  { %v8337_v46 = vadd.f32 %v7872_v26, %v3041_v2  ;;  %v2713_v8 = vsub.f32 %v2637_v41, %v2675_v42  ;;  %v2638_v1 = vmul.f32 0.00390625, %v2564_v36  ;;  %5217 = vrcp.f32 %v3423_v4 }
 0x3a5   :  { %v5202_v48 = vpop.eup %5201  ;;  %v2951_v49 = vmul.f32 %v5188_v30, %v2799_v59  ;;  %v3713_v40 = vpack.c.bf16 %v3647_v18, %v3645_v16  ;;  %5219 = vpow2.f32 %v4522_v39  ;;  %v4525_v12 = vmul.f32 -1.442695, %v8334_v15  ;;  %v9723_v18 = vld [vmem:[#allocation26_spill] sm:$0xff] }
 0x3a6   :  { %v5204_v31 = vpop.eup %5203  ;;  %v3650_v32 = vmul.f32 %v5202_v48, %v8239_v6  ;;  %v2751_v22 = vmax.f32 %v2713_v8, 0.0  ;;  %v2714_v34 = vsub.f32 %v2638_v1, %v2676_v52  ;;  %v4527_v42 = vmul.f32 -1.442695, %v8337_v46 }
 0x3a7   :  { %v5206_v7 = vpop.eup %5205  ;;  %v3652_v2 = vmul.f32 %v5204_v31, %v8248_v60  ;;  %3936 = vmatmul.mubr.bf16.gmra.mrb[56].mxu0 %v3713_v40  ;;  %5221 = vpow2.f32 %v4525_v12  ;;  %v2953_v17 = vmul.f32 %v5192_v58, %v2801_v54  ;;  %v3038_v6 = vmul.f32 %v7859_v38, %v2951_v49  ;;  %v9722_v58 = vld [vmem:[#allocation38_spill] sm:$0xff] }
 0x3a8   :  { %v5208_v41 = vpop.eup %5207  ;;  %v3426_v4 = vadd.f32 1.0, %v5206_v7  ;;  %v2865_v59 = vadd.f32 0.001, %v2751_v22  ;;  %v2752_v30 = vmax.f32 %v2714_v34, 0.0  ;;  %v2810_v48 = vsub.f32 %v9723_v18, %v8320_v57  ;;  %v9730_v18 = vld [vmem:[#allocation34_spill] sm:$0xff] }
 0x3a9   :  { %v5210_v45 = vpop.eup %5209  ;;  %v3716_v16 = vpack.c.bf16 %v3652_v2, %v3650_v32  ;;  %v3428_v39 = vadd.f32 1.0, %v5208_v41  ;;  %v3040_v31 = vmul.f32 %v7859_v38, %v2953_v17  ;;  %v8352_v40 = vadd.f32 %v7869_v20, %v3038_v6  ;;  %v9726_v6 = vld [vmem:[#allocation45_spill] sm:$0xff] }
 0x3aa   :  { %v5212_v52 = vpop.eup %5211  ;;  %5223 = vrcp.f32 %v3426_v4  ;;  %v3425_v60 = vadd.f32 1.0, %v5210_v45  ;;  %v2866_v36 = vadd.f32 0.001, %v2752_v30  ;;  %v9724_v12 = vsub.f32 %v9718_v21, %v8284_v25  ;;  %v9725_v4 = vld [vmem:[#allocation27_spill] sm:$0xff] }
 0x3ab   :  { %5225 = vrsqrt.f32 %v2865_v59  ;;  %3943 = vmatprep.mubr.bf16.mxu0 %v3716_v16  ;;  %v2956_v13 = vmul.f32 %v5212_v52, %v2804_v35  ;;  %v2955_v51 = vmul.f32 %v5212_v52, %v2803_v3  ;;  %v5214_v54 = vpop.eup %5213  ;;  %v8365_v8 = vadd.f32 %v7869_v20, %v3040_v31  ;;  %v2339_v1 = vpop.xlane.xlu0 %2338  ;;  %v9727_v52 = vld [vmem:[#allocation20_spill] sm:$0xff] }
 0x3ac   :  { %5227 = vrcp.f32 %v3428_v39  ;;  %v4524_v55 = vmul.f32 -1.442695, %v8352_v40  ;;  %v2958_v14 = vmul.f32 %v5214_v54, %v2806_v27  ;;  %v8372_v35 = vmul.f32 0.00390625, %v2339_v1 }
 0x3ad   :  { %5229 = vrsqrt.f32 %v2866_v36  ;;  %v3043_v23 = vmul.f32 %v7866_v29, %v2956_v13  ;;  %v5216_v3 = vpop.eup %5215  ;;  %v4526_v49 = vmul.f32 -1.442695, %v8365_v8  ;;  %v2957_v7 = vmul.f32 %v5214_v54, %v9724_v12  ;;  %v2342_v34 = vpop.xlane.xlu1 %2341 }
 0x3ae   :  { %5231 = vrcp.f32 %v3425_v60  ;;  %v5218_v22 = vpop.eup %5217  ;;  %v3045_v2 = vmul.f32 %v7866_v29, %v2958_v14  ;;  %v3042_v27 = vmul.f32 %v7859_v38, %v2955_v51  ;;  %v8387_v59 = vmul.f32 0.00390625, %v2342_v34 }
 0x3af   :  { %5233 = vpow2.f32 %v4527_v42  ;;  %v8380_v61 = vadd.f32 %v7872_v26, %v3043_v23  ;;  %v5220_v41 = vpop.eup %5219  ;;  %v3649_v25 = vmul.f32 %v5216_v3, %v8260_v56  ;;  %v2567_v21 = vpop.xlane.xlu0 %2566  ;;  %v3651_v42 = vmul.f32 %v5218_v22, %v8263_v62 }
 0x3b0   :  { %v3427_v30 = vadd.f32 1.0, %v5220_v41  ;;  %5235 = vpow2.f32 %v4524_v55  ;;  %v8392_v16 = vadd.f32 %v7872_v26, %v3045_v2  ;;  %v2677_v31 = vmul.f32 %v8372_v35, %v8372_v35 }
 0x3b1   :  { %v5222_v39 = vpop.eup %5221  ;;  %v2639_v36 = vmul.f32 0.00390625, %v2567_v21  ;;  %v2678_v13 = vmul.f32 %v8387_v59, %v8387_v59  ;;  %v2570_v56 = vpop.xlane.xlu1 %2569  ;;  %v3715_v51 = vpack.c.bf16 %v3651_v42, %v3649_v25  ;;  %v4529_v54 = vmul.f32 -1.442695, %v8380_v61 }
 0x3b2   :  { %5237 = vrcp.f32 %v3427_v30  ;;  %v3430_v62 = vadd.f32 1.0, %v5222_v39  ;;  %v2640_v14 = vmul.f32 0.00390625, %v2570_v56  ;;  %v4531_v23 = vmul.f32 -1.442695, %v8392_v16 }
 0x3b3   :  { %v2715_v55 = vsub.f32 %v2639_v36, %v2677_v31  ;;  %5239 = vpow2.f32 %v4526_v49  ;;  %3944 = vmatmul.mubr.bf16.gmra.mrb[60].mxu0 %v3715_v51  ;;  %v3044_v22 = vmul.f32 %v7859_v38, %v2957_v7  ;;  %v8407_v34 = vadd.f32 %v7869_v20, %v3042_v27 }
 0x3b4   :  { %v5224_v1 = vpop.eup %5223  ;;  %5241 = vrcp.f32 %v3430_v62  ;;  %v2716_v25 = vsub.f32 %v2640_v14, %v2678_v13  ;;  %v9728_v49 = vsub.f32 %v9721_v9, %v8314_v63 }
 0x3b5   :  { %v8402_v3 = vpop.eup %5225  ;;  %v3654_v12 = vmul.f32 %v5224_v1, %v8288_v19  ;;  %v2753_v41 = vmax.f32 %v2715_v55, 0.0  ;;  %5243 = vpow2.f32 %v4529_v54  ;;  %v8417_v19 = vadd.f32 %v7869_v20, %v3044_v22 }
 0x3b6   :  { %v5228_v2 = vpop.eup %5227  ;;  %v2960_v21 = vmul.f32 %v8402_v3, %v9728_v49  ;;  %5245 = vpow2.f32 %v4531_v23  ;;  %v4528_v7 = vmul.f32 -1.442695, %v8407_v34  ;;  %v2754_v31 = vmax.f32 %v2716_v25, 0.0 }
 0x3b7   :  { %v8413_v42 = vpop.eup %5229  ;;  %v3656_v30 = vmul.f32 %v5228_v2, %v8292_v0  ;;  %v2867_v39 = vadd.f32 0.001, %v2753_v41  ;;  %v9729_v0 = vld [vmem:[#allocation44_spill] sm:$0xff]  ;;  %v9731_v2 = vld [vmem:[#allocation35_spill] sm:$0xff]  ;;  %v4530_v49 = vmul.f32 -1.442695, %v8417_v19 }
 0x3b8   :  { %v5232_v27 = vpop.eup %5231  ;;  %v2962_v9 = vmul.f32 %v8413_v42, %v2810_v48  ;;  %v3047_v13 = vmul.f32 %v7866_v29, %v2960_v21  ;;  %5247 = vpow2.f32 %v4528_v7  ;;  %v2868_v1 = vadd.f32 0.001, %v2754_v31 }
 0x3b9   :  { %v2345_v36 = vpop.xlane.xlu0 %2344  ;;  %v5234_v56 = vpop.eup %5233  ;;  %v3718_v54 = vpack.c.bf16 %v3656_v30, %v3654_v12  ;;  %5249 = vrsqrt.f32 %v2867_v39  ;;  %v3653_v14 = vmul.f32 %v5232_v27, %v8305_v10  ;;  %v9732_v27 = vld [vmem:[#allocation54_spill] sm:$0xff] }
 0x3ba   :  { %v8427_v62 = vmul.f32 0.00390625, %v2345_v36  ;;  %v3432_v23 = vadd.f32 1.0, %v5234_v56  ;;  %v5236_v22 = vpop.eup %5235  ;;  %5251 = vrsqrt.f32 %v2868_v1  ;;  %v3049_v30 = vmul.f32 %v7866_v29, %v2962_v9 }
 0x3bb   :  { %v2348_v55 = vpop.xlane.xlu1 %2347  ;;  %3951 = vmatprep.mubr.bf16.mxu0 %v3718_v54  ;;  %v3429_v21 = vadd.f32 1.0, %v5236_v22  ;;  %v8439_v10 = vadd.f32 %v7872_v26, %v3047_v13 }
 0x3bc   :  { %v8434_v25 = vmul.f32 0.00390625, %v2348_v55  ;;  %v5238_v7 = vpop.eup %5237  ;;  %v2679_v31 = vmul.f32 %v8427_v62, %v8427_v62  ;;  %5253 = vrcp.f32 %v3432_v23  ;;  %v8449_v9 = vadd.f32 %v7872_v26, %v3049_v30 }
 0x3bd   :  { %v2573_v12 = vpop.xlane.xlu0 %2572  ;;  %v5240_v54 = vpop.eup %5239  ;;  %v3655_v55 = vmul.f32 %v5238_v7, %v8309_v44  ;;  %v4533_v13 = vmul.f32 -1.442695, %v8439_v10  ;;  %5255 = vrcp.f32 %v3429_v21 }
 0x3be   :  { %v2641_v36 = vmul.f32 0.00390625, %v2573_v12  ;;  %v2680_v56 = vmul.f32 %v8434_v25, %v8434_v25  ;;  %v5242_v22 = vpop.eup %5241  ;;  %v3431_v41 = vadd.f32 1.0, %v5240_v54  ;;  %v9733_v12 = vld [vmem:[#allocation41_spill] sm:$0xff]  ;;  %5257 = vpow2.f32 %v4530_v49 }
 0x3bf   :  { %v2576_v1 = vpop.xlane.xlu1 %2575  ;;  %v5244_v60 = vpop.eup %5243  ;;  %v3717_v45 = vpack.c.bf16 %v3655_v55, %v3653_v14  ;;  %v8455_v32 = vmul.f32 %v5242_v22, %v8334_v15  ;;  %v4535_v54 = vmul.f32 -1.442695, %v8449_v9  ;;  %v9734_v15 = vld [vmem:[#allocation43_spill] sm:$0xff] }
 0x3c0   :  { %v2717_v48 = vsub.f32 %v2641_v36, %v2679_v31  ;;  %v2642_v39 = vmul.f32 0.00390625, %v2576_v1  ;;  %v5246_v44 = vpop.eup %5245  ;;  %5259 = vrcp.f32 %v3431_v41  ;;  %v3434_v36 = vadd.f32 1.0, %v5244_v60 }
 0x3c1   :  { %v2351_v51 = vpop.xlane.xlu0 %2350  ;;  %3952 = vmatmul.mubr.bf16.gmra.mrb[64].mxu0 %v3717_v45  ;;  %v3436_v21 = vadd.f32 1.0, %v5246_v44  ;;  %5261 = vpow2.f32 %v4533_v13  ;;  %v9736_v45 = vld [vmem:[#allocation21_spill] sm:$0xff] }
 0x3c2   :  { %v2755_v23 = vmax.f32 %v2717_v48, 0.0  ;;  %v2718_v30 = vsub.f32 %v2642_v39, %v2680_v56  ;;  %v8457_v7 = vmul.f32 0.00390625, %v2351_v51  ;;  %v5248_v1 = vpop.eup %5247  ;;  %v9735_v48 = vsub.f32 %v9720_v50, %v8314_v63 }
 0x3c3   :  { %v2354_v31 = vpop.xlane.xlu1 %2353  ;;  %v8466_v49 = vpop.eup %5249  ;;  %5263 = vrcp.f32 %v3434_v36  ;;  %v3433_v56 = vadd.f32 1.0, %v5248_v1  ;;  %v9737_v63 = vsub.f32 %v9722_v58, %v8320_v57 }
 0x3c4   :  { %v2869_v17 = vadd.f32 0.001, %v2755_v23  ;;  %v2756_v14 = vmax.f32 %v2718_v30, 0.0  ;;  %v2959_v51 = vmul.f32 %v8402_v3, %v9735_v48  ;;  %v8470_v41 = vmul.f32 0.00390625, %v2354_v31  ;;  %v8478_v3 = vpop.eup %5251  ;;  %v9738_v23 = vld [vmem:[#allocation60_spill] sm:$0xff]  ;;  %v9739_v31 = vld [vmem:[#allocation61_spill] sm:$0xff] }
 0x3c5   :  { %v2579_v39 = vpop.xlane.xlu0 %2578  ;;  %v2681_v13 = vmul.f32 %v8457_v7, %v8457_v7  ;;  %v2961_v50 = vmul.f32 %v8413_v42, %v9737_v63  ;;  %v9741_v30 = vsub.f32 %v9729_v0, %v8387_v59 }
 0x3c6   :  { %5265 = vrsqrt.f32 %v2869_v17  ;;  %v2643_v22 = vmul.f32 0.00390625, %v2579_v39  ;;  %v2870_v44 = vadd.f32 0.001, %v2756_v14  ;;  %v2682_v48 = vmul.f32 %v8470_v41, %v8470_v41  ;;  %v5254_v58 = vpop.eup %5253 }
 0x3c7   :  { %v2582_v1 = vpop.xlane.xlu1 %2581  ;;  %5267 = vrcp.f32 %v3436_v21  ;;  %v3046_v57 = vmul.f32 %v7859_v38, %v2959_v51  ;;  %v3048_v42 = vmul.f32 %v7859_v38, %v2961_v50  ;;  %v9740_v14 = vsub.f32 %v9726_v6, %v8372_v35 }
 0x3c8   :  { %v2719_v17 = vsub.f32 %v2643_v22, %v2681_v13  ;;  %v2644_v39 = vmul.f32 0.00390625, %v2582_v1  ;;  %5269 = vrcp.f32 %v3433_v56  ;;  %v2966_v21 = vmul.f32 %v8478_v3, %v9741_v30  ;;  %v5256_v13 = vpop.eup %5255 }
 0x3c9   :  { %v2964_v63 = vmul.f32 %v8466_v49, %v9740_v14  ;;  %v3660_v1 = vmul.f32 %v5254_v58, %v8337_v46  ;;  %5271 = vpow2.f32 %v4535_v54  ;;  %v5258_v51 = vpop.eup %5257  ;;  %v3657_v56 = vmul.f32 %v5256_v13, %v8352_v40 }
 0x3ca   :  { %v2757_v22 = vmax.f32 %v2719_v17, 0.0  ;;  %v2720_v55 = vsub.f32 %v2644_v39, %v2682_v48  ;;  %5273 = vrsqrt.f32 %v2870_v44  ;;  %v8499_v50 = vadd.f32 %v7869_v20, %v3046_v57  ;;  %v5260_v14 = vpop.eup %5259 }
 0x3cb   :  { %v8502_v6 = vadd.f32 %v7869_v20, %v3048_v42  ;;  %v3720_v17 = vpack.c.bf16 %v3660_v1, %v8455_v32  ;;  %v3051_v48 = vmul.f32 %v7866_v29, %v2964_v63  ;;  %v5262_v46 = vpop.eup %5261  ;;  %v3659_v44 = vmul.f32 %v5260_v14, %v8365_v8  ;;  %v9746_v1 = vld [vmem:[#allocation2_spill] sm:$0xff] }
 0x3cc   :  { %v2871_v0 = vadd.f32 0.001, %v2757_v22  ;;  %v2758_v36 = vmax.f32 %v2720_v55, 0.0  ;;  %v3435_v40 = vadd.f32 1.0, %v5258_v51  ;;  %v4532_v39 = vmul.f32 -1.442695, %v8499_v50 }
 0x3cd   :  { %3959 = vmatprep.mubr.bf16.mxu0 %v3720_v17  ;;  %v4534_v42 = vmul.f32 -1.442695, %v8502_v6  ;;  %v3053_v55 = vmul.f32 %v7866_v29, %v2966_v21  ;;  %v5264_v13 = vpop.eup %5263  ;;  %v9744_v22 = vld [vmem:[#allocation5_spill] sm:$0xff]  ;;  %v3438_v8 = vadd.f32 1.0, %v5262_v46  ;;  %v8523_v21 = vadd.f32 %v7872_v26, %v3051_v48 }
 0x3ce   :  { %v2357_v30 = vpop.xlane.xlu0 %2356  ;;  %5275 = vrsqrt.f32 %v2871_v0  ;;  %v2872_v57 = vadd.f32 0.001, %v2758_v36  ;;  %v3719_v0 = vpack.c.bf16 %v3659_v44, %v3657_v56  ;;  %v3662_v46 = vmul.f32 %v5264_v13, %v8380_v61 }
 0x3cf   :  { %v8506_v54 = vmul.f32 0.00390625, %v2357_v30  ;;  %v8534_v48 = vadd.f32 %v7872_v26, %v3053_v55 }
 0x3d0   :  { %v2360_v58 = vpop.xlane.xlu1 %2359  ;;  %v8518_v51 = vpop.eup %5265  ;;  %5277 = vrsqrt.f32 %v2872_v57  ;;  %3960 = vmatmul.mubr.bf16.gmra.mrb[68].mxu0 %v3719_v0 }
 0x3d1   :  { %9742 = vst [vmem:[#allocation15_spill] sm:$0xff] %v8506_v54  ;;  %v8516_v30 = vmul.f32 0.00390625, %v2360_v58  ;;  %v2683_v36 = vmul.f32 %v8506_v54, %v8506_v54  ;;  %v5268_v17 = vpop.eup %5267  ;;  %5279 = vrcp.f32 %v3435_v40 }
 0x3d2   :  { %v2585_v14 = vpop.xlane.xlu0 %2584  ;;  %v3664_v56 = vmul.f32 %v5268_v17, %v8392_v16  ;;  %v5270_v44 = vpop.eup %5269  ;;  %5281 = vrcp.f32 %v3438_v8  ;;  %v4537_v16 = vmul.f32 -1.442695, %v8523_v21 }
 0x3d3   :  { %v2645_v37 = vmul.f32 0.00390625, %v2585_v14  ;;  %v2684_v57 = vmul.f32 %v8516_v30, %v8516_v30  ;;  %v9747_v14 = vsub.f32 %v9725_v4, %v8372_v35  ;;  %v5272_v13 = vpop.eup %5271  ;;  %v8541_v0 = vmul.f32 %v5270_v44, %v8407_v34 }
 0x3d4   :  { %v2588_v32 = vpop.xlane.xlu1 %2587  ;;  %v3722_v63 = vpack.c.bf16 %v3664_v56, %v3662_v46  ;;  %5283 = vpow2.f32 %v4532_v39  ;;  %v8544_v40 = vpop.eup %5273  ;;  %v3440_v8 = vadd.f32 1.0, %v5272_v13  ;;  %v4539_v35 = vmul.f32 -1.442695, %v8534_v48 }
 0x3d5   :  { %v2721_v54 = vsub.f32 %v2645_v37, %v2683_v36  ;;  %v2646_v60 = vmul.f32 0.00390625, %v2588_v32  ;;  %v2963_v61 = vmul.f32 %v8466_v49, %v9747_v14  ;;  %5285 = vpow2.f32 %v4534_v42  ;;  %v9752_v14 = vld [vmem:[#allocation57_spill] sm:$0xff] }
 0x3d6   :  { %v2363_v58 = vpop.xlane.xlu0 %2362  ;;  %3967 = vmatprep.mubr.bf16.mxu0 %v3722_v63  ;;  %v9748_v4 = vsub.f32 %v9727_v52, %v8387_v59  ;;  %5287 = vrcp.f32 %v3440_v8 }
 0x3d7   :  { %v2759_v55 = vmax.f32 %v2721_v54, 0.0  ;;  %v2722_v37 = vsub.f32 %v2646_v60, %v2684_v57  ;;  %v8546_v32 = vmul.f32 0.00390625, %v2363_v58  ;;  %v3050_v49 = vmul.f32 %v7859_v38, %v2963_v61 }
 0x3d8   :  { %v2366_v36 = vpop.xlane.xlu1 %2365  ;;  %v2965_v34 = vmul.f32 %v8478_v3, %v9748_v4  ;;  %v9750_v58 = vsub.f32 %v9731_v2, %v8427_v62  ;;  %v8560_v42 = vpop.eup %5275 }
 0x3d9   :  { %v2873_v39 = vadd.f32 0.001, %v2759_v55  ;;  %v2760_v17 = vmax.f32 %v2722_v37, 0.0  ;;  %v8562_v46 = vmul.f32 0.00390625, %v2366_v36  ;;  %v2685_v59 = vmul.f32 %v8546_v32, %v8546_v32 }
 0x3da   :  { %v2968_v63 = vmul.f32 %v8518_v51, %v9750_v58  ;;  %v2591_v52 = vpop.xlane.xlu0 %2590  ;;  %v3052_v3 = vmul.f32 %v7859_v38, %v2965_v34  ;;  %v8568_v44 = vadd.f32 %v7869_v20, %v3050_v49  ;;  %v8570_v2 = vpop.eup %5277 }
 0x3db   :  { %9751 = vst [vmem:[#allocation18_spill] sm:$0xff] %v8562_v46  ;;  %5289 = vrsqrt.f32 %v2873_v39  ;;  %v2874_v57 = vadd.f32 0.001, %v2760_v17  ;;  %v2647_v56 = vmul.f32 0.00390625, %v2591_v52  ;;  %v2686_v37 = vmul.f32 %v8562_v46, %v8562_v46  ;;  %v5280_v49 = vpop.eup %5279 }
 0x3dc   :  { %v2594_v8 = vpop.xlane.xlu1 %2593  ;;  %5291 = vpow2.f32 %v4537_v16  ;;  %v8579_v34 = vadd.f32 %v7869_v20, %v3052_v3  ;;  %v4536_v58 = vmul.f32 -1.442695, %v8568_v44  ;;  %v9754_v52 = vsub.f32 %v9733_v12, %v8434_v25  ;;  %v5282_v16 = vpop.eup %5281 }
 0x3dd   :  { %5293 = vrsqrt.f32 %v2874_v57  ;;  %v2723_v36 = vsub.f32 %v2647_v56, %v2685_v59  ;;  %v2648_v4 = vmul.f32 0.00390625, %v2594_v8  ;;  %v3663_v3 = vmul.f32 %v5280_v49, %v8417_v19 }
 0x3de   :  { %v2369_v17 = vpop.xlane.xlu0 %2368  ;;  %5295 = vpow2.f32 %v4539_v35  ;;  %v2970_v55 = vmul.f32 %v8544_v40, %v9754_v52  ;;  %v5284_v8 = vpop.eup %5283  ;;  %v3666_v39 = vmul.f32 %v5282_v16, %v8439_v10  ;;  %v4538_v35 = vmul.f32 -1.442695, %v8579_v34 }
 0x3df   :  { %v2761_v57 = vmax.f32 %v2723_v36, 0.0  ;;  %v2724_v59 = vsub.f32 %v2648_v4, %v2686_v37  ;;  %v8588_v56 = vmul.f32 0.00390625, %v2369_v17  ;;  %5297 = vpow2.f32 %v4536_v58  ;;  %v5286_v36 = vpop.eup %5285 }
 0x3e0   :  { %v2372_v60 = vpop.xlane.xlu1 %2371  ;;  %v3055_v61 = vmul.f32 %v7866_v29, %v2968_v63  ;;  %v3057_v37 = vmul.f32 %v7866_v29, %v2970_v55  ;;  %v3721_v10 = vpack.c.bf16 %v3663_v3, %v8541_v0  ;;  %v3437_v17 = vadd.f32 1.0, %v5284_v8 }
 0x3e1   :  { %v2875_v13 = vadd.f32 0.001, %v2761_v57  ;;  %v2762_v12 = vmax.f32 %v2724_v59, 0.0  ;;  %v8597_v4 = vmul.f32 0.00390625, %v2372_v60  ;;  %v2687_v19 = vmul.f32 %v8588_v56, %v8588_v56  ;;  %v5288_v57 = vpop.eup %5287  ;;  %v9757_v59 = vld [vmem:[#allocation8_spill] sm:$0xff] }
 0x3e2   :  { %v2597_v49 = vpop.xlane.xlu0 %2596  ;;  %v3439_v16 = vadd.f32 1.0, %v5286_v36  ;;  %3968 = vmatmul.mubr.bf16.gmra.mrb[72].mxu0 %v3721_v10  ;;  %v3668_v3 = vmul.f32 %v5288_v57, %v8449_v9  ;;  %v8614_v52 = vadd.f32 %v7872_v26, %v3055_v61  ;;  %v8617_v54 = vadd.f32 %v7872_v26, %v3057_v37 }
 0x3e3   :  { %9756 = vst [vmem:[#allocation25_spill] sm:$0xff] %v8597_v4  ;;  %5299 = vrsqrt.f32 %v2875_v13  ;;  %v2876_v58 = vadd.f32 0.001, %v2762_v12  ;;  %v2649_v63 = vmul.f32 0.00390625, %v2597_v49  ;;  %v2688_v60 = vmul.f32 %v8597_v4, %v8597_v4  ;;  %v9759_v12 = vld [vmem:[#allocation32_spill] sm:$0xff]  ;;  %v9761_v4 = vld [vmem:[#allocation13_spill] sm:$0xff] }
 0x3e4   :  { %v2600_v46 = vpop.xlane.xlu1 %2599  ;;  %5301 = vrcp.f32 %v3437_v17  ;;  %v4541_v36 = vmul.f32 -1.442695, %v8614_v52  ;;  %v9760_v61 = vsub.f32 %v9730_v18, %v8427_v62 }
 0x3e5   :  { %v8608_v47 = vpop.eup %5289  ;;  %5303 = vrsqrt.f32 %v2876_v58  ;;  %v2725_v0 = vsub.f32 %v2649_v63, %v2687_v19  ;;  %v2650_v13 = vmul.f32 0.00390625, %v2600_v46  ;;  %v3724_v46 = vpack.c.bf16 %v3668_v3, %v3666_v39 }
 0x3e6   :  { %v5292_v8 = vpop.eup %5291  ;;  %v2375_v49 = vpop.xlane.xlu0 %2374  ;;  %5305 = vrcp.f32 %v3439_v16  ;;  %v2967_v16 = vmul.f32 %v8518_v51, %v9760_v61 }
 0x3e7   :  { %v8619_v10 = vpop.eup %5293  ;;  %v2763_v17 = vmax.f32 %v2725_v0, 0.0  ;;  %v2726_v58 = vsub.f32 %v2650_v13, %v2688_v60  ;;  %v8621_v19 = vmul.f32 0.00390625, %v2375_v49  ;;  %v3442_v57 = vadd.f32 1.0, %v5292_v8  ;;  %3975 = vmatprep.mubr.bf16.mxu0 %v3724_v46  ;;  %v9762_v49 = vld [vmem:[#allocation46_spill] sm:$0xff] }
 0x3e8   :  { %v5296_v9 = vpop.eup %5295  ;;  %v2378_v63 = vpop.xlane.xlu1 %2377  ;;  %5307 = vpow2.f32 %v4538_v35  ;;  %v4543_v60 = vmul.f32 -1.442695, %v8617_v54 }
 0x3e9   :  { %v2877_v37 = vadd.f32 0.001, %v2763_v17  ;;  %v2764_v55 = vmax.f32 %v2726_v58, 0.0  ;;  %v5298_v39 = vpop.eup %5297  ;;  %v8631_v13 = vmul.f32 0.00390625, %v2378_v63  ;;  %v2689_v35 = vmul.f32 %v8621_v19, %v8621_v19 }
 0x3ea   :  { %v2603_v3 = vpop.xlane.xlu0 %2602  ;;  %v3444_v8 = vadd.f32 1.0, %v5296_v9  ;;  %5309 = vrcp.f32 %v3442_v57  ;;  %v3441_v51 = vadd.f32 1.0, %v5298_v39  ;;  %v3054_v58 = vmul.f32 %v7859_v38, %v2967_v16 }
 0x3eb   :  { %5311 = vrsqrt.f32 %v2877_v37  ;;  %v2878_v62 = vadd.f32 0.001, %v2764_v55  ;;  %v2651_v18 = vmul.f32 0.00390625, %v2603_v3  ;;  %v2690_v63 = vmul.f32 %v8631_v13, %v8631_v13  ;;  %v9765_v3 = vld [vmem:[#allocation12_spill] sm:$0xff] }
 0x3ec   :  { %v2606_v61 = vpop.xlane.xlu1 %2605  ;;  %5313 = vrcp.f32 %v3444_v8  ;;  %v9764_v55 = vsub.f32 %v9732_v27, %v8434_v25  ;;  %v9766_v8 = vsub.f32 %v9736_v45, %v8457_v7  ;;  %v9767_v27 = vsub.f32 %v9739_v31, %v8470_v41 }
 0x3ed   :  { %v8641_v0 = vpop.eup %5299  ;;  %5315 = vrsqrt.f32 %v2878_v62  ;;  %v2727_v9 = vsub.f32 %v2651_v18, %v2689_v35  ;;  %v2652_v57 = vmul.f32 0.00390625, %v2606_v61 }
 0x3ee   :  { %v2969_v37 = vmul.f32 %v8544_v40, %v9764_v55  ;;  %v5302_v39 = vpop.eup %5301  ;;  %v2381_v46 = vpop.xlane.xlu0 %2380  ;;  %5317 = vrcp.f32 %v3441_v51  ;;  %v2972_v62 = vmul.f32 %v8560_v42, %v9766_v8  ;;  %v2974_v40 = vmul.f32 %v8570_v2, %v9767_v27 }
 0x3ef   :  { %v8654_v35 = vpop.eup %5303  ;;  %v2765_v18 = vmax.f32 %v2727_v9, 0.0  ;;  %v2728_v61 = vsub.f32 %v2652_v57, %v2690_v63  ;;  %v8656_v25 = vmul.f32 0.00390625, %v2381_v46  ;;  %v3665_v51 = vmul.f32 %v5302_v39, %v8499_v50 }
 0x3f0   :  { %v5306_v55 = vpop.eup %5305  ;;  %v2384_v16 = vpop.xlane.xlu1 %2383  ;;  %5319 = vpow2.f32 %v4541_v36  ;;  %v3056_v45 = vmul.f32 %v7859_v38, %v2969_v37  ;;  %v8665_v8 = vadd.f32 %v7869_v20, %v3054_v58  ;;  %v3059_v63 = vmul.f32 %v7866_v29, %v2972_v62 }
 0x3f1   :  { %v2879_v17 = vadd.f32 0.001, %v2765_v18  ;;  %v2766_v9 = vmax.f32 %v2728_v61, 0.0  ;;  %v3667_v46 = vmul.f32 %v5306_v55, %v8502_v6  ;;  %v8673_v39 = vmul.f32 0.00390625, %v2384_v16 }
 0x3f2   :  { %v5308_v57 = vpop.eup %5307  ;;  %v2609_v36 = vpop.xlane.xlu0 %2608  ;;  %5321 = vpow2.f32 %v4543_v60  ;;  %v2691_v18 = vmul.f32 %v8656_v25, %v8656_v25  ;;  %v4540_v62 = vmul.f32 -1.442695, %v8665_v8  ;;  %v3061_v50 = vmul.f32 %v7866_v29, %v2974_v40 }
 0x3f3   :  { %v2880_v37 = vadd.f32 0.001, %v2766_v9  ;;  %v3723_v58 = vpack.c.bf16 %v3667_v46, %v3665_v51  ;;  %v2653_v61 = vmul.f32 0.00390625, %v2609_v36  ;;  %5323 = vrsqrt.f32 %v2879_v17 }
 0x3f4   :  { %v5310_v6 = vpop.eup %5309  ;;  %v2692_v27 = vmul.f32 %v8673_v39, %v8673_v39  ;;  %v2612_v55 = vpop.xlane.xlu1 %2611  ;;  %v3443_v31 = vadd.f32 1.0, %v5308_v57  ;;  %v8685_v17 = vadd.f32 %v7869_v20, %v3056_v45 }
 0x3f5   :  { %v8681_v16 = vpop.eup %5311  ;;  %5325 = vrsqrt.f32 %v2880_v37  ;;  %3976 = vmatmul.mubr.bf16.gmra.mrb[76].mxu0 %v3723_v58  ;;  %v2729_v60 = vsub.f32 %v2653_v61, %v2691_v18  ;;  %v3670_v51 = vmul.f32 %v5310_v6, %v8523_v21  ;;  %v2654_v9 = vmul.f32 0.00390625, %v2612_v55 }
 0x3f6   :  { %v5314_v46 = vpop.eup %5313  ;;  %5327 = vrcp.f32 %v3443_v31  ;;  %v2387_v36 = vpop.xlane.xlu0 %2386  ;;  %v4542_v45 = vmul.f32 -1.442695, %v8685_v17  ;;  %v8698_v6 = vadd.f32 %v7872_v26, %v3059_v63 }
 0x3f7   :  { %v8689_v24 = vpop.eup %5315  ;;  %v2767_v57 = vmax.f32 %v2729_v60, 0.0  ;;  %v3672_v37 = vmul.f32 %v5314_v46, %v8534_v48  ;;  %v2730_v58 = vsub.f32 %v2654_v9, %v2692_v27  ;;  %v8692_v18 = vmul.f32 0.00390625, %v2387_v36 }
 0x3f8   :  { %v5318_v21 = vpop.eup %5317  ;;  %v2390_v61 = vpop.xlane.xlu1 %2389  ;;  %5329 = vpow2.f32 %v4540_v62  ;;  %v8701_v60 = vadd.f32 %v7872_v26, %v3061_v50 }
 0x3f9   :  { %v2881_v40 = vadd.f32 0.001, %v2767_v57  ;;  %v3726_v55 = vpack.c.bf16 %v3672_v37, %v3670_v51  ;;  %v2768_v33 = vmax.f32 %v2730_v58, 0.0  ;;  %v3669_v27 = vmul.f32 %v5318_v21, %v8568_v44 }
 0x3fa   :  { %v5320_v48 = vpop.eup %5319  ;;  %v8706_v46 = vmul.f32 0.00390625, %v2390_v61  ;;  %v2693_v62 = vmul.f32 %v8692_v18, %v8692_v18  ;;  %v2615_v36 = vpop.xlane.xlu0 %2614 }
 0x3fb   :  { %5331 = vrsqrt.f32 %v2881_v40  ;;  %3983 = vmatprep.mubr.bf16.mxu0 %v3726_v55  ;;  %v2882_v63 = vadd.f32 0.001, %v2768_v33  ;;  %v2655_v51 = vmul.f32 0.00390625, %v2615_v36  ;;  %v3446_v57 = vadd.f32 1.0, %v5320_v48 }
 0x3fc   :  { %v5322_v37 = vpop.eup %5321  ;;  %v2694_v58 = vmul.f32 %v8706_v46, %v8706_v46  ;;  %v2618_v21 = vpop.xlane.xlu1 %2617  ;;  %5333 = vpow2.f32 %v4542_v45  ;;  %v4545_v33 = vmul.f32 -1.442695, %v8698_v6  ;;  %v4547_v48 = vmul.f32 -1.442695, %v8701_v60 }
 0x3fd   :  { %5335 = vrsqrt.f32 %v2882_v63  ;;  %v2731_v61 = vsub.f32 %v2655_v51, %v2693_v62  ;;  %v3448_v9 = vadd.f32 1.0, %v5322_v37  ;;  %v2656_v40 = vmul.f32 0.00390625, %v2618_v21  ;;  %v8716_v55 = vpop.eup %5323  ;;  %v9770_v37 = vld [vmem:[#allocation15_spill] sm:$0xff] }
 0x3fe   :  { %5337 = vrcp.f32 %v3446_v57  ;;  %v9768_v36 = vsub.f32 %v9734_v15, %v8457_v7  ;;  %v9769_v62 = vsub.f32 %v9738_v23, %v8470_v41  ;;  %v9771_v21 = vsub.f32 %v9744_v22, %v9770_v37 }
 0x3ff   :  { %v8724_v50 = vpop.eup %5325  ;;  %v2769_v31 = vmax.f32 %v2731_v61, 0.0  ;;  %5339 = vrcp.f32 %v3448_v9  ;;  %v2732_v45 = vsub.f32 %v2656_v40, %v2694_v58  ;;  %v9772_v15 = vsub.f32 %v9746_v1, %v8516_v30 }
 0x400   :  { %v2971_v44 = vmul.f32 %v8560_v42, %v9768_v36  ;;  %v2973_v63 = vmul.f32 %v8570_v2, %v9769_v62  ;;  %v5328_v51 = vpop.eup %5327  ;;  %5341 = vpow2.f32 %v4545_v33  ;;  %v2976_v7 = vmul.f32 %v8608_v47, %v9771_v21  ;;  %v9773_v62 = vld [vmem:[#allocation22_spill] sm:$0xff] }
 0x401   :  { %v2978_v42 = vmul.f32 %v8619_v10, %v9772_v15  ;;  %v3671_v9 = vmul.f32 %v5328_v51, %v8579_v34  ;;  %v2883_v58 = vadd.f32 0.001, %v2769_v31  ;;  %v2770_v41 = vmax.f32 %v2732_v45, 0.0  ;;  %v9775_v51 = vld [vmem:[#allocation24_spill] sm:$0xff] }
 0x402   :  { %v3058_v57 = vmul.f32 %v7859_v38, %v2971_v44  ;;  %5343 = vpow2.f32 %v4547_v48  ;;  %v5330_v23 = vpop.eup %5329  ;;  %v3060_v2 = vmul.f32 %v7859_v38, %v2973_v63  ;;  %v3063_v22 = vmul.f32 %v7866_v29, %v2976_v7 }
 0x403   :  { %v3065_v61 = vmul.f32 %v7866_v29, %v2978_v42  ;;  %v3725_v40 = vpack.c.bf16 %v3671_v9, %v3669_v27  ;;  %5345 = vrsqrt.f32 %v2883_v58  ;;  %v2884_v1 = vadd.f32 0.001, %v2770_v41 }
 0x404   :  { %v8742_v44 = vadd.f32 %v7869_v20, %v3058_v57  ;;  %v3445_v33 = vadd.f32 1.0, %v5330_v23  ;;  %v8747_v36 = vadd.f32 %v7869_v20, %v3060_v2  ;;  %v8751_v31 = vadd.f32 %v7872_v26, %v3063_v22  ;;  %v9779_v2 = vld [vmem:[#allocation18_spill] sm:$0xff] }
 0x405   :  { %v8754_v48 = vadd.f32 %v7872_v26, %v3065_v61  ;;  %v8756_v45 = vpop.eup %5331  ;;  %3984 = vmatmul.mubr.bf16.gmra.mrb[80].mxu0 %v3725_v40  ;;  %5347 = vrsqrt.f32 %v2884_v1  ;;  %v9774_v27 = vsub.f32 %v9773_v62, %v9770_v37  ;;  %v9776_v57 = vsub.f32 %v9775_v51, %v8516_v30  ;;  %v9781_v1 = vld [vmem:[#allocation4_spill] sm:$0xff] }
 0x406   :  { %v4544_v34 = vmul.f32 -1.442695, %v8742_v44  ;;  %v9777_v7 = vsub.f32 %v9752_v14, %v8546_v32  ;;  %v5334_v42 = vpop.eup %5333  ;;  %5349 = vrcp.f32 %v3445_v33  ;;  %v4546_v9 = vmul.f32 -1.442695, %v8747_v36  ;;  %v9778_v14 = vld [vmem:[#allocation29_spill] sm:$0xff] }
 0x407   :  { %v2975_v63 = vmul.f32 %v8608_v47, %v9774_v27  ;;  %v2977_v21 = vmul.f32 %v8619_v10, %v9776_v57  ;;  %v4549_v58 = vmul.f32 -1.442695, %v8751_v31  ;;  %v4551_v37 = vmul.f32 -1.442695, %v8754_v48  ;;  %v8773_v41 = vpop.eup %5335 }
 0x408   :  { %v2980_v15 = vmul.f32 %v8641_v0, %v9777_v7  ;;  %v3447_v47 = vadd.f32 1.0, %v5334_v42  ;;  %5351 = vpow2.f32 %v4544_v34  ;;  %v5338_v23 = vpop.eup %5337  ;;  %v9780_v22 = vsub.f32 %v9778_v14, %v9779_v2 }
 0x409   :  { %v3062_v30 = vmul.f32 %v7859_v38, %v2975_v63  ;;  %v3064_v10 = vmul.f32 %v7859_v38, %v2977_v21  ;;  %5353 = vpow2.f32 %v4546_v9  ;;  %v9782_v33 = vsub.f32 %v9781_v1, %v8546_v32  ;;  %v5340_v27 = vpop.eup %5339  ;;  %v9786_v1 = vld [vmem:[#allocation25_spill] sm:$0xff] }
 0x40a   :  { %v2982_v61 = vmul.f32 %v8654_v35, %v9780_v22  ;;  %v3067_v40 = vmul.f32 %v7866_v29, %v2980_v15  ;;  %v3674_v34 = vmul.f32 %v5338_v23, %v8614_v52  ;;  %5355 = vrcp.f32 %v3447_v47  ;;  %v5342_v57 = vpop.eup %5341 }
 0x40b   :  { %v2979_v62 = vmul.f32 %v8641_v0, %v9782_v33  ;;  %v8788_v63 = vadd.f32 %v7869_v20, %v3062_v30  ;;  %v8791_v51 = vadd.f32 %v7869_v20, %v3064_v10  ;;  %v3676_v21 = vmul.f32 %v5340_v27, %v8617_v54  ;;  %v9783_v10 = vld [vmem:[#allocation9_spill] sm:$0xff] }
 0x40c   :  { %5357 = vpow2.f32 %v4549_v58  ;;  %v3069_v7 = vmul.f32 %v7866_v29, %v2982_v61  ;;  %v8796_v32 = vadd.f32 %v7872_v26, %v3067_v40  ;;  %v5344_v0 = vpop.eup %5343  ;;  %v3450_v15 = vadd.f32 1.0, %v5342_v57 }
 0x40d   :  { %5359 = vpow2.f32 %v4551_v37  ;;  %v4548_v52 = vmul.f32 -1.442695, %v8788_v63  ;;  %v4550_v42 = vmul.f32 -1.442695, %v8791_v51  ;;  %v3728_v9 = vpack.c.bf16 %v3676_v21, %v3674_v34  ;;  %v8804_v58 = vpop.eup %5345  ;;  %v9788_v34 = vld [vmem:[#allocation6_spill] sm:$0xff] }
 0x40e   :  { %v3452_v47 = vadd.f32 1.0, %v5344_v0  ;;  %v8801_v30 = vadd.f32 %v7872_v26, %v3069_v7  ;;  %v4553_v54 = vmul.f32 -1.442695, %v8796_v32  ;;  %5361 = vrcp.f32 %v3450_v15  ;;  %v9790_v0 = vld [vmem:[#allocation11_spill] sm:$0xff] }
 0x40f   :  { %v9784_v23 = vsub.f32 %v9783_v10, %v9779_v2  ;;  %v3066_v37 = vmul.f32 %v7859_v38, %v2979_v62  ;;  %v9785_v22 = vsub.f32 %v9757_v59, %v8588_v56  ;;  %3991 = vmatprep.mubr.bf16.mxu0 %v3728_v9  ;;  %v9787_v33 = vsub.f32 %v9759_v12, %v9786_v1  ;;  %v8824_v62 = vpop.eup %5347 }
 0x410   :  { %5363 = vrcp.f32 %v3452_v47  ;;  %v4555_v40 = vmul.f32 -1.442695, %v8801_v30  ;;  %v9789_v2 = vsub.f32 %v9788_v34, %v8588_v56  ;;  %v5350_v7 = vpop.eup %5349  ;;  %v9791_v15 = vsub.f32 %v9790_v0, %v9786_v1 }
 0x411   :  { %v2981_v14 = vmul.f32 %v8654_v35, %v9784_v23  ;;  %v2984_v61 = vmul.f32 %v8681_v16, %v9785_v22  ;;  %v2986_v27 = vmul.f32 %v8689_v24, %v9787_v33  ;;  %5365 = vpow2.f32 %v4548_v52 }
 0x412   :  { %v2983_v35 = vmul.f32 %v8681_v16, %v9789_v2  ;;  %v8828_v57 = vadd.f32 %v7869_v20, %v3066_v37  ;;  %5367 = vpow2.f32 %v4550_v42  ;;  %v2985_v56 = vmul.f32 %v8689_v24, %v9791_v15  ;;  %v5352_v9 = vpop.eup %5351 }
 0x413   :  { %v3068_v59 = vmul.f32 %v7859_v38, %v2981_v14  ;;  %v3071_v21 = vmul.f32 %v7866_v29, %v2984_v61  ;;  %v3073_v12 = vmul.f32 %v7866_v29, %v2986_v27  ;;  %v3673_v52 = vmul.f32 %v5350_v7, %v8665_v8  ;;  %v5354_v23 = vpop.eup %5353 }
 0x414   :  { %v3070_v16 = vmul.f32 %v7859_v38, %v2983_v35  ;;  %5369 = vpow2.f32 %v4553_v54  ;;  %v4552_v10 = vmul.f32 -1.442695, %v8828_v57  ;;  %v3449_v42 = vadd.f32 1.0, %v5352_v9  ;;  %v5356_v24 = vpop.eup %5355 }
 0x415   :  { %v8839_v47 = vadd.f32 %v7869_v20, %v3068_v59  ;;  %5371 = vpow2.f32 %v4555_v40  ;;  %v8843_v14 = vadd.f32 %v7872_v26, %v3071_v21  ;;  %v8846_v37 = vadd.f32 %v7872_v26, %v3073_v12 }
 0x416   :  { %v3451_v22 = vadd.f32 1.0, %v5354_v23  ;;  %5373 = vpow2.f32 %v4552_v10  ;;  %v3072_v54 = vmul.f32 %v7859_v38, %v2985_v56  ;;  %v5358_v61 = vpop.eup %5357  ;;  %v3675_v1 = vmul.f32 %v5356_v24, %v8685_v17 }
 0x417   :  { %v4554_v8 = vmul.f32 -1.442695, %v8839_v47  ;;  %5375 = vrcp.f32 %v3449_v42  ;;  %v4557_v33 = vmul.f32 -1.442695, %v8843_v14  ;;  %v4559_v40 = vmul.f32 -1.442695, %v8846_v37  ;;  %v5360_v27 = vpop.eup %5359 }
 0x418   :  { %5377 = vrcp.f32 %v3451_v22  ;;  %v3454_v34 = vadd.f32 1.0, %v5358_v61  ;;  %v8854_v2 = vadd.f32 %v7869_v20, %v3070_v16  ;;  %v8857_v35 = vadd.f32 %v7869_v20, %v3072_v54  ;;  %v5362_v12 = vpop.eup %5361  ;;  %v9795_v22 = vld [vmem:[#allocation10_spill] sm:$0xff] }
 0x419   :  { %v3727_v59 = vpack.c.bf16 %v3675_v1, %v3673_v52  ;;  %v3456_v21 = vadd.f32 1.0, %v5360_v27  ;;  %5379 = vpow2.f32 %v4554_v8  ;;  %v9792_v17 = vsub.f32 %v9762_v49, %v8621_v19 }
 0x41a   :  { %5381 = vrcp.f32 %v3454_v34  ;;  %v4556_v0 = vmul.f32 -1.442695, %v8854_v2  ;;  %v4558_v15 = vmul.f32 -1.442695, %v8857_v35  ;;  %v9793_v56 = vsub.f32 %v9765_v3, %v8631_v13  ;;  %v5364_v9 = vpop.eup %5363 }
 0x41b   :  { %v2988_v7 = vmul.f32 %v8716_v55, %v9792_v17  ;;  %3992 = vmatmul.mubr.bf16.gmra.mrb[84].mxu0 %v3727_v59  ;;  %v3678_v52 = vmul.f32 %v5362_v12, %v8698_v6  ;;  %5383 = vrcp.f32 %v3456_v21  ;;  %v9794_v10 = vsub.f32 %v9761_v4, %v8621_v19  ;;  %v5366_v42 = vpop.eup %5365 }
 0x41c   :  { %v2990_v16 = vmul.f32 %v8724_v50, %v9793_v56  ;;  %v3680_v24 = vmul.f32 %v5364_v9, %v8701_v60  ;;  %5385 = vpow2.f32 %v4557_v33  ;;  %v9796_v8 = vsub.f32 %v9795_v22, %v8631_v13  ;;  %v5368_v6 = vpop.eup %5367 }
 0x41d   :  { %v3075_v49 = vmul.f32 %v7866_v29, %v2988_v7  ;;  %v2987_v23 = vmul.f32 %v8716_v55, %v9794_v10  ;;  %v3453_v61 = vadd.f32 1.0, %v5366_v42  ;;  %5387 = vpow2.f32 %v4559_v40 }
 0x41e   :  { %v3077_v3 = vmul.f32 %v7866_v29, %v2990_v16  ;;  %v2989_v54 = vmul.f32 %v8724_v50, %v9796_v8  ;;  %v5370_v19 = vpop.eup %5369  ;;  %v3730_v55 = vpack.c.bf16 %v3680_v24, %v3678_v52  ;;  %v3455_v27 = vadd.f32 1.0, %v5368_v6 }
 0x41f   :  { %v8882_v1 = vadd.f32 %v7872_v26, %v3075_v49  ;;  %v3074_v4 = vmul.f32 %v7859_v38, %v2987_v23  ;;  %5389 = vpow2.f32 %v4556_v0  ;;  %v5372_v33 = vpop.eup %5371  ;;  %v3458_v13 = vadd.f32 1.0, %v5370_v19 }
 0x420   :  { %v8886_v60 = vadd.f32 %v7872_v26, %v3077_v3  ;;  %5391 = vrcp.f32 %v3453_v61  ;;  %v3076_v34 = vmul.f32 %v7859_v38, %v2989_v54  ;;  %v5374_v40 = vpop.eup %5373  ;;  %3999 = vmatprep.mubr.bf16.mxu0 %v3730_v55  ;;  %v3460_v59 = vadd.f32 1.0, %v5372_v33  ;;  %v9799_v54 = vld [vmem:[#allocation17_spill] sm:$0xff]  ;;  %v9801_v33 = vld [vmem:[#allocation48_spill] sm:$0xff] }
 0x421   :  { %v4561_v50 = vmul.f32 -1.442695, %v8882_v1  ;;  %5393 = vrcp.f32 %v3455_v27  ;;  %v8892_v17 = vadd.f32 %v7869_v20, %v3074_v4  ;;  %v5376_v7 = vpop.eup %5375  ;;  %v3457_v12 = vadd.f32 1.0, %v5374_v40 }
 0x422   :  { %v4563_v21 = vmul.f32 -1.442695, %v8886_v60  ;;  %5395 = vrcp.f32 %v3458_v13  ;;  %v8895_v0 = vadd.f32 %v7869_v20, %v3076_v34  ;;  %v9797_v56 = vsub.f32 %v8067_v43, %v8656_v25  ;;  %v5378_v9 = vpop.eup %5377 }
 0x423   :  { %v3677_v52 = vmul.f32 %v5376_v7, %v8742_v44  ;;  %5397 = vrcp.f32 %v3460_v59  ;;  %v4560_v49 = vmul.f32 -1.442695, %v8892_v17  ;;  %v9798_v10 = vsub.f32 %v8078_v53, %v8673_v39  ;;  %v5380_v42 = vpop.eup %5379 }
 0x424   :  { %v2992_v16 = vmul.f32 %v8756_v45, %v9797_v56  ;;  %v3679_v24 = vmul.f32 %v5378_v9, %v8747_v36  ;;  %5399 = vrcp.f32 %v3457_v12  ;;  %v4562_v3 = vmul.f32 -1.442695, %v8895_v0  ;;  %v5382_v22 = vpop.eup %5381 }
 0x425   :  { %v2994_v23 = vmul.f32 %v8773_v41, %v9798_v10  ;;  %v3459_v8 = vadd.f32 1.0, %v5380_v42  ;;  %5401 = vpow2.f32 %v4558_v15  ;;  %v9800_v6 = vsub.f32 %v9799_v54, %v8656_v25  ;;  %v5384_v61 = vpop.eup %5383 }
 0x426   :  { %v3079_v43 = vmul.f32 %v7866_v29, %v2992_v16  ;;  %v3729_v4 = vpack.c.bf16 %v3679_v24, %v3677_v52  ;;  %v3682_v19 = vmul.f32 %v5382_v22, %v8751_v31  ;;  %5403 = vpow2.f32 %v4561_v50  ;;  %v5386_v55 = vpop.eup %5385 }
 0x427   :  { %v3081_v44 = vmul.f32 %v7866_v29, %v2994_v23  ;;  %v2991_v53 = vmul.f32 %v8756_v45, %v9800_v6  ;;  %v3684_v27 = vmul.f32 %v5384_v61, %v8754_v48  ;;  %5405 = vrcp.f32 %v3459_v8  ;;  %v5388_v13 = vpop.eup %5387 }
 0x428   :  { %v8917_v36 = vadd.f32 %v7872_v26, %v3079_v43  ;;  %v9802_v25 = vsub.f32 %v9801_v33, %v8673_v39  ;;  %4000 = vmatmul.mubr.bf16.gmra.mrb[88].mxu0 %v3729_v4  ;;  %v3462_v34 = vadd.f32 1.0, %v5386_v55  ;;  %5407 = vpow2.f32 %v4563_v21 }
 0x429   :  { %v8921_v15 = vadd.f32 %v7872_v26, %v3081_v44  ;;  %v3078_v50 = vmul.f32 %v7859_v38, %v2991_v53  ;;  %v5390_v40 = vpop.eup %5389  ;;  %v3732_v59 = vpack.c.bf16 %v3684_v27, %v3682_v19  ;;  %v3464_v48 = vadd.f32 1.0, %v5388_v13  ;;  %v9805_v53 = vld [vmem:[#allocation52_spill] sm:$0xff] }
 0x42a   :  { %v2993_v45 = vmul.f32 %v8773_v41, %v9802_v25  ;;  %v4565_v31 = vmul.f32 -1.442695, %v8917_v36  ;;  %5409 = vpow2.f32 %v4560_v49  ;;  %v5392_v12 = vpop.eup %5391  ;;  %v3461_v56 = vadd.f32 1.0, %v5390_v40 }
 0x42b   :  { %v4567_v7 = vmul.f32 -1.442695, %v8921_v15  ;;  %5411 = vrcp.f32 %v3462_v34  ;;  %v8932_v41 = vadd.f32 %v7869_v20, %v3078_v50  ;;  %v5394_v16 = vpop.eup %5393  ;;  %4007 = vmatprep.mubr.bf16.mxu0 %v3732_v59  ;;  %v3681_v21 = vmul.f32 %v5392_v12, %v8788_v63 }
 0x42c   :  { %v3080_v39 = vmul.f32 %v7859_v38, %v2993_v45  ;;  %5413 = vrcp.f32 %v3464_v48  ;;  %v9803_v9 = vsub.f32 %v8111_v11, %v8692_v18  ;;  %v9804_v49 = vsub.f32 %v8125_v28, %v8706_v46  ;;  %v5396_v23 = vpop.eup %5395 }
 0x42d   :  { %v3683_v42 = vmul.f32 %v5394_v16, %v8791_v51  ;;  %5415 = vrcp.f32 %v3461_v56  ;;  %v4564_v63 = vmul.f32 -1.442695, %v8932_v41  ;;  %v5398_v43 = vpop.eup %5397  ;;  %v3686_v22 = vmul.f32 %v5396_v23, %v8796_v32 }
 0x42e   :  { %v2996_v52 = vmul.f32 %v8804_v58, %v9803_v9  ;;  %v2998_v10 = vmul.f32 %v8824_v62, %v9804_v49  ;;  %v8945_v24 = vadd.f32 %v7869_v20, %v3080_v39  ;;  %5417 = vpow2.f32 %v4562_v3  ;;  %v5400_v28 = vpop.eup %5399 }
 0x42f   :  { %v3731_v44 = vpack.c.bf16 %v3683_v42, %v3681_v21  ;;  %v3688_v54 = vmul.f32 %v5398_v43, %v8801_v30  ;;  %5419 = vpow2.f32 %v4565_v31  ;;  %v5402_v6 = vpop.eup %5401  ;;  %v2845_v61 = vsub.f32 %v9805_v53, %v8706_v46 }
 0x430   :  { %v3083_v11 = vmul.f32 %v7866_v29, %v2996_v52  ;;  %v3085_v8 = vmul.f32 %v7866_v29, %v2998_v10  ;;  %v4566_v51 = vmul.f32 -1.442695, %v8945_v24  ;;  %5421 = vpow2.f32 %v4567_v7  ;;  %v5404_v3 = vpop.eup %5403  ;;  %v8977_v12 = vpop.f32.mrb[40].mxu0 }
 0x431   :  { %4008 = vmatmul.mubr.bf16.gmra.mrb[92].mxu0 %v3731_v44  ;;  %v3734_v29 = vpack.c.bf16 %v3688_v54, %v3686_v22  ;;  %v3463_v19 = vadd.f32 1.0, %v5402_v6  ;;  %5423 = vpow2.f32 %v4564_v63  ;;  %v9806_v30 = vsub.f32 %v8101_v5, %v8692_v18  ;;  %v5406_v27 = vpop.eup %5405 }
 0x432   :  { %v8956_v4 = vadd.f32 %v7872_v26, %v3083_v11  ;;  %v8959_v32 = vadd.f32 %v7872_v26, %v3085_v8  ;;  %v3685_v46 = vmul.f32 %v5400_v28, %v8828_v57  ;;  %v3466_v33 = vadd.f32 1.0, %v5404_v3  ;;  %v5408_v45 = vpop.eup %5407 }
 0x433   :  { %v2995_v55 = vmul.f32 %v8804_v58, %v9806_v30  ;;  %5425 = vpow2.f32 %v4566_v51  ;;  %4015 = vmatprep.mubr.bf16.mxu0 %v3734_v29  ;;  %v3687_v26 = vmul.f32 %v5406_v27, %v8839_v47  ;;  %v2997_v13 = vmul.f32 %v8824_v62, %v2845_v61 }
 0x434   :  { %v4569_v25 = vmul.f32 -1.442695, %v8956_v4  ;;  %5427 = vrcp.f32 %v3463_v19  ;;  %v5410_v31 = vpop.eup %5409  ;;  %v3468_v5 = vadd.f32 1.0, %v5408_v45  ;;  %v4571_v18 = vmul.f32 -1.442695, %v8959_v32 }
 0x435   :  { %v3082_v34 = vmul.f32 %v7859_v38, %v2995_v55  ;;  %5429 = vrcp.f32 %v3466_v33  ;;  %v5412_v58 = vpop.eup %5411  ;;  %v3733_v57 = vpack.c.bf16 %v3687_v26, %v3685_v46  ;;  %v3465_v50 = vadd.f32 1.0, %v5410_v31 }
 0x436   :  { %5431 = vpow2.f32 %v4569_v25  ;;  %v3084_v40 = vmul.f32 %v7859_v38, %v2997_v13  ;;  %v5414_v59 = vpop.eup %5413  ;;  %v3690_v62 = vmul.f32 %v5412_v58, %v8843_v14  ;;  %v3907_v38 = vpop.f32.mrb[41].mxu0  ;;  %v4588_v8 = vmul.f32 -1.442695, %v8977_v12 }
 0x437   :  { %5433 = vrcp.f32 %v3468_v5  ;;  %v8973_v47 = vadd.f32 %v7869_v20, %v3082_v34  ;;  %v5416_v48 = vpop.eup %5415  ;;  %v3692_v7 = vmul.f32 %v5414_v59, %v8846_v37  ;;  %v8983_v49 = vpop.f32.mrb[42].mxu0 }
 0x438   :  { %v5418_v56 = vpop.eup %5417  ;;  %5435 = vpow2.f32 %v4571_v18  ;;  %v8980_v39 = vadd.f32 %v7869_v20, %v3084_v40  ;;  %v3910_v37 = vpop.f32.mrb[43].mxu0  ;;  %v3689_v44 = vmul.f32 %v5416_v48, %v8854_v2  ;;  %v4589_v6 = vmul.f32 -1.442695, %v8983_v49 }
 0x439   :  { %v4568_v16 = vmul.f32 -1.442695, %v8973_v47  ;;  %v5420_v21 = vpop.eup %5419  ;;  %4016 = vmatmul.mubr.bf16.gmra.mrb[96].mxu0 %v3733_v57  ;;  %v3736_v9 = vpack.c.bf16 %v3692_v7, %v3690_v62  ;;  %v3467_v52 = vadd.f32 1.0, %v5418_v56  ;;  %5437 = vrcp.f32 %v3465_v50 }
 0x43a   :  { %v5422_v14 = vpop.eup %5421  ;;  %v3470_v10 = vadd.f32 1.0, %v5420_v21  ;;  %v4570_v43 = vmul.f32 -1.442695, %v8980_v39 }
 0x43b   :  { %5439 = vpow2.f32 %v4568_v16  ;;  %v5424_v23 = vpop.eup %5423  ;;  %4023 = vmatprep.mubr.bf16.mxu0 %v3736_v9  ;;  %v3472_v42 = vadd.f32 1.0, %v5422_v14 }
 0x43c   :  { %5441 = vrcp.f32 %v3467_v52  ;;  %v3469_v63 = vadd.f32 1.0, %v5424_v23 }
 0x43d   :  { %v5426_v20 = vpop.eup %5425  ;;  %5443 = vrcp.f32 %v3470_v10 }
 0x43e   :  { %v5428_v22 = vpop.eup %5427  ;;  %5445 = vrcp.f32 %v3472_v42  ;;  %v3471_v11 = vadd.f32 1.0, %v5426_v20 }
 0x43f   :  { %v5430_v28 = vpop.eup %5429  ;;  %v3691_v54 = vmul.f32 %v5428_v22, %v8857_v35  ;;  %5447 = vrcp.f32 %v3469_v63 }
 0x440   :  { %v5432_v51 = vpop.eup %5431  ;;  %5449 = vrcp.f32 %v3471_v11  ;;  %v3694_v29 = vmul.f32 %v5430_v28, %v8882_v1 }
 0x441   :  { %v5434_v53 = vpop.eup %5433  ;;  %v3735_v61 = vpack.c.bf16 %v3691_v54, %v3689_v44  ;;  %v3474_v3 = vadd.f32 1.0, %v5432_v51  ;;  %5451 = vpow2.f32 %v4570_v43 }
 0x442   :  { %v3696_v19 = vmul.f32 %v5434_v53, %v8886_v60  ;;  %5453 = vpow2.f32 %v4588_v8  ;;  %v5436_v30 = vpop.eup %5435 }
 0x443   :  { %4024 = vmatmul.mubr.bf16.gmra.mrb[100].mxu0 %v3735_v61  ;;  %5455 = vrcp.f32 %v3474_v3  ;;  %v5438_v2 = vpop.eup %5437  ;;  %v3476_v35 = vadd.f32 1.0, %v5436_v30 }
 0x444   :  { %v3738_v55 = vpack.c.bf16 %v3696_v19, %v3694_v29  ;;  %5457 = vpow2.f32 %v4589_v6  ;;  %v3693_v25 = vmul.f32 %v5438_v2, %v8892_v17 }
 0x445   :  { %v5440_v27 = vpop.eup %5439  ;;  %5459 = vrcp.f32 %v3476_v35 }
 0x446   :  { %v5442_v46 = vpop.eup %5441  ;;  %4031 = vmatprep.mubr.bf16.mxu0 %v3738_v55  ;;  %v3473_v26 = vadd.f32 1.0, %v5440_v27 }
 0x447   :  { %v5444_v33 = vpop.eup %5443  ;;  %v3695_v45 = vmul.f32 %v5442_v46, %v8895_v0 }
 0x448   :  { %v5446_v1 = vpop.eup %5445  ;;  %v3698_v34 = vmul.f32 %v5444_v33, %v8917_v36  ;;  %5461 = vrcp.f32 %v3473_v26 }
 0x449   :  { %v5448_v60 = vpop.eup %5447  ;;  %v3737_v13 = vpack.c.bf16 %v3695_v45, %v3693_v25  ;;  %v3700_v31 = vmul.f32 %v5446_v1, %v8921_v15 }
 0x44a   :  { %v5450_v5 = vpop.eup %5449  ;;  %v3697_v57 = vmul.f32 %v5448_v60, %v8932_v41 }
 0x44b   :  { %v5452_v18 = vpop.eup %5451  ;;  %4032 = vmatmul.mubr.bf16.gmra.mrb[104].mxu0 %v3737_v13  ;;  %v3740_v58 = vpack.c.bf16 %v3700_v31, %v3698_v34  ;;  %v3699_v50 = vmul.f32 %v5450_v5, %v8945_v24  ;;  %v3913_v24 = vpop.f32.mrb[44].mxu0 }
 0x44c   :  { %v5454_v40 = vpop.eup %5453  ;;  %v3475_v17 = vadd.f32 1.0, %v5452_v18  ;;  %v4590_v16 = vmul.f32 -1.442695, %v3913_v24  ;;  %v3915_v38 = vpop.f32.mrb[45].mxu0 }
 0x44d   :  { %v5456_v0 = vpop.eup %5455  ;;  %4039 = vmatprep.mubr.bf16.mxu0 %v3740_v58  ;;  %v3739_v59 = vpack.c.bf16 %v3699_v50, %v3697_v57  ;;  %v4170_v48 = vadd.f32 1.0, %v5454_v40  ;;  %v3916_v21 = vpop.f32.mrb[46].mxu0 }
 0x44e   :  { %v5458_v62 = vpop.eup %5457  ;;  %5463 = vrcp.f32 %v3475_v17  ;;  %v3702_v7 = vmul.f32 %v5456_v0, %v8956_v4  ;;  %v4591_v52 = vmul.f32 -1.442695, %v3916_v21  ;;  %v3918_v14 = vpop.f32.mrb[47].mxu0 }
 0x44f   :  { %5465 = vrcp.f32 %v4170_v48  ;;  %v4171_v36 = vadd.f32 1.0, %v5458_v62  ;;  %v5460_v15 = vpop.eup %5459 }
 0x450   :  { %v3704_v56 = vmul.f32 %v5460_v15, %v8959_v32 }
 0x451   :  { %5467 = vrcp.f32 %v4171_v36 }
 0x452   :  { %v3742_v41 = vpack.c.bf16 %v3704_v56, %v3702_v7  ;;  %v5462_v9 = vpop.eup %5461  ;;  %5469 = vpow2.f32 %v4590_v16 }
 0x453   :  { %4040 = vmatmul.mubr.bf16.gmra.mrb[108].mxu0 %v3739_v59  ;;  %5471 = vpow2.f32 %v4591_v52  ;;  %v3701_v23 = vmul.f32 %v5462_v9, %v8973_v47 }
 0x454   :  { %4047 = vmatprep.mubr.bf16.mxu0 %v3742_v41 }
 0x458   :  { %v5464_v10 = vpop.eup %5463 }
 0x459   :  { %v5466_v37 = vpop.eup %5465  ;;  %v3703_v4 = vmul.f32 %v5464_v10, %v8980_v39 }
 0x45a   :  { %v4284_v32 = vmul.f32 %v5466_v37, %v8977_v12 }
 0x45b   :  { %v5468_v42 = vpop.eup %5467  ;;  %v3741_v20 = vpack.c.bf16 %v3703_v4, %v3701_v23 }
 0x45c   :  { %4323 = vst.msk [vmem:[%s9176_s8] sm:$0xff] %vm4322_vm1, %v4284_v32  ;;  %v4285_v63 = vmul.f32 %v5468_v42, %v8983_v49  ;;  %v5470_v47 = vpop.eup %5469 }
 0x45d   :  { %4048 = vmatmul.mubr.bf16.gmra.mrb[112].mxu0 %v3741_v20  ;;  %v4172_v39 = vadd.f32 1.0, %v5470_v47  ;;  %v5472_v43 = vpop.eup %5471  ;;  %v3921_v22 = vpop.f32.mrb[48].mxu0 }
 0x45e   :  { %4324 = vst.msk [vmem:[%s9176_s8 + $0x8] sm:$0xff] %vm4322_vm1, %v4285_v63  ;;  %v4173_v12 = vadd.f32 1.0, %v5472_v43  ;;  %v4592_v11 = vmul.f32 -1.442695, %v3921_v22  ;;  %v3923_v8 = vpop.f32.mrb[49].mxu0 }
 0x45f   :  { %5473 = vrcp.f32 %v4172_v39  ;;  %v3924_v28 = vpop.f32.mrb[50].mxu0 }
 0x460   :  { %5475 = vrcp.f32 %v4173_v12  ;;  %v4593_v44 = vmul.f32 -1.442695, %v3924_v28  ;;  %v3926_v54 = vpop.f32.mrb[51].mxu0 }
 0x461   :  { %5477 = vpow2.f32 %v4592_v11 }
 0x462   :  { %5479 = vpow2.f32 %v4593_v44 }
 0x469   :  { %v5474_v49 = vpop.eup %5473 }
 0x46a   :  { %v4286_v51 = vmul.f32 %v5474_v49, %v3913_v24  ;;  %v5476_v6 = vpop.eup %5475 }
 0x46b   :  { %v4287_v53 = vmul.f32 %v5476_v6, %v3916_v21  ;;  %v5478_v61 = vpop.eup %5477 }
 0x46c   :  { %4325 = vst.msk [vmem:[%s9176_s8 + $0x10] sm:$0xff] %vm4322_vm1, %v4286_v51  ;;  %v4174_v3 = vadd.f32 1.0, %v5478_v61  ;;  %v5480_v29 = vpop.eup %5479 }
 0x46d   :  { %4326 = vst.msk [vmem:[%s9176_s8 + $0x18] sm:$0xff] %vm4322_vm1, %v4287_v53  ;;  %v4175_v19 = vadd.f32 1.0, %v5480_v29  ;;  %v3929_v30 = vpop.f32.mrb[52].mxu0 }
 0x46e   :  { %5481 = vrcp.f32 %v4174_v3  ;;  %v4594_v2 = vmul.f32 -1.442695, %v3929_v30  ;;  %v3931_v55 = vpop.f32.mrb[53].mxu0 }
 0x46f   :  { %5483 = vrcp.f32 %v4175_v19  ;;  %v3932_v35 = vpop.f32.mrb[54].mxu0 }
 0x470   :  { %5485 = vpow2.f32 %v4594_v2  ;;  %v4595_v27 = vmul.f32 -1.442695, %v3932_v35  ;;  %v3934_v46 = vpop.f32.mrb[55].mxu0 }
 0x472   :  { %5487 = vpow2.f32 %v4595_v27 }
 0x478   :  { %v5482_v33 = vpop.eup %5481 }
 0x479   :  { %v4288_v25 = vmul.f32 %v5482_v33, %v3921_v22  ;;  %v5484_v45 = vpop.eup %5483 }
 0x47a   :  { %v4289_v1 = vmul.f32 %v5484_v45, %v3924_v28  ;;  %v5486_v26 = vpop.eup %5485  ;;  %v3937_v60 = vpop.f32.mrb[56].mxu0 }
 0x47b   :  { %4327 = vst.msk [vmem:[%s9176_s8 + $0x20] sm:$0xff] %vm4322_vm1, %v4288_v25  ;;  %v4176_v13 = vadd.f32 1.0, %v5486_v26  ;;  %v4596_v34 = vmul.f32 -1.442695, %v3937_v60  ;;  %v3939_v31 = vpop.f32.mrb[57].mxu0 }
 0x47c   :  { %4328 = vst.msk [vmem:[%s9176_s8 + $0x28] sm:$0xff] %vm4322_vm1, %v4289_v1  ;;  %v5488_v5 = vpop.eup %5487  ;;  %v3940_v18 = vpop.f32.mrb[58].mxu0 }
 0x47d   :  { %5489 = vrcp.f32 %v4176_v13  ;;  %v4177_v58 = vadd.f32 1.0, %v5488_v5  ;;  %v4597_v57 = vmul.f32 -1.442695, %v3940_v18  ;;  %v3942_v50 = vpop.f32.mrb[59].mxu0 }
 0x47e   :  { %5491 = vpow2.f32 %v4596_v34 }
 0x47f   :  { %5493 = vrcp.f32 %v4177_v58 }
 0x480   :  { %5495 = vpow2.f32 %v4597_v57 }
 0x486   :  { %v3945_v17 = vpop.f32.mrb[60].mxu0 }
 0x487   :  { %v5490_v40 = vpop.eup %5489  ;;  %v4598_v48 = vmul.f32 -1.442695, %v3945_v17  ;;  %v3947_v62 = vpop.f32.mrb[61].mxu0 }
 0x488   :  { %v5492_v0 = vpop.eup %5491  ;;  %v4290_v59 = vmul.f32 %v5490_v40, %v3929_v30  ;;  %v3948_v7 = vpop.f32.mrb[62].mxu0 }
 0x489   :  { %v5494_v36 = vpop.eup %5493  ;;  %v4178_v15 = vadd.f32 1.0, %v5492_v0  ;;  %5497 = vpow2.f32 %v4598_v48  ;;  %v4599_v24 = vmul.f32 -1.442695, %v3948_v7  ;;  %v3950_v16 = vpop.f32.mrb[63].mxu0 }
 0x48a   :  { %v5496_v56 = vpop.eup %5495  ;;  %4329 = vst.msk [vmem:[%s9176_s8 + $0x30] sm:$0xff] %vm4322_vm1, %v4290_v59  ;;  %v4291_v41 = vmul.f32 %v5494_v36, %v3932_v35 }
 0x48b   :  { %5499 = vrcp.f32 %v4178_v15  ;;  %v4179_v38 = vadd.f32 1.0, %v5496_v56 }
 0x48c   :  { %4330 = vst.msk [vmem:[%s9176_s8 + $0x38] sm:$0xff] %vm4322_vm1, %v4291_v41  ;;  %5501 = vpow2.f32 %v4599_v24 }
 0x48d   :  { %5503 = vrcp.f32 %v4179_v38 }
 0x493   :  { %v5498_v21 = vpop.eup %5497 }
 0x494   :  { %v3953_v9 = vpop.f32.mrb[64].mxu0  ;;  %v4180_v14 = vadd.f32 1.0, %v5498_v21 }
 0x495   :  { %v5500_v52 = vpop.eup %5499  ;;  %v4600_v10 = vmul.f32 -1.442695, %v3953_v9  ;;  %v3955_v37 = vpop.f32.mrb[65].mxu0 }
 0x496   :  { %v5502_v23 = vpop.eup %5501  ;;  %v4292_v4 = vmul.f32 %v5500_v52, %v3937_v60  ;;  %v3956_v32 = vpop.f32.mrb[66].mxu0  ;;  %5505 = vrcp.f32 %v4180_v14 }
 0x497   :  { %v5504_v42 = vpop.eup %5503  ;;  %v4181_v20 = vadd.f32 1.0, %v5502_v23  ;;  %v4601_v63 = vmul.f32 -1.442695, %v3956_v32  ;;  %v3958_v47 = vpop.f32.mrb[67].mxu0  ;;  %5507 = vpow2.f32 %v4600_v10 }
 0x498   :  { %4331 = vst.msk [vmem:[%s9176_s8 + $0x40] sm:$0xff] %vm4322_vm1, %v4292_v4  ;;  %v4293_v39 = vmul.f32 %v5504_v42, %v3940_v18 }
 0x499   :  { %5509 = vrcp.f32 %v4181_v20 }
 0x49a   :  { %4332 = vst.msk [vmem:[%s9176_s8 + $0x48] sm:$0xff] %vm4322_vm1, %v4293_v39  ;;  %5511 = vpow2.f32 %v4601_v63 }
 0x4a0   :  { %v5506_v43 = vpop.eup %5505 }
 0x4a1   :  { %v5508_v12 = vpop.eup %5507  ;;  %v4294_v22 = vmul.f32 %v5506_v43, %v3945_v17 }
 0x4a2   :  { %v4182_v8 = vadd.f32 1.0, %v5508_v12 }
 0x4a3   :  { %v5510_v11 = vpop.eup %5509  ;;  %v3961_v28 = vpop.f32.mrb[68].mxu0  ;;  %4333 = vst.msk [vmem:[%s9176_s8 + $0x50] sm:$0xff] %vm4322_vm1, %v4294_v22 }
 0x4a4   :  { %v5512_v44 = vpop.eup %5511  ;;  %v4295_v54 = vmul.f32 %v5510_v11, %v3948_v7  ;;  %v4602_v49 = vmul.f32 -1.442695, %v3961_v28  ;;  %v3963_v51 = vpop.f32.mrb[69].mxu0  ;;  %5513 = vrcp.f32 %v4182_v8 }
 0x4a5   :  { %v4183_v6 = vadd.f32 1.0, %v5512_v44  ;;  %v3964_v53 = vpop.f32.mrb[70].mxu0 }
 0x4a6   :  { %4334 = vst.msk [vmem:[%s9176_s8 + $0x58] sm:$0xff] %vm4322_vm1, %v4295_v54  ;;  %5515 = vpow2.f32 %v4602_v49  ;;  %v4603_v61 = vmul.f32 -1.442695, %v3964_v53  ;;  %v3966_v3 = vpop.f32.mrb[71].mxu0 }
 0x4a7   :  { %5517 = vrcp.f32 %v4183_v6 }
 0x4a8   :  { %5519 = vpow2.f32 %v4603_v61 }
 0x4ae   :  { %v5514_v29 = vpop.eup %5513 }
 0x4af   :  { %v4296_v30 = vmul.f32 %v5514_v29, %v3953_v9 }
 0x4b0   :  { %v5516_v19 = vpop.eup %5515 }
 0x4b1   :  { %v5518_v2 = vpop.eup %5517  ;;  %v4184_v55 = vadd.f32 1.0, %v5516_v19  ;;  %4335 = vst.msk [vmem:[%s9176_s8 + $0x60] sm:$0xff] %vm4322_vm1, %v4296_v30 }
 0x4b2   :  { %v5520_v35 = vpop.eup %5519  ;;  %v4297_v27 = vmul.f32 %v5518_v2, %v3956_v32 }
 0x4b3   :  { %5521 = vrcp.f32 %v4184_v55  ;;  %v4185_v46 = vadd.f32 1.0, %v5520_v35 }
 0x4b4   :  { %4336 = vst.msk [vmem:[%s9176_s8 + $0x68] sm:$0xff] %vm4322_vm1, %v4297_v27 }
 0x4b5   :  { %v3969_v33 = vpop.f32.mrb[72].mxu0  ;;  %5523 = vrcp.f32 %v4185_v46 }
 0x4b6   :  { %v4604_v25 = vmul.f32 -1.442695, %v3969_v33  ;;  %v3971_v45 = vpop.f32.mrb[73].mxu0 }
 0x4b7   :  { %v3972_v1 = vpop.f32.mrb[74].mxu0 }
 0x4b8   :  { %5525 = vpow2.f32 %v4604_v25  ;;  %v4605_v26 = vmul.f32 -1.442695, %v3972_v1  ;;  %v3974_v60 = vpop.f32.mrb[75].mxu0 }
 0x4ba   :  { %5527 = vpow2.f32 %v4605_v26 }
 0x4bd   :  { %v5522_v13 = vpop.eup %5521 }
 0x4be   :  { %v4298_v34 = vmul.f32 %v5522_v13, %v3961_v28 }
 0x4bf   :  { %v5524_v31 = vpop.eup %5523 }
 0x4c0   :  { %4337 = vst.msk [vmem:[%s9176_s8 + $0x70] sm:$0xff] %vm4322_vm1, %v4298_v34  ;;  %v4299_v18 = vmul.f32 %v5524_v31, %v3964_v53 }
 0x4c2   :  { %v5526_v5 = vpop.eup %5525  ;;  %4338 = vst.msk [vmem:[%s9176_s8 + $0x78] sm:$0xff] %vm4322_vm1, %v4299_v18 }
 0x4c3   :  { %v4186_v58 = vadd.f32 1.0, %v5526_v5 }
 0x4c4   :  { %v5528_v57 = vpop.eup %5527 }
 0x4c5   :  { %5529 = vrcp.f32 %v4186_v58  ;;  %v4187_v50 = vadd.f32 1.0, %v5528_v57 }
 0x4c7   :  { %5531 = vrcp.f32 %v4187_v50 }
 0x4c8   :  { %v3977_v40 = vpop.f32.mrb[76].mxu0 }
 0x4c9   :  { %v4606_v17 = vmul.f32 -1.442695, %v3977_v40  ;;  %v3979_v0 = vpop.f32.mrb[77].mxu0 }
 0x4ca   :  { %v3980_v59 = vpop.f32.mrb[78].mxu0 }
 0x4cb   :  { %5533 = vpow2.f32 %v4606_v17  ;;  %v4607_v48 = vmul.f32 -1.442695, %v3980_v59  ;;  %v3982_v62 = vpop.f32.mrb[79].mxu0 }
 0x4cd   :  { %5535 = vpow2.f32 %v4607_v48 }
 0x4cf   :  { %v5530_v36 = vpop.eup %5529 }
 0x4d0   :  { %v4300_v15 = vmul.f32 %v5530_v36, %v3969_v33 }
 0x4d1   :  { %v5532_v7 = vpop.eup %5531 }
 0x4d2   :  { %4339 = vst.msk [vmem:[%s9176_s8 + $0x80] sm:$0xff] %vm4322_vm1, %v4300_v15  ;;  %v4301_v56 = vmul.f32 %v5532_v7, %v3972_v1 }
 0x4d4   :  { %4340 = vst.msk [vmem:[%s9176_s8 + $0x88] sm:$0xff] %vm4322_vm1, %v4301_v56 }
 0x4d5   :  { %v5534_v41 = vpop.eup %5533 }
 0x4d6   :  { %v4188_v24 = vadd.f32 1.0, %v5534_v41 }
 0x4d7   :  { %v5536_v16 = vpop.eup %5535 }
 0x4d8   :  { %5537 = vrcp.f32 %v4188_v24  ;;  %v4189_v38 = vadd.f32 1.0, %v5536_v16  ;;  %v3985_v21 = vpop.f32.mrb[80].mxu0 }
 0x4d9   :  { %v4608_v9 = vmul.f32 -1.442695, %v3985_v21  ;;  %v3987_v52 = vpop.f32.mrb[81].mxu0 }
 0x4da   :  { %5539 = vrcp.f32 %v4189_v38  ;;  %v3988_v14 = vpop.f32.mrb[82].mxu0 }
 0x4db   :  { %5541 = vpow2.f32 %v4608_v9  ;;  %v4609_v10 = vmul.f32 -1.442695, %v3988_v14  ;;  %v3990_v37 = vpop.f32.mrb[83].mxu0 }
 0x4dd   :  { %5543 = vpow2.f32 %v4609_v10 }
 0x4e2   :  { %v5538_v23 = vpop.eup %5537 }
 0x4e3   :  { %v4302_v4 = vmul.f32 %v5538_v23, %v3977_v40 }
 0x4e4   :  { %v5540_v32 = vpop.eup %5539 }
 0x4e5   :  { %v5542_v42 = vpop.eup %5541  ;;  %4341 = vst.msk [vmem:[%s9176_s8 + $0x90] sm:$0xff] %vm4322_vm1, %v4302_v4  ;;  %v4303_v20 = vmul.f32 %v5540_v32, %v3980_v59 }
 0x4e6   :  { %v4190_v63 = vadd.f32 1.0, %v5542_v42 }
 0x4e7   :  { %v5544_v47 = vpop.eup %5543  ;;  %4342 = vst.msk [vmem:[%s9176_s8 + $0x98] sm:$0xff] %vm4322_vm1, %v4303_v20 }
 0x4e8   :  { %5545 = vrcp.f32 %v4190_v63  ;;  %v4191_v39 = vadd.f32 1.0, %v5544_v47 }
 0x4ea   :  { %5547 = vrcp.f32 %v4191_v39 }
 0x4ee   :  { %v3993_v43 = vpop.f32.mrb[84].mxu0 }
 0x4ef   :  { %v4610_v12 = vmul.f32 -1.442695, %v3993_v43  ;;  %v3995_v22 = vpop.f32.mrb[85].mxu0 }
 0x4f0   :  { %v3996_v11 = vpop.f32.mrb[86].mxu0 }
 0x4f1   :  { %5549 = vpow2.f32 %v4610_v12  ;;  %v4611_v8 = vmul.f32 -1.442695, %v3996_v11  ;;  %v3998_v28 = vpop.f32.mrb[87].mxu0 }
 0x4f2   :  { %v5546_v44 = vpop.eup %5545 }
 0x4f3   :  { %5551 = vpow2.f32 %v4611_v8  ;;  %v4304_v54 = vmul.f32 %v5546_v44, %v3985_v21 }
 0x4f4   :  { %v5548_v49 = vpop.eup %5547 }
 0x4f5   :  { %4343 = vst.msk [vmem:[%s9176_s8 + $0xa0] sm:$0xff] %vm4322_vm1, %v4304_v54  ;;  %v4305_v51 = vmul.f32 %v5548_v49, %v3988_v14 }
 0x4f7   :  { %4344 = vst.msk [vmem:[%s9176_s8 + $0xa8] sm:$0xff] %vm4322_vm1, %v4305_v51 }
 0x4fb   :  { %v4001_v6 = vpop.f32.mrb[88].mxu0  ;;  %v5550_v53 = vpop.eup %5549 }
 0x4fc   :  { %v4612_v61 = vmul.f32 -1.442695, %v4001_v6  ;;  %v4003_v3 = vpop.f32.mrb[89].mxu0  ;;  %v4192_v29 = vadd.f32 1.0, %v5550_v53 }
 0x4fd   :  { %v4004_v19 = vpop.f32.mrb[90].mxu0  ;;  %v5552_v30 = vpop.eup %5551 }
 0x4fe   :  { %5553 = vpow2.f32 %v4612_v61  ;;  %v4613_v2 = vmul.f32 -1.442695, %v4004_v19  ;;  %v4006_v55 = vpop.f32.mrb[91].mxu0  ;;  %v4193_v35 = vadd.f32 1.0, %v5552_v30 }
 0x4ff   :  { %5555 = vrcp.f32 %v4192_v29 }
 0x500   :  { %5557 = vpow2.f32 %v4613_v2 }
 0x501   :  { %5559 = vrcp.f32 %v4193_v35 }
 0x504   :  { %v4009_v27 = vpop.f32.mrb[92].mxu0 }
 0x505   :  { %v4614_v46 = vmul.f32 -1.442695, %v4009_v27  ;;  %v4011_v33 = vpop.f32.mrb[93].mxu0 }
 0x506   :  { %v4012_v25 = vpop.f32.mrb[94].mxu0 }
 0x507   :  { %5561 = vpow2.f32 %v4614_v46  ;;  %v4615_v45 = vmul.f32 -1.442695, %v4012_v25  ;;  %v4014_v1 = vpop.f32.mrb[95].mxu0 }
 0x508   :  { %v5554_v26 = vpop.eup %5553 }
 0x509   :  { %5563 = vpow2.f32 %v4615_v45  ;;  %v5556_v60 = vpop.eup %5555  ;;  %v4194_v13 = vadd.f32 1.0, %v5554_v26 }
 0x50a   :  { %v5558_v34 = vpop.eup %5557  ;;  %v4306_v31 = vmul.f32 %v5556_v60, %v3993_v43 }
 0x50b   :  { %v5560_v5 = vpop.eup %5559  ;;  %5565 = vrcp.f32 %v4194_v13  ;;  %v4195_v18 = vadd.f32 1.0, %v5558_v34 }
 0x50c   :  { %v4017_v58 = vpop.f32.mrb[96].mxu0  ;;  %4345 = vst.msk [vmem:[%s9176_s8 + $0xb0] sm:$0xff] %vm4322_vm1, %v4306_v31  ;;  %v4307_v57 = vmul.f32 %v5560_v5, %v3996_v11 }
 0x50d   :  { %v4616_v50 = vmul.f32 -1.442695, %v4017_v58  ;;  %v4019_v40 = vpop.f32.mrb[97].mxu0  ;;  %5567 = vrcp.f32 %v4195_v18 }
 0x50e   :  { %v9096_v17 = vpop.f32.mrb[98].mxu0  ;;  %4346 = vst.msk [vmem:[%s9176_s8 + $0xb8] sm:$0xff] %vm4322_vm1, %v4307_v57 }
 0x50f   :  { %5569 = vpow2.f32 %v4616_v50  ;;  %v4617_v0 = vmul.f32 -1.442695, %v9096_v17  ;;  %v4022_v59 = vpop.f32.mrb[99].mxu0 }
 0x511   :  { %v5562_v48 = vpop.eup %5561  ;;  %5571 = vpow2.f32 %v4617_v0 }
 0x512   :  { %v4196_v62 = vadd.f32 1.0, %v5562_v48 }
 0x513   :  { %v5564_v36 = vpop.eup %5563 }
 0x514   :  { %5573 = vrcp.f32 %v4196_v62  ;;  %v4197_v15 = vadd.f32 1.0, %v5564_v36 }
 0x515   :  { %v5566_v56 = vpop.eup %5565 }
 0x516   :  { %v9103_v7 = vpop.f32.mrb[100].mxu0  ;;  %5575 = vrcp.f32 %v4197_v15  ;;  %v4308_v16 = vmul.f32 %v5566_v56, %v4001_v6 }
 0x517   :  { %v4618_v41 = vmul.f32 -1.442695, %v9103_v7  ;;  %v4027_v24 = vpop.f32.mrb[101].mxu0  ;;  %v5568_v21 = vpop.eup %5567 }
 0x518   :  { %v9106_v38 = vpop.f32.mrb[102].mxu0  ;;  %4347 = vst.msk [vmem:[%s9176_s8 + $0xc0] sm:$0xff] %vm4322_vm1, %v4308_v16  ;;  %v4309_v10 = vmul.f32 %v5568_v21, %v4004_v19 }
 0x519   :  { %5577 = vpow2.f32 %v4618_v41  ;;  %v4619_v9 = vmul.f32 -1.442695, %v9106_v38  ;;  %v4030_v52 = vpop.f32.mrb[103].mxu0  ;;  %v5570_v14 = vpop.eup %5569 }
 0x51a   :  { %v4198_v37 = vadd.f32 1.0, %v5570_v14  ;;  %4348 = vst.msk [vmem:[%s9176_s8 + $0xc8] sm:$0xff] %vm4322_vm1, %v4309_v10 }
 0x51b   :  { %5579 = vpow2.f32 %v4619_v9  ;;  %v5572_v23 = vpop.eup %5571 }
 0x51c   :  { %5581 = vrcp.f32 %v4198_v37  ;;  %v4199_v4 = vadd.f32 1.0, %v5572_v23 }
 0x51e   :  { %v4033_v32 = vpop.f32.mrb[104].mxu0  ;;  %v5574_v42 = vpop.eup %5573  ;;  %5583 = vrcp.f32 %v4199_v4 }
 0x51f   :  { %v4620_v20 = vmul.f32 -1.442695, %v4033_v32  ;;  %v4035_v63 = vpop.f32.mrb[105].mxu0  ;;  %v4310_v47 = vmul.f32 %v5574_v42, %v4009_v27 }
 0x520   :  { %v4036_v39 = vpop.f32.mrb[106].mxu0  ;;  %v5576_v43 = vpop.eup %5575 }
 0x521   :  { %5585 = vpow2.f32 %v4620_v20  ;;  %v4621_v12 = vmul.f32 -1.442695, %v4036_v39  ;;  %v4038_v22 = vpop.f32.mrb[107].mxu0  ;;  %4349 = vst.msk [vmem:[%s9176_s8 + $0xd0] sm:$0xff] %vm4322_vm1, %v4310_v47  ;;  %v4311_v11 = vmul.f32 %v5576_v43, %v4012_v25 }
 0x523   :  { %v5578_v8 = vpop.eup %5577  ;;  %5587 = vpow2.f32 %v4621_v12  ;;  %4350 = vst.msk [vmem:[%s9176_s8 + $0xd8] sm:$0xff] %vm4322_vm1, %v4311_v11 }
 0x524   :  { %v4200_v28 = vadd.f32 1.0, %v5578_v8 }
 0x525   :  { %v5580_v44 = vpop.eup %5579 }
 0x526   :  { %5589 = vrcp.f32 %v4200_v28  ;;  %v4201_v54 = vadd.f32 1.0, %v5580_v44  ;;  %v4041_v49 = vpop.f32.mrb[108].mxu0  ;;  %v5582_v51 = vpop.eup %5581 }
 0x527   :  { %v4622_v6 = vmul.f32 -1.442695, %v4041_v49  ;;  %v4043_v53 = vpop.f32.mrb[109].mxu0  ;;  %v4312_v61 = vmul.f32 %v5582_v51, %v4017_v58 }
 0x528   :  { %5591 = vrcp.f32 %v4201_v54  ;;  %v4044_v3 = vpop.f32.mrb[110].mxu0  ;;  %v5584_v29 = vpop.eup %5583 }
 0x529   :  { %5593 = vpow2.f32 %v4622_v6  ;;  %v4623_v19 = vmul.f32 -1.442695, %v4044_v3  ;;  %v4046_v30 = vpop.f32.mrb[111].mxu0  ;;  %4351 = vst.msk [vmem:[%s9176_s8 + $0xe0] sm:$0xff] %vm4322_vm1, %v4312_v61  ;;  %v4313_v2 = vmul.f32 %v5584_v29, %v9096_v17 }
 0x52b   :  { %v5586_v55 = vpop.eup %5585  ;;  %5595 = vpow2.f32 %v4623_v19  ;;  %4352 = vst.msk [vmem:[%s9176_s8 + $0xe8] sm:$0xff] %vm4322_vm1, %v4313_v2 }
 0x52c   :  { %v4202_v35 = vadd.f32 1.0, %v5586_v55 }
 0x52d   :  { %v5588_v27 = vpop.eup %5587 }
 0x52e   :  { %5597 = vrcp.f32 %v4202_v35  ;;  %v4203_v46 = vadd.f32 1.0, %v5588_v27 }
 0x530   :  { %v5590_v33 = vpop.eup %5589  ;;  %5599 = vrcp.f32 %v4203_v46  ;;  %v4049_v25 = vpop.f32.mrb[112].mxu0 }
 0x531   :  { %v4314_v45 = vmul.f32 %v5590_v33, %v9103_v7  ;;  %v4624_v1 = vmul.f32 -1.442695, %v4049_v25  ;;  %v4051_v26 = vpop.f32.mrb[113].mxu0 }
 0x532   :  { %v5592_v60 = vpop.eup %5591  ;;  %v4052_v13 = vpop.f32.mrb[114].mxu0 }
 0x533   :  { %v5594_v34 = vpop.eup %5593  ;;  %4353 = vst.msk [vmem:[%s9176_s8 + $0xf0] sm:$0xff] %vm4322_vm1, %v4314_v45  ;;  %v4315_v31 = vmul.f32 %v5592_v60, %v9106_v38  ;;  %5601 = vpow2.f32 %v4624_v1  ;;  %v4625_v5 = vmul.f32 -1.442695, %v4052_v13  ;;  %v4054_v18 = vpop.f32.mrb[115].mxu0 }
 0x534   :  { %v4204_v58 = vadd.f32 1.0, %v5594_v34 }
 0x535   :  { %v5596_v57 = vpop.eup %5595  ;;  %4354 = vst.msk [vmem:[%s9176_s8 + $0xf8] sm:$0xff] %vm4322_vm1, %v4315_v31  ;;  %5603 = vpow2.f32 %v4625_v5 }
 0x536   :  { %5605 = vrcp.f32 %v4204_v58  ;;  %v4205_v50 = vadd.f32 1.0, %v5596_v57 }
 0x538   :  { %v5598_v40 = vpop.eup %5597  ;;  %5607 = vrcp.f32 %v4205_v50 }
 0x539   :  { %v4316_v17 = vmul.f32 %v5598_v40, %v4033_v32 }
 0x53a   :  { %v5600_v0 = vpop.eup %5599 }
 0x53b   :  { %4355 = vst.msk [vmem:[%s9176_s8 + $0x100] sm:$0xff] %vm4322_vm1, %v4316_v17  ;;  %v4317_v59 = vmul.f32 %v5600_v0, %v4036_v39 }
 0x53d   :  { %v5602_v48 = vpop.eup %5601  ;;  %4356 = vst.msk [vmem:[%s9176_s8 + $0x108] sm:$0xff] %vm4322_vm1, %v4317_v59 }
 0x53e   :  { %v4206_v62 = vadd.f32 1.0, %v5602_v48 }
 0x53f   :  { %v5604_v36 = vpop.eup %5603 }
 0x540   :  { %v5606_v15 = vpop.eup %5605  ;;  %5609 = vrcp.f32 %v4206_v62  ;;  %v4207_v7 = vadd.f32 1.0, %v5604_v36 }
 0x541   :  { %v4318_v56 = vmul.f32 %v5606_v15, %v4041_v49 }
 0x542   :  { %v5608_v41 = vpop.eup %5607  ;;  %5611 = vrcp.f32 %v4207_v7 }
 0x543   :  { %4357 = vst.msk [vmem:[%s9176_s8 + $0x110] sm:$0xff] %vm4322_vm1, %v4318_v56  ;;  %v4319_v24 = vmul.f32 %v5608_v41, %v4044_v3 }
 0x545   :  { %4358 = vst.msk [vmem:[%s9176_s8 + $0x118] sm:$0xff] %vm4322_vm1, %v4319_v24 }
 0x54a   :  { %v5610_v16 = vpop.eup %5609 }
 0x54b   :  { %v4320_v38 = vmul.f32 %v5610_v16, %v4049_v25 }
 0x54c   :  { %v5612_v21 = vpop.eup %5611 }
 0x54d   :  { %4359 = vst.msk [vmem:[%s9176_s8 + $0x120] sm:$0xff] %vm4322_vm1, %v4320_v38  ;;  %v4321_v9 = vmul.f32 %v5612_v21, %v4052_v13 }
 0x54f   :  { %4360 = vst.msk [vmem:[%s9176_s8 + $0x128] sm:$0xff] %vm4322_vm1, %v4321_v9 }

</bundles_post_ra>
